<compile_context>
chip_gen: v7x
topology: tpu7x:2x2x1
jax: 0.10.0
libtpu: 0.0.40
codegen_flags: <defaults>
</compile_context>

<pallas_src>
import jax
import jax.numpy as jnp
from jax import lax
from jax.experimental import pallas as pl
from jax.experimental.pallas import tpu as pltpu


def _cws_fused_kernel(hs4_ref, mask_ref, tags_ref,
                      wih_all_ref, whh_f_ref, whh_b_ref, b_all_ref,
                      h0f_ref, c0f_ref, h0b_ref, c0b_ref,
                      wtag_ref, btag_ref,
                      start_ref, end_ref, trans_ref,
                      out_ref, hf_s, hb_s):
    T, B, _ = tags_ref.shape
    H = whh_f_ref.shape[0]
    K = trans_ref.shape[0]

    # ---------------- embeds = sum(hidden_states[-4:]) ----------------
    hs = hs4_ref[...]                                    # (4, B, T, D)
    embeds = hs[0] + hs[1] + hs[2] + hs[3]               # (B, T, D)
    D = embeds.shape[-1]

    # ------- hoisted input projection (both directions, 8H=128 lanes) -------
    # columns: [fwd i|f|g|o | bwd i|f|g|o], each block H wide; bias = b_ih+b_hh
    xp = jnp.dot(embeds.reshape(B * T, D), wih_all_ref[...],
                 preferred_element_type=jnp.float32) + b_all_ref[...]
    xp = xp.reshape(B, T, 8 * H)                         # (B, T, 8H)

    mask = mask_ref[...]                                 # (T, B, 1) f32
    whh_f = whh_f_ref[...]                               # (H, 4H)
    whh_b = whh_b_ref[...]                               # (H, 4H)

    def lstm_cell(z, c):
        # fused gate layout: [i | f | g | o] (PyTorch gate order)
        i_g = jax.nn.sigmoid(z[:, 0 * H:1 * H])
        f_g = jax.nn.sigmoid(z[:, 1 * H:2 * H])
        g_g = jnp.tanh(z[:, 2 * H:3 * H])
        o_g = jax.nn.sigmoid(z[:, 3 * H:4 * H])
        c_new = f_g * c + i_g * g_g
        h_new = o_g * jnp.tanh(c_new)
        return h_new, c_new

    # ---- forward direction (packed: h/c only advance where mask==1) ----
    h = h0f_ref[...]
    c = c0f_ref[...]
    for t in range(T):                                   # statically unrolled
        m_t = mask[t]                                    # (B, 1)
        z = xp[:, t, :4 * H] + jnp.dot(h, whh_f,
                                       preferred_element_type=jnp.float32)
        h_new, c_new = lstm_cell(z, c)
        h = m_t * h_new + (1.0 - m_t) * h
        c = m_t * c_new + (1.0 - m_t) * c
        hf_s[t] = m_t * h_new                            # pad_packed -> zeros

    # ---- backward direction (packed: starts at each sequence's last step) ----
    h = h0b_ref[...]
    c = c0b_ref[...]
    for i in range(T):                                   # statically unrolled
        t = T - 1 - i
        m_t = mask[t]
        z = xp[:, t, 4 * H:] + jnp.dot(h, whh_b,
                                       preferred_element_type=jnp.float32)
        h_new, c_new = lstm_cell(z, c)
        h = m_t * h_new + (1.0 - m_t) * h
        c = m_t * c_new + (1.0 - m_t) * c
        hb_s[t] = m_t * h_new

    # ---------------- hidden2tag (emissions stay in VMEM) ----------------
    lstm_out = jnp.concatenate([hf_s[...], hb_s[...]], axis=-1)   # (T, B, 2H)
    em = jnp.dot(lstm_out.reshape(T * B, 2 * H), wtag_ref[...],
                 preferred_element_type=jnp.float32) + btag_ref[...]
    em = em.reshape(T, B, K)

    # -------- CRF: -mean_b log p(tags_b | emissions_b) (torchcrf) --------
    start = start_ref[...]                               # (1, K)
    end = end_ref[...]                                   # (1, K)
    trans = trans_ref[...]                               # (K, K)
    tmax = jnp.max(trans, axis=(0, 1), keepdims=True)    # (1, 1)
    expT = jnp.exp(trans - tmax)                         # log-space matmul op

    iota_k = lax.broadcasted_iota(jnp.int32, (T, B, K), 2)
    oh = (iota_k == tags_ref[...]).astype(jnp.float32)   # (T, B, K) one-hots

    em0 = em[0]
    oh0 = oh[0]
    num = jnp.sum(oh0 * (start + em0), axis=1, keepdims=True)     # (B, 1)
    alpha = start + em0                                            # (B, K)
    last_oh = oh0
    prev_oh = oh0

    for t in range(1, T):                                # statically unrolled
        m_t = mask[t]                                    # (B, 1)
        em_t = em[t]
        oh_t = oh[t]

        # numerator: transitions[tags[t-1], tags[t]] + emissions[t, tags[t]]
        trans_score = jnp.sum(
            jnp.dot(prev_oh, trans, preferred_element_type=jnp.float32) * oh_t,
            axis=1, keepdims=True)
        em_score = jnp.sum(oh_t * em_t, axis=1, keepdims=True)
        num = num + m_t * (trans_score + em_score)

        # denominator: alpha_k = logsumexp_j(alpha_j + trans_jk) + em_k
        m_row = jnp.max(alpha, axis=1, keepdims=True)    # (B, 1)
        acc = jnp.dot(jnp.exp(alpha - m_row), expT,
                      preferred_element_type=jnp.float32)         # (B, K)
        lse = m_row + tmax + jnp.log(acc) + em_t
        alpha = jnp.where(m_t > 0.0, lse, alpha)

        last_oh = jnp.where(m_t > 0.0, oh_t, last_oh)    # last valid tag
        prev_oh = oh_t

    num = num + jnp.sum(last_oh * end, axis=1, keepdims=True)
    alpha = alpha + end
    m_row = jnp.max(alpha, axis=1, keepdims=True)
    den = m_row + jnp.log(jnp.sum(jnp.exp(alpha - m_row), axis=1,
                                  keepdims=True))                  # (B, 1)

    llh = num - den                                                # (B, 1)
    out_ref[...] = -jnp.sum(llh, axis=0, keepdims=True) / float(B)


# ----------------------------------------------------------------------------
# Parameters + forward wrapper (mirrors CWS.forward -> (loss, []))
# ----------------------------------------------------------------------------
def init_params(key, embedding_dim, hidden_dim, num_tags, batch_size):
    H = hidden_dim // 2
    ks = iter(jax.random.split(key, 16))

    def n(shape, s=0.1):
        return (s * jax.random.normal(next(ks), shape)).astype(jnp.float32)

    return dict(
        # fused LSTM input weights, both directions packed on the lane axis:
        # columns = [fwd i|f|g|o | bwd i|f|g|o], each H wide.  b_all = b_ih+b_hh.
        wih_all=n((embedding_dim, 8 * H)),
        b_all=n((1, 8 * H)),
        whh_f=n((H, 4 * H)),
        whh_b=n((H, 4 * H)),
        # init_hidden (PyTorch uses randn each call; deterministic here)
        h0f=n((batch_size, H), 1.0), c0f=n((batch_size, H), 1.0),
        h0b=n((batch_size, H), 1.0), c0b=n((batch_size, H), 1.0),
        # hidden2tag
        wtag=n((hidden_dim, num_tags)), btag=n((1, num_tags)),
        # CRF
        start=n((1, num_tags)), end=n((1, num_tags)),
        trans=n((num_tags, num_tags)),
    )


def cws_forward(hidden_states, tags_bt, mask_bt, params):
    """hidden_states: (L,B,T,D) synthetic BERT stack; tags/mask: (B,T)."""
    L, B, T, D = hidden_states.shape
    H = params["whh_f"].shape[0]

    hs_last4 = hidden_states[L - 4:]                               # (4,B,T,D)
    mask_tb1 = jnp.transpose(mask_bt, (1, 0))[:, :, None].astype(jnp.float32)
    tags_tb1 = jnp.transpose(tags_bt, (1, 0))[:, :, None].astype(jnp.int32)

    vmem = pl.BlockSpec(memory_space=pltpu.MemorySpace.VMEM)
    loss = pl.pallas_call(
        _cws_fused_kernel,
        out_shape=jax.ShapeDtypeStruct((1, 1), jnp.float32),
        in_specs=[vmem] * 16,
        out_specs=vmem,
        scratch_shapes=[pltpu.VMEM((T, B, H), jnp.float32),
                        pltpu.VMEM((T, B, H), jnp.float32)],
    )(hs_last4, mask_tb1, tags_tb1,
      params["wih_all"], params["whh_f"], params["whh_b"], params["b_all"],
      params["h0f"], params["c0f"], params["h0b"], params["c0b"],
      params["wtag"], params["btag"],
      params["start"], params["end"], params["trans"])
    return loss[0, 0], []                                          # (loss, s)


if __name__ == "__main__":
    B, T = 2, 8
    L = 13                      # bert-base hidden-state stack size
    embedding_dim = 32
    hidden_dim = 32
    num_tags = 21               # CRF(21) in the reference module

    key = jax.random.PRNGKey(0)
    k_hs, k_tags, k_params = jax.random.split(key, 3)

    hidden_states = (0.5 * jax.random.normal(
        k_hs, (L, B, T, embedding_dim))).astype(jnp.float32)
    lengths = jnp.array([T, 5], dtype=jnp.int32)     # sorted desc (pack req.)
    mask_bt = (jnp.arange(T)[None, :] < lengths[:, None]).astype(jnp.float32)
    tags_bt = jax.random.randint(k_tags, (B, T), 0, num_tags, dtype=jnp.int32)

    params = init_params(k_params, embedding_dim, hidden_dim, num_tags, B)

    loss, s = cws_forward(hidden_states, tags_bt, mask_bt, params)
    loss = jax.block_until_ready(loss)
    print("KERNEL_OK")
</pallas_src>

<mosaic_0001>
module attributes {stable_mosaic.version = 11 : i64} {
  func.func @_cws_fused_kernel(%arg0: memref<4x2x8x32xf32, #tpu.memory_space<vmem>>, %arg1: memref<8x2x1xf32, #tpu.memory_space<vmem>>, %arg2: memref<8x2x1xi32, #tpu.memory_space<vmem>>, %arg3: memref<32x128xf32, #tpu.memory_space<vmem>>, %arg4: memref<16x64xf32, #tpu.memory_space<vmem>>, %arg5: memref<16x64xf32, #tpu.memory_space<vmem>>, %arg6: memref<1x128xf32, #tpu.memory_space<vmem>>, %arg7: memref<2x16xf32, #tpu.memory_space<vmem>>, %arg8: memref<2x16xf32, #tpu.memory_space<vmem>>, %arg9: memref<2x16xf32, #tpu.memory_space<vmem>>, %arg10: memref<2x16xf32, #tpu.memory_space<vmem>>, %arg11: memref<32x21xf32, #tpu.memory_space<vmem>>, %arg12: memref<1x21xf32, #tpu.memory_space<vmem>>, %arg13: memref<1x21xf32, #tpu.memory_space<vmem>>, %arg14: memref<1x21xf32, #tpu.memory_space<vmem>>, %arg15: memref<21x21xf32, #tpu.memory_space<vmem>>, %arg16: memref<1x1xf32, #tpu.memory_space<vmem>>, %arg17: memref<8x2x16xf32, #tpu.memory_space<vmem>>, %arg18: memref<8x2x16xf32, #tpu.memory_space<vmem>>) attributes {dimension_semantics = [], scalar_prefetch = 0 : i64, scratch_operands = 2 : i64, tpu.core_type = #tpu.core_type<tc>} {
    %c0 = arith.constant 0 : index
    %c0_0 = arith.constant 0 : index
    %c0_1 = arith.constant 0 : index
    %c0_2 = arith.constant 0 : index
    %0 = vector.load %arg0[%c0, %c0_0, %c0_1, %c0_2] : memref<4x2x8x32xf32, #tpu.memory_space<vmem>>, vector<4x2x8x32xf32>
    %1 = vector.extract_strided_slice %0 {offsets = [0, 0, 0, 0], sizes = [1, 2, 8, 32], strides = [1, 1, 1, 1]} : vector<4x2x8x32xf32> to vector<1x2x8x32xf32>
    %2 = vector.shape_cast %1 : vector<1x2x8x32xf32> to vector<2x8x32xf32>
    %3 = vector.extract_strided_slice %0 {offsets = [1, 0, 0, 0], sizes = [1, 2, 8, 32], strides = [1, 1, 1, 1]} : vector<4x2x8x32xf32> to vector<1x2x8x32xf32>
    %4 = vector.shape_cast %3 : vector<1x2x8x32xf32> to vector<2x8x32xf32>
    %5 = arith.addf %2, %4 : vector<2x8x32xf32>
    %6 = vector.extract_strided_slice %0 {offsets = [2, 0, 0, 0], sizes = [1, 2, 8, 32], strides = [1, 1, 1, 1]} : vector<4x2x8x32xf32> to vector<1x2x8x32xf32>
    %7 = vector.shape_cast %6 : vector<1x2x8x32xf32> to vector<2x8x32xf32>
    %8 = arith.addf %5, %7 : vector<2x8x32xf32>
    %9 = vector.extract_strided_slice %0 {offsets = [3, 0, 0, 0], sizes = [1, 2, 8, 32], strides = [1, 1, 1, 1]} : vector<4x2x8x32xf32> to vector<1x2x8x32xf32>
    %10 = vector.shape_cast %9 : vector<1x2x8x32xf32> to vector<2x8x32xf32>
    %11 = arith.addf %8, %10 : vector<2x8x32xf32>
    %12 = vector.shape_cast %11 : vector<2x8x32xf32> to vector<16x32xf32>
    %c0_3 = arith.constant 0 : index
    %c0_4 = arith.constant 0 : index
    %13 = vector.load %arg3[%c0_3, %c0_4] : memref<32x128xf32, #tpu.memory_space<vmem>>, vector<32x128xf32>
    %cst = arith.constant dense<0.000000e+00> : vector<16x128xf32>
    %14 = tpu.matmul %12, %13, %cst {dimension_numbers = #tpu.dot_dimension_numbers<[1], [0], [0], [1], [0, 0, 1, 1], [], []>} : vector<16x32xf32>, vector<32x128xf32>, vector<16x128xf32> -> vector<16x128xf32>
    %c0_5 = arith.constant 0 : index
    %c0_6 = arith.constant 0 : index
    %15 = vector.load %arg6[%c0_5, %c0_6] : memref<1x128xf32, #tpu.memory_space<vmem>>, vector<1x128xf32>
    %16 = vector.broadcast %15 : vector<1x128xf32> to vector<16x128xf32>
    %17 = arith.addf %14, %16 : vector<16x128xf32>
    %18 = vector.shape_cast %17 : vector<16x128xf32> to vector<2x8x128xf32>
    %c0_7 = arith.constant 0 : index
    %c0_8 = arith.constant 0 : index
    %c0_9 = arith.constant 0 : index
    %19 = vector.load %arg1[%c0_7, %c0_8, %c0_9] : memref<8x2x1xf32, #tpu.memory_space<vmem>>, vector<8x2x1xf32>
    %c0_10 = arith.constant 0 : index
    %c0_11 = arith.constant 0 : index
    %20 = vector.load %arg4[%c0_10, %c0_11] : memref<16x64xf32, #tpu.memory_space<vmem>>, vector<16x64xf32>
    %c0_12 = arith.constant 0 : index
    %c0_13 = arith.constant 0 : index
    %21 = vector.load %arg5[%c0_12, %c0_13] : memref<16x64xf32, #tpu.memory_space<vmem>>, vector<16x64xf32>
    %c0_14 = arith.constant 0 : index
    %c0_15 = arith.constant 0 : index
    %22 = vector.load %arg7[%c0_14, %c0_15] : memref<2x16xf32, #tpu.memory_space<vmem>>, vector<2x16xf32>
    %c0_16 = arith.constant 0 : index
    %c0_17 = arith.constant 0 : index
    %23 = vector.load %arg8[%c0_16, %c0_17] : memref<2x16xf32, #tpu.memory_space<vmem>>, vector<2x16xf32>
    %24 = vector.extract_strided_slice %19 {offsets = [0, 0, 0], sizes = [1, 2, 1], strides = [1, 1, 1]} : vector<8x2x1xf32> to vector<1x2x1xf32>
    %25 = vector.shape_cast %24 : vector<1x2x1xf32> to vector<2x1xf32>
    %26 = vector.extract_strided_slice %18 {offsets = [0, 0, 0], sizes = [2, 1, 64], strides = [1, 1, 1]} : vector<2x8x128xf32> to vector<2x1x64xf32>
    %27 = vector.shape_cast %26 : vector<2x1x64xf32> to vector<2x64xf32>
    %cst_18 = arith.constant dense<0.000000e+00> : vector<2x64xf32>
    %28 = tpu.matmul %22, %20, %cst_18 {dimension_numbers = #tpu.dot_dimension_numbers<[1], [0], [0], [1], [0, 0, 1, 1], [], []>} : vector<2x16xf32>, vector<16x64xf32>, vector<2x64xf32> -> vector<2x64xf32>
    %29 = arith.addf %27, %28 : vector<2x64xf32>
    %30 = vector.extract_strided_slice %29 {offsets = [0, 0], sizes = [2, 16], strides = [1, 1]} : vector<2x64xf32> to vector<2x16xf32>
    %31 = arith.negf %30 : vector<2x16xf32>
    %32 = math.exp %31 : vector<2x16xf32>
    %cst_19 = arith.constant 1.000000e+00 : f32
    %33 = vector.broadcast %cst_19 : f32 to vector<2x16xf32>
    %34 = arith.addf %33, %32 : vector<2x16xf32>
    %35 = arith.divf %33, %34 : vector<2x16xf32>
    %36 = vector.extract_strided_slice %29 {offsets = [0, 16], sizes = [2, 16], strides = [1, 1]} : vector<2x64xf32> to vector<2x16xf32>
    %37 = arith.negf %36 : vector<2x16xf32>
    %38 = math.exp %37 : vector<2x16xf32>
    %cst_20 = arith.constant 1.000000e+00 : f32
    %39 = vector.broadcast %cst_20 : f32 to vector<2x16xf32>
    %40 = arith.addf %39, %38 : vector<2x16xf32>
    %41 = arith.divf %39, %40 : vector<2x16xf32>
    %42 = vector.extract_strided_slice %29 {offsets = [0, 32], sizes = [2, 16], strides = [1, 1]} : vector<2x64xf32> to vector<2x16xf32>
    %43 = math.tanh %42 : vector<2x16xf32>
    %44 = vector.extract_strided_slice %29 {offsets = [0, 48], sizes = [2, 16], strides = [1, 1]} : vector<2x64xf32> to vector<2x16xf32>
    %45 = arith.negf %44 : vector<2x16xf32>
    %46 = math.exp %45 : vector<2x16xf32>
    %cst_21 = arith.constant 1.000000e+00 : f32
    %47 = vector.broadcast %cst_21 : f32 to vector<2x16xf32>
    %48 = arith.addf %47, %46 : vector<2x16xf32>
    %49 = arith.divf %47, %48 : vector<2x16xf32>
    %50 = arith.mulf %41, %23 : vector<2x16xf32>
    %51 = arith.mulf %35, %43 : vector<2x16xf32>
    %52 = arith.addf %50, %51 : vector<2x16xf32>
    %53 = math.tanh %52 : vector<2x16xf32>
    %54 = arith.mulf %49, %53 : vector<2x16xf32>
    %55 = vector.broadcast %25 : vector<2x1xf32> to vector<2x16xf32>
    %56 = arith.mulf %55, %54 : vector<2x16xf32>
    %cst_22 = arith.constant 1.000000e+00 : f32
    %57 = vector.broadcast %cst_22 : f32 to vector<2x1xf32>
    %58 = arith.subf %57, %25 : vector<2x1xf32>
    %59 = vector.broadcast %58 : vector<2x1xf32> to vector<2x16xf32>
    %60 = arith.mulf %59, %22 : vector<2x16xf32>
    %61 = arith.addf %56, %60 : vector<2x16xf32>
    %62 = vector.broadcast %25 : vector<2x1xf32> to vector<2x16xf32>
    %63 = arith.mulf %62, %52 : vector<2x16xf32>
    %cst_23 = arith.constant 1.000000e+00 : f32
    %64 = vector.broadcast %cst_23 : f32 to vector<2x1xf32>
    %65 = arith.subf %64, %25 : vector<2x1xf32>
    %66 = vector.broadcast %65 : vector<2x1xf32> to vector<2x16xf32>
    %67 = arith.mulf %66, %23 : vector<2x16xf32>
    %68 = arith.addf %63, %67 : vector<2x16xf32>
    %69 = vector.broadcast %25 : vector<2x1xf32> to vector<2x16xf32>
    %70 = arith.mulf %69, %54 : vector<2x16xf32>
    %c0_24 = arith.constant 0 : index
    %c0_25 = arith.constant 0 : index
    %c0_26 = arith.constant 0 : index
    %71 = vector.load %arg17[%c0_24, %c0_25, %c0_26] : memref<8x2x16xf32, #tpu.memory_space<vmem>>, vector<1x2x16xf32>
    %72 = vector.shape_cast %71 : vector<1x2x16xf32> to vector<2x16xf32>
    %73 = vector.shape_cast %70 : vector<2x16xf32> to vector<1x2x16xf32>
    tpu.vector_store %arg17[%c0_24, %c0_25, %c0_26], %73 {strides = array<i32>} : memref<8x2x16xf32, #tpu.memory_space<vmem>>, vector<1x2x16xf32>,
    %74 = vector.extract_strided_slice %19 {offsets = [1, 0, 0], sizes = [1, 2, 1], strides = [1, 1, 1]} : vector<8x2x1xf32> to vector<1x2x1xf32>
    %75 = vector.shape_cast %74 : vector<1x2x1xf32> to vector<2x1xf32>
    %76 = vector.extract_strided_slice %18 {offsets = [0, 1, 0], sizes = [2, 1, 64], strides = [1, 1, 1]} : vector<2x8x128xf32> to vector<2x1x64xf32>
    %77 = vector.shape_cast %76 : vector<2x1x64xf32> to vector<2x64xf32>
    %cst_27 = arith.constant dense<0.000000e+00> : vector<2x64xf32>
    %78 = tpu.matmul %61, %20, %cst_27 {dimension_numbers = #tpu.dot_dimension_numbers<[1], [0], [0], [1], [0, 0, 1, 1], [], []>} : vector<2x16xf32>, vector<16x64xf32>, vector<2x64xf32> -> vector<2x64xf32>
    %79 = arith.addf %77, %78 : vector<2x64xf32>
    %80 = vector.extract_strided_slice %79 {offsets = [0, 0], sizes = [2, 16], strides = [1, 1]} : vector<2x64xf32> to vector<2x16xf32>
    %81 = arith.negf %80 : vector<2x16xf32>
    %82 = math.exp %81 : vector<2x16xf32>
    %cst_28 = arith.constant 1.000000e+00 : f32
    %83 = vector.broadcast %cst_28 : f32 to vector<2x16xf32>
    %84 = arith.addf %83, %82 : vector<2x16xf32>
    %85 = arith.divf %83, %84 : vector<2x16xf32>
    %86 = vector.extract_strided_slice %79 {offsets = [0, 16], sizes = [2, 16], strides = [1, 1]} : vector<2x64xf32> to vector<2x16xf32>
    %87 = arith.negf %86 : vector<2x16xf32>
    %88 = math.exp %87 : vector<2x16xf32>
    %cst_29 = arith.constant 1.000000e+00 : f32
    %89 = vector.broadcast %cst_29 : f32 to vector<2x16xf32>
    %90 = arith.addf %89, %88 : vector<2x16xf32>
    %91 = arith.divf %89, %90 : vector<2x16xf32>
    %92 = vector.extract_strided_slice %79 {offsets = [0, 32], sizes = [2, 16], strides = [1, 1]} : vector<2x64xf32> to vector<2x16xf32>
    %93 = math.tanh %92 : vector<2x16xf32>
    %94 = vector.extract_strided_slice %79 {offsets = [0, 48], sizes = [2, 16], strides = [1, 1]} : vector<2x64xf32> to vector<2x16xf32>
    %95 = arith.negf %94 : vector<2x16xf32>
    %96 = math.exp %95 : vector<2x16xf32>
    %cst_30 = arith.constant 1.000000e+00 : f32
    %97 = vector.broadcast %cst_30 : f32 to vector<2x16xf32>
    %98 = arith.addf %97, %96 : vector<2x16xf32>
    %99 = arith.divf %97, %98 : vector<2x16xf32>
    %100 = arith.mulf %91, %68 : vector<2x16xf32>
    %101 = arith.mulf %85, %93 : vector<2x16xf32>
    %102 = arith.addf %100, %101 : vector<2x16xf32>
    %103 = math.tanh %102 : vector<2x16xf32>
    %104 = arith.mulf %99, %103 : vector<2x16xf32>
    %105 = vector.broadcast %75 : vector<2x1xf32> to vector<2x16xf32>
    %106 = arith.mulf %105, %104 : vector<2x16xf32>
    %cst_31 = arith.constant 1.000000e+00 : f32
    %107 = vector.broadcast %cst_31 : f32 to vector<2x1xf32>
    %108 = arith.subf %107, %75 : vector<2x1xf32>
    %109 = vector.broadcast %108 : vector<2x1xf32> to vector<2x16xf32>
    %110 = arith.mulf %109, %61 : vector<2x16xf32>
    %111 = arith.addf %106, %110 : vector<2x16xf32>
    %112 = vector.broadcast %75 : vector<2x1xf32> to vector<2x16xf32>
    %113 = arith.mulf %112, %102 : vector<2x16xf32>
    %cst_32 = arith.constant 1.000000e+00 : f32
    %114 = vector.broadcast %cst_32 : f32 to vector<2x1xf32>
    %115 = arith.subf %114, %75 : vector<2x1xf32>
    %116 = vector.broadcast %115 : vector<2x1xf32> to vector<2x16xf32>
    %117 = arith.mulf %116, %68 : vector<2x16xf32>
    %118 = arith.addf %113, %117 : vector<2x16xf32>
    %119 = vector.broadcast %75 : vector<2x1xf32> to vector<2x16xf32>
    %120 = arith.mulf %119, %104 : vector<2x16xf32>
    %c1 = arith.constant 1 : index
    %c0_33 = arith.constant 0 : index
    %c0_34 = arith.constant 0 : index
    %121 = vector.load %arg17[%c1, %c0_33, %c0_34] : memref<8x2x16xf32, #tpu.memory_space<vmem>>, vector<1x2x16xf32>
    %122 = vector.shape_cast %121 : vector<1x2x16xf32> to vector<2x16xf32>
    %123 = vector.shape_cast %120 : vector<2x16xf32> to vector<1x2x16xf32>
    tpu.vector_store %arg17[%c1, %c0_33, %c0_34], %123 {strides = array<i32>} : memref<8x2x16xf32, #tpu.memory_space<vmem>>, vector<1x2x16xf32>,
    %124 = vector.extract_strided_slice %19 {offsets = [2, 0, 0], sizes = [1, 2, 1], strides = [1, 1, 1]} : vector<8x2x1xf32> to vector<1x2x1xf32>
    %125 = vector.shape_cast %124 : vector<1x2x1xf32> to vector<2x1xf32>
    %126 = vector.extract_strided_slice %18 {offsets = [0, 2, 0], sizes = [2, 1, 64], strides = [1, 1, 1]} : vector<2x8x128xf32> to vector<2x1x64xf32>
    %127 = vector.shape_cast %126 : vector<2x1x64xf32> to vector<2x64xf32>
    %cst_35 = arith.constant dense<0.000000e+00> : vector<2x64xf32>
    %128 = tpu.matmul %111, %20, %cst_35 {dimension_numbers = #tpu.dot_dimension_numbers<[1], [0], [0], [1], [0, 0, 1, 1], [], []>} : vector<2x16xf32>, vector<16x64xf32>, vector<2x64xf32> -> vector<2x64xf32>
    %129 = arith.addf %127, %128 : vector<2x64xf32>
    %130 = vector.extract_strided_slice %129 {offsets = [0, 0], sizes = [2, 16], strides = [1, 1]} : vector<2x64xf32> to vector<2x16xf32>
    %131 = arith.negf %130 : vector<2x16xf32>
    %132 = math.exp %131 : vector<2x16xf32>
    %cst_36 = arith.constant 1.000000e+00 : f32
    %133 = vector.broadcast %cst_36 : f32 to vector<2x16xf32>
    %134 = arith.addf %133, %132 : vector<2x16xf32>
    %135 = arith.divf %133, %134 : vector<2x16xf32>
    %136 = vector.extract_strided_slice %129 {offsets = [0, 16], sizes = [2, 16], strides = [1, 1]} : vector<2x64xf32> to vector<2x16xf32>
    %137 = arith.negf %136 : vector<2x16xf32>
    %138 = math.exp %137 : vector<2x16xf32>
    %cst_37 = arith.constant 1.000000e+00 : f32
    %139 = vector.broadcast %cst_37 : f32 to vector<2x16xf32>
    %140 = arith.addf %139, %138 : vector<2x16xf32>
    %141 = arith.divf %139, %140 : vector<2x16xf32>
    %142 = vector.extract_strided_slice %129 {offsets = [0, 32], sizes = [2, 16], strides = [1, 1]} : vector<2x64xf32> to vector<2x16xf32>
    %143 = math.tanh %142 : vector<2x16xf32>
    %144 = vector.extract_strided_slice %129 {offsets = [0, 48], sizes = [2, 16], strides = [1, 1]} : vector<2x64xf32> to vector<2x16xf32>
    %145 = arith.negf %144 : vector<2x16xf32>
    %146 = math.exp %145 : vector<2x16xf32>
    %cst_38 = arith.constant 1.000000e+00 : f32
    %147 = vector.broadcast %cst_38 : f32 to vector<2x16xf32>
    %148 = arith.addf %147, %146 : vector<2x16xf32>
    %149 = arith.divf %147, %148 : vector<2x16xf32>
    %150 = arith.mulf %141, %118 : vector<2x16xf32>
    %151 = arith.mulf %135, %143 : vector<2x16xf32>
    %152 = arith.addf %150, %151 : vector<2x16xf32>
    %153 = math.tanh %152 : vector<2x16xf32>
    %154 = arith.mulf %149, %153 : vector<2x16xf32>
    %155 = vector.broadcast %125 : vector<2x1xf32> to vector<2x16xf32>
    %156 = arith.mulf %155, %154 : vector<2x16xf32>
    %cst_39 = arith.constant 1.000000e+00 : f32
    %157 = vector.broadcast %cst_39 : f32 to vector<2x1xf32>
    %158 = arith.subf %157, %125 : vector<2x1xf32>
    %159 = vector.broadcast %158 : vector<2x1xf32> to vector<2x16xf32>
    %160 = arith.mulf %159, %111 : vector<2x16xf32>
    %161 = arith.addf %156, %160 : vector<2x16xf32>
    %162 = vector.broadcast %125 : vector<2x1xf32> to vector<2x16xf32>
    %163 = arith.mulf %162, %152 : vector<2x16xf32>
    %cst_40 = arith.constant 1.000000e+00 : f32
    %164 = vector.broadcast %cst_40 : f32 to vector<2x1xf32>
    %165 = arith.subf %164, %125 : vector<2x1xf32>
    %166 = vector.broadcast %165 : vector<2x1xf32> to vector<2x16xf32>
    %167 = arith.mulf %166, %118 : vector<2x16xf32>
    %168 = arith.addf %163, %167 : vector<2x16xf32>
    %169 = vector.broadcast %125 : vector<2x1xf32> to vector<2x16xf32>
    %170 = arith.mulf %169, %154 : vector<2x16xf32>
    %c2 = arith.constant 2 : index
    %c0_41 = arith.constant 0 : index
    %c0_42 = arith.constant 0 : index
    %171 = vector.load %arg17[%c2, %c0_41, %c0_42] : memref<8x2x16xf32, #tpu.memory_space<vmem>>, vector<1x2x16xf32>
    %172 = vector.shape_cast %171 : vector<1x2x16xf32> to vector<2x16xf32>
    %173 = vector.shape_cast %170 : vector<2x16xf32> to vector<1x2x16xf32>
    tpu.vector_store %arg17[%c2, %c0_41, %c0_42], %173 {strides = array<i32>} : memref<8x2x16xf32, #tpu.memory_space<vmem>>, vector<1x2x16xf32>,
    %174 = vector.extract_strided_slice %19 {offsets = [3, 0, 0], sizes = [1, 2, 1], strides = [1, 1, 1]} : vector<8x2x1xf32> to vector<1x2x1xf32>
    %175 = vector.shape_cast %174 : vector<1x2x1xf32> to vector<2x1xf32>
    %176 = vector.extract_strided_slice %18 {offsets = [0, 3, 0], sizes = [2, 1, 64], strides = [1, 1, 1]} : vector<2x8x128xf32> to vector<2x1x64xf32>
    %177 = vector.shape_cast %176 : vector<2x1x64xf32> to vector<2x64xf32>
    %cst_43 = arith.constant dense<0.000000e+00> : vector<2x64xf32>
    %178 = tpu.matmul %161, %20, %cst_43 {dimension_numbers = #tpu.dot_dimension_numbers<[1], [0], [0], [1], [0, 0, 1, 1], [], []>} : vector<2x16xf32>, vector<16x64xf32>, vector<2x64xf32> -> vector<2x64xf32>
    %179 = arith.addf %177, %178 : vector<2x64xf32>
    %180 = vector.extract_strided_slice %179 {offsets = [0, 0], sizes = [2, 16], strides = [1, 1]} : vector<2x64xf32> to vector<2x16xf32>
    %181 = arith.negf %180 : vector<2x16xf32>
    %182 = math.exp %181 : vector<2x16xf32>
    %cst_44 = arith.constant 1.000000e+00 : f32
    %183 = vector.broadcast %cst_44 : f32 to vector<2x16xf32>
    %184 = arith.addf %183, %182 : vector<2x16xf32>
    %185 = arith.divf %183, %184 : vector<2x16xf32>
    %186 = vector.extract_strided_slice %179 {offsets = [0, 16], sizes = [2, 16], strides = [1, 1]} : vector<2x64xf32> to vector<2x16xf32>
    %187 = arith.negf %186 : vector<2x16xf32>
    %188 = math.exp %187 : vector<2x16xf32>
    %cst_45 = arith.constant 1.000000e+00 : f32
    %189 = vector.broadcast %cst_45 : f32 to vector<2x16xf32>
    %190 = arith.addf %189, %188 : vector<2x16xf32>
    %191 = arith.divf %189, %190 : vector<2x16xf32>
    %192 = vector.extract_strided_slice %179 {offsets = [0, 32], sizes = [2, 16], strides = [1, 1]} : vector<2x64xf32> to vector<2x16xf32>
    %193 = math.tanh %192 : vector<2x16xf32>
    %194 = vector.extract_strided_slice %179 {offsets = [0, 48], sizes = [2, 16], strides = [1, 1]} : vector<2x64xf32> to vector<2x16xf32>
    %195 = arith.negf %194 : vector<2x16xf32>
    %196 = math.exp %195 : vector<2x16xf32>
    %cst_46 = arith.constant 1.000000e+00 : f32
    %197 = vector.broadcast %cst_46 : f32 to vector<2x16xf32>
    %198 = arith.addf %197, %196 : vector<2x16xf32>
    %199 = arith.divf %197, %198 : vector<2x16xf32>
    %200 = arith.mulf %191, %168 : vector<2x16xf32>
    %201 = arith.mulf %185, %193 : vector<2x16xf32>
    %202 = arith.addf %200, %201 : vector<2x16xf32>
    %203 = math.tanh %202 : vector<2x16xf32>
    %204 = arith.mulf %199, %203 : vector<2x16xf32>
    %205 = vector.broadcast %175 : vector<2x1xf32> to vector<2x16xf32>
    %206 = arith.mulf %205, %204 : vector<2x16xf32>
    %cst_47 = arith.constant 1.000000e+00 : f32
    %207 = vector.broadcast %cst_47 : f32 to vector<2x1xf32>
    %208 = arith.subf %207, %175 : vector<2x1xf32>
    %209 = vector.broadcast %208 : vector<2x1xf32> to vector<2x16xf32>
    %210 = arith.mulf %209, %161 : vector<2x16xf32>
    %211 = arith.addf %206, %210 : vector<2x16xf32>
    %212 = vector.broadcast %175 : vector<2x1xf32> to vector<2x16xf32>
    %213 = arith.mulf %212, %202 : vector<2x16xf32>
    %cst_48 = arith.constant 1.000000e+00 : f32
    %214 = vector.broadcast %cst_48 : f32 to vector<2x1xf32>
    %215 = arith.subf %214, %175 : vector<2x1xf32>
    %216 = vector.broadcast %215 : vector<2x1xf32> to vector<2x16xf32>
    %217 = arith.mulf %216, %168 : vector<2x16xf32>
    %218 = arith.addf %213, %217 : vector<2x16xf32>
    %219 = vector.broadcast %175 : vector<2x1xf32> to vector<2x16xf32>
    %220 = arith.mulf %219, %204 : vector<2x16xf32>
    %c3 = arith.constant 3 : index
    %c0_49 = arith.constant 0 : index
    %c0_50 = arith.constant 0 : index
    %221 = vector.load %arg17[%c3, %c0_49, %c0_50] : memref<8x2x16xf32, #tpu.memory_space<vmem>>, vector<1x2x16xf32>
    %222 = vector.shape_cast %221 : vector<1x2x16xf32> to vector<2x16xf32>
    %223 = vector.shape_cast %220 : vector<2x16xf32> to vector<1x2x16xf32>
    tpu.vector_store %arg17[%c3, %c0_49, %c0_50], %223 {strides = array<i32>} : memref<8x2x16xf32, #tpu.memory_space<vmem>>, vector<1x2x16xf32>,
    %224 = vector.extract_strided_slice %19 {offsets = [4, 0, 0], sizes = [1, 2, 1], strides = [1, 1, 1]} : vector<8x2x1xf32> to vector<1x2x1xf32>
    %225 = vector.shape_cast %224 : vector<1x2x1xf32> to vector<2x1xf32>
    %226 = vector.extract_strided_slice %18 {offsets = [0, 4, 0], sizes = [2, 1, 64], strides = [1, 1, 1]} : vector<2x8x128xf32> to vector<2x1x64xf32>
    %227 = vector.shape_cast %226 : vector<2x1x64xf32> to vector<2x64xf32>
    %cst_51 = arith.constant dense<0.000000e+00> : vector<2x64xf32>
    %228 = tpu.matmul %211, %20, %cst_51 {dimension_numbers = #tpu.dot_dimension_numbers<[1], [0], [0], [1], [0, 0, 1, 1], [], []>} : vector<2x16xf32>, vector<16x64xf32>, vector<2x64xf32> -> vector<2x64xf32>
    %229 = arith.addf %227, %228 : vector<2x64xf32>
    %230 = vector.extract_strided_slice %229 {offsets = [0, 0], sizes = [2, 16], strides = [1, 1]} : vector<2x64xf32> to vector<2x16xf32>
    %231 = arith.negf %230 : vector<2x16xf32>
    %232 = math.exp %231 : vector<2x16xf32>
    %cst_52 = arith.constant 1.000000e+00 : f32
    %233 = vector.broadcast %cst_52 : f32 to vector<2x16xf32>
    %234 = arith.addf %233, %232 : vector<2x16xf32>
    %235 = arith.divf %233, %234 : vector<2x16xf32>
    %236 = vector.extract_strided_slice %229 {offsets = [0, 16], sizes = [2, 16], strides = [1, 1]} : vector<2x64xf32> to vector<2x16xf32>
    %237 = arith.negf %236 : vector<2x16xf32>
    %238 = math.exp %237 : vector<2x16xf32>
    %cst_53 = arith.constant 1.000000e+00 : f32
    %239 = vector.broadcast %cst_53 : f32 to vector<2x16xf32>
    %240 = arith.addf %239, %238 : vector<2x16xf32>
    %241 = arith.divf %239, %240 : vector<2x16xf32>
    %242 = vector.extract_strided_slice %229 {offsets = [0, 32], sizes = [2, 16], strides = [1, 1]} : vector<2x64xf32> to vector<2x16xf32>
    %243 = math.tanh %242 : vector<2x16xf32>
    %244 = vector.extract_strided_slice %229 {offsets = [0, 48], sizes = [2, 16], strides = [1, 1]} : vector<2x64xf32> to vector<2x16xf32>
    %245 = arith.negf %244 : vector<2x16xf32>
    %246 = math.exp %245 : vector<2x16xf32>
    %cst_54 = arith.constant 1.000000e+00 : f32
    %247 = vector.broadcast %cst_54 : f32 to vector<2x16xf32>
    %248 = arith.addf %247, %246 : vector<2x16xf32>
    %249 = arith.divf %247, %248 : vector<2x16xf32>
    %250 = arith.mulf %241, %218 : vector<2x16xf32>
    %251 = arith.mulf %235, %243 : vector<2x16xf32>
    %252 = arith.addf %250, %251 : vector<2x16xf32>
    %253 = math.tanh %252 : vector<2x16xf32>
    %254 = arith.mulf %249, %253 : vector<2x16xf32>
    %255 = vector.broadcast %225 : vector<2x1xf32> to vector<2x16xf32>
    %256 = arith.mulf %255, %254 : vector<2x16xf32>
    %cst_55 = arith.constant 1.000000e+00 : f32
    %257 = vector.broadcast %cst_55 : f32 to vector<2x1xf32>
    %258 = arith.subf %257, %225 : vector<2x1xf32>
    %259 = vector.broadcast %258 : vector<2x1xf32> to vector<2x16xf32>
    %260 = arith.mulf %259, %211 : vector<2x16xf32>
    %261 = arith.addf %256, %260 : vector<2x16xf32>
    %262 = vector.broadcast %225 : vector<2x1xf32> to vector<2x16xf32>
    %263 = arith.mulf %262, %252 : vector<2x16xf32>
    %cst_56 = arith.constant 1.000000e+00 : f32
    %264 = vector.broadcast %cst_56 : f32 to vector<2x1xf32>
    %265 = arith.subf %264, %225 : vector<2x1xf32>
    %266 = vector.broadcast %265 : vector<2x1xf32> to vector<2x16xf32>
    %267 = arith.mulf %266, %218 : vector<2x16xf32>
    %268 = arith.addf %263, %267 : vector<2x16xf32>
    %269 = vector.broadcast %225 : vector<2x1xf32> to vector<2x16xf32>
    %270 = arith.mulf %269, %254 : vector<2x16xf32>
    %c4 = arith.constant 4 : index
    %c0_57 = arith.constant 0 : index
    %c0_58 = arith.constant 0 : index
    %271 = vector.load %arg17[%c4, %c0_57, %c0_58] : memref<8x2x16xf32, #tpu.memory_space<vmem>>, vector<1x2x16xf32>
    %272 = vector.shape_cast %271 : vector<1x2x16xf32> to vector<2x16xf32>
    %273 = vector.shape_cast %270 : vector<2x16xf32> to vector<1x2x16xf32>
    tpu.vector_store %arg17[%c4, %c0_57, %c0_58], %273 {strides = array<i32>} : memref<8x2x16xf32, #tpu.memory_space<vmem>>, vector<1x2x16xf32>,
    %274 = vector.extract_strided_slice %19 {offsets = [5, 0, 0], sizes = [1, 2, 1], strides = [1, 1, 1]} : vector<8x2x1xf32> to vector<1x2x1xf32>
    %275 = vector.shape_cast %274 : vector<1x2x1xf32> to vector<2x1xf32>
    %276 = vector.extract_strided_slice %18 {offsets = [0, 5, 0], sizes = [2, 1, 64], strides = [1, 1, 1]} : vector<2x8x128xf32> to vector<2x1x64xf32>
    %277 = vector.shape_cast %276 : vector<2x1x64xf32> to vector<2x64xf32>
    %cst_59 = arith.constant dense<0.000000e+00> : vector<2x64xf32>
    %278 = tpu.matmul %261, %20, %cst_59 {dimension_numbers = #tpu.dot_dimension_numbers<[1], [0], [0], [1], [0, 0, 1, 1], [], []>} : vector<2x16xf32>, vector<16x64xf32>, vector<2x64xf32> -> vector<2x64xf32>
    %279 = arith.addf %277, %278 : vector<2x64xf32>
    %280 = vector.extract_strided_slice %279 {offsets = [0, 0], sizes = [2, 16], strides = [1, 1]} : vector<2x64xf32> to vector<2x16xf32>
    %281 = arith.negf %280 : vector<2x16xf32>
    %282 = math.exp %281 : vector<2x16xf32>
    %cst_60 = arith.constant 1.000000e+00 : f32
    %283 = vector.broadcast %cst_60 : f32 to vector<2x16xf32>
    %284 = arith.addf %283, %282 : vector<2x16xf32>
    %285 = arith.divf %283, %284 : vector<2x16xf32>
    %286 = vector.extract_strided_slice %279 {offsets = [0, 16], sizes = [2, 16], strides = [1, 1]} : vector<2x64xf32> to vector<2x16xf32>
    %287 = arith.negf %286 : vector<2x16xf32>
    %288 = math.exp %287 : vector<2x16xf32>
    %cst_61 = arith.constant 1.000000e+00 : f32
    %289 = vector.broadcast %cst_61 : f32 to vector<2x16xf32>
    %290 = arith.addf %289, %288 : vector<2x16xf32>
    %291 = arith.divf %289, %290 : vector<2x16xf32>
    %292 = vector.extract_strided_slice %279 {offsets = [0, 32], sizes = [2, 16], strides = [1, 1]} : vector<2x64xf32> to vector<2x16xf32>
    %293 = math.tanh %292 : vector<2x16xf32>
    %294 = vector.extract_strided_slice %279 {offsets = [0, 48], sizes = [2, 16], strides = [1, 1]} : vector<2x64xf32> to vector<2x16xf32>
    %295 = arith.negf %294 : vector<2x16xf32>
    %296 = math.exp %295 : vector<2x16xf32>
    %cst_62 = arith.constant 1.000000e+00 : f32
    %297 = vector.broadcast %cst_62 : f32 to vector<2x16xf32>
    %298 = arith.addf %297, %296 : vector<2x16xf32>
    %299 = arith.divf %297, %298 : vector<2x16xf32>
    %300 = arith.mulf %291, %268 : vector<2x16xf32>
    %301 = arith.mulf %285, %293 : vector<2x16xf32>
    %302 = arith.addf %300, %301 : vector<2x16xf32>
    %303 = math.tanh %302 : vector<2x16xf32>
    %304 = arith.mulf %299, %303 : vector<2x16xf32>
    %305 = vector.broadcast %275 : vector<2x1xf32> to vector<2x16xf32>
    %306 = arith.mulf %305, %304 : vector<2x16xf32>
    %cst_63 = arith.constant 1.000000e+00 : f32
    %307 = vector.broadcast %cst_63 : f32 to vector<2x1xf32>
    %308 = arith.subf %307, %275 : vector<2x1xf32>
    %309 = vector.broadcast %308 : vector<2x1xf32> to vector<2x16xf32>
    %310 = arith.mulf %309, %261 : vector<2x16xf32>
    %311 = arith.addf %306, %310 : vector<2x16xf32>
    %312 = vector.broadcast %275 : vector<2x1xf32> to vector<2x16xf32>
    %313 = arith.mulf %312, %302 : vector<2x16xf32>
    %cst_64 = arith.constant 1.000000e+00 : f32
    %314 = vector.broadcast %cst_64 : f32 to vector<2x1xf32>
    %315 = arith.subf %314, %275 : vector<2x1xf32>
    %316 = vector.broadcast %315 : vector<2x1xf32> to vector<2x16xf32>
    %317 = arith.mulf %316, %268 : vector<2x16xf32>
    %318 = arith.addf %313, %317 : vector<2x16xf32>
    %319 = vector.broadcast %275 : vector<2x1xf32> to vector<2x16xf32>
    %320 = arith.mulf %319, %304 : vector<2x16xf32>
    %c5 = arith.constant 5 : index
    %c0_65 = arith.constant 0 : index
    %c0_66 = arith.constant 0 : index
    %321 = vector.load %arg17[%c5, %c0_65, %c0_66] : memref<8x2x16xf32, #tpu.memory_space<vmem>>, vector<1x2x16xf32>
    %322 = vector.shape_cast %321 : vector<1x2x16xf32> to vector<2x16xf32>
    %323 = vector.shape_cast %320 : vector<2x16xf32> to vector<1x2x16xf32>
    tpu.vector_store %arg17[%c5, %c0_65, %c0_66], %323 {strides = array<i32>} : memref<8x2x16xf32, #tpu.memory_space<vmem>>, vector<1x2x16xf32>,
    %324 = vector.extract_strided_slice %19 {offsets = [6, 0, 0], sizes = [1, 2, 1], strides = [1, 1, 1]} : vector<8x2x1xf32> to vector<1x2x1xf32>
    %325 = vector.shape_cast %324 : vector<1x2x1xf32> to vector<2x1xf32>
    %326 = vector.extract_strided_slice %18 {offsets = [0, 6, 0], sizes = [2, 1, 64], strides = [1, 1, 1]} : vector<2x8x128xf32> to vector<2x1x64xf32>
    %327 = vector.shape_cast %326 : vector<2x1x64xf32> to vector<2x64xf32>
    %cst_67 = arith.constant dense<0.000000e+00> : vector<2x64xf32>
    %328 = tpu.matmul %311, %20, %cst_67 {dimension_numbers = #tpu.dot_dimension_numbers<[1], [0], [0], [1], [0, 0, 1, 1], [], []>} : vector<2x16xf32>, vector<16x64xf32>, vector<2x64xf32> -> vector<2x64xf32>
    %329 = arith.addf %327, %328 : vector<2x64xf32>
    %330 = vector.extract_strided_slice %329 {offsets = [0, 0], sizes = [2, 16], strides = [1, 1]} : vector<2x64xf32> to vector<2x16xf32>
    %331 = arith.negf %330 : vector<2x16xf32>
    %332 = math.exp %331 : vector<2x16xf32>
    %cst_68 = arith.constant 1.000000e+00 : f32
    %333 = vector.broadcast %cst_68 : f32 to vector<2x16xf32>
    %334 = arith.addf %333, %332 : vector<2x16xf32>
    %335 = arith.divf %333, %334 : vector<2x16xf32>
    %336 = vector.extract_strided_slice %329 {offsets = [0, 16], sizes = [2, 16], strides = [1, 1]} : vector<2x64xf32> to vector<2x16xf32>
    %337 = arith.negf %336 : vector<2x16xf32>
    %338 = math.exp %337 : vector<2x16xf32>
    %cst_69 = arith.constant 1.000000e+00 : f32
    %339 = vector.broadcast %cst_69 : f32 to vector<2x16xf32>
    %340 = arith.addf %339, %338 : vector<2x16xf32>
    %341 = arith.divf %339, %340 : vector<2x16xf32>
    %342 = vector.extract_strided_slice %329 {offsets = [0, 32], sizes = [2, 16], strides = [1, 1]} : vector<2x64xf32> to vector<2x16xf32>
    %343 = math.tanh %342 : vector<2x16xf32>
    %344 = vector.extract_strided_slice %329 {offsets = [0, 48], sizes = [2, 16], strides = [1, 1]} : vector<2x64xf32> to vector<2x16xf32>
    %345 = arith.negf %344 : vector<2x16xf32>
    %346 = math.exp %345 : vector<2x16xf32>
    %cst_70 = arith.constant 1.000000e+00 : f32
    %347 = vector.broadcast %cst_70 : f32 to vector<2x16xf32>
    %348 = arith.addf %347, %346 : vector<2x16xf32>
    %349 = arith.divf %347, %348 : vector<2x16xf32>
    %350 = arith.mulf %341, %318 : vector<2x16xf32>
    %351 = arith.mulf %335, %343 : vector<2x16xf32>
    %352 = arith.addf %350, %351 : vector<2x16xf32>
    %353 = math.tanh %352 : vector<2x16xf32>
    %354 = arith.mulf %349, %353 : vector<2x16xf32>
    %355 = vector.broadcast %325 : vector<2x1xf32> to vector<2x16xf32>
    %356 = arith.mulf %355, %354 : vector<2x16xf32>
    %cst_71 = arith.constant 1.000000e+00 : f32
    %357 = vector.broadcast %cst_71 : f32 to vector<2x1xf32>
    %358 = arith.subf %357, %325 : vector<2x1xf32>
    %359 = vector.broadcast %358 : vector<2x1xf32> to vector<2x16xf32>
    %360 = arith.mulf %359, %311 : vector<2x16xf32>
    %361 = arith.addf %356, %360 : vector<2x16xf32>
    %362 = vector.broadcast %325 : vector<2x1xf32> to vector<2x16xf32>
    %363 = arith.mulf %362, %352 : vector<2x16xf32>
    %cst_72 = arith.constant 1.000000e+00 : f32
    %364 = vector.broadcast %cst_72 : f32 to vector<2x1xf32>
    %365 = arith.subf %364, %325 : vector<2x1xf32>
    %366 = vector.broadcast %365 : vector<2x1xf32> to vector<2x16xf32>
    %367 = arith.mulf %366, %318 : vector<2x16xf32>
    %368 = arith.addf %363, %367 : vector<2x16xf32>
    %369 = vector.broadcast %325 : vector<2x1xf32> to vector<2x16xf32>
    %370 = arith.mulf %369, %354 : vector<2x16xf32>
    %c6 = arith.constant 6 : index
    %c0_73 = arith.constant 0 : index
    %c0_74 = arith.constant 0 : index
    %371 = vector.load %arg17[%c6, %c0_73, %c0_74] : memref<8x2x16xf32, #tpu.memory_space<vmem>>, vector<1x2x16xf32>
    %372 = vector.shape_cast %371 : vector<1x2x16xf32> to vector<2x16xf32>
    %373 = vector.shape_cast %370 : vector<2x16xf32> to vector<1x2x16xf32>
    tpu.vector_store %arg17[%c6, %c0_73, %c0_74], %373 {strides = array<i32>} : memref<8x2x16xf32, #tpu.memory_space<vmem>>, vector<1x2x16xf32>,
    %374 = vector.extract_strided_slice %19 {offsets = [7, 0, 0], sizes = [1, 2, 1], strides = [1, 1, 1]} : vector<8x2x1xf32> to vector<1x2x1xf32>
    %375 = vector.shape_cast %374 : vector<1x2x1xf32> to vector<2x1xf32>
    %376 = vector.extract_strided_slice %18 {offsets = [0, 7, 0], sizes = [2, 1, 64], strides = [1, 1, 1]} : vector<2x8x128xf32> to vector<2x1x64xf32>
    %377 = vector.shape_cast %376 : vector<2x1x64xf32> to vector<2x64xf32>
    %cst_75 = arith.constant dense<0.000000e+00> : vector<2x64xf32>
    %378 = tpu.matmul %361, %20, %cst_75 {dimension_numbers = #tpu.dot_dimension_numbers<[1], [0], [0], [1], [0, 0, 1, 1], [], []>} : vector<2x16xf32>, vector<16x64xf32>, vector<2x64xf32> -> vector<2x64xf32>
    %379 = arith.addf %377, %378 : vector<2x64xf32>
    %380 = vector.extract_strided_slice %379 {offsets = [0, 0], sizes = [2, 16], strides = [1, 1]} : vector<2x64xf32> to vector<2x16xf32>
    %381 = arith.negf %380 : vector<2x16xf32>
    %382 = math.exp %381 : vector<2x16xf32>
    %cst_76 = arith.constant 1.000000e+00 : f32
    %383 = vector.broadcast %cst_76 : f32 to vector<2x16xf32>
    %384 = arith.addf %383, %382 : vector<2x16xf32>
    %385 = arith.divf %383, %384 : vector<2x16xf32>
    %386 = vector.extract_strided_slice %379 {offsets = [0, 16], sizes = [2, 16], strides = [1, 1]} : vector<2x64xf32> to vector<2x16xf32>
    %387 = arith.negf %386 : vector<2x16xf32>
    %388 = math.exp %387 : vector<2x16xf32>
    %cst_77 = arith.constant 1.000000e+00 : f32
    %389 = vector.broadcast %cst_77 : f32 to vector<2x16xf32>
    %390 = arith.addf %389, %388 : vector<2x16xf32>
    %391 = arith.divf %389, %390 : vector<2x16xf32>
    %392 = vector.extract_strided_slice %379 {offsets = [0, 32], sizes = [2, 16], strides = [1, 1]} : vector<2x64xf32> to vector<2x16xf32>
    %393 = math.tanh %392 : vector<2x16xf32>
    %394 = vector.extract_strided_slice %379 {offsets = [0, 48], sizes = [2, 16], strides = [1, 1]} : vector<2x64xf32> to vector<2x16xf32>
    %395 = arith.negf %394 : vector<2x16xf32>
    %396 = math.exp %395 : vector<2x16xf32>
    %cst_78 = arith.constant 1.000000e+00 : f32
    %397 = vector.broadcast %cst_78 : f32 to vector<2x16xf32>
    %398 = arith.addf %397, %396 : vector<2x16xf32>
    %399 = arith.divf %397, %398 : vector<2x16xf32>
    %400 = arith.mulf %391, %368 : vector<2x16xf32>
    %401 = arith.mulf %385, %393 : vector<2x16xf32>
    %402 = arith.addf %400, %401 : vector<2x16xf32>
    %403 = math.tanh %402 : vector<2x16xf32>
    %404 = arith.mulf %399, %403 : vector<2x16xf32>
    %405 = vector.broadcast %375 : vector<2x1xf32> to vector<2x16xf32>
    %406 = arith.mulf %405, %404 : vector<2x16xf32>
    %c7 = arith.constant 7 : index
    %c0_79 = arith.constant 0 : index
    %c0_80 = arith.constant 0 : index
    %407 = vector.load %arg17[%c7, %c0_79, %c0_80] : memref<8x2x16xf32, #tpu.memory_space<vmem>>, vector<1x2x16xf32>
    %408 = vector.shape_cast %407 : vector<1x2x16xf32> to vector<2x16xf32>
    %409 = vector.shape_cast %406 : vector<2x16xf32> to vector<1x2x16xf32>
    tpu.vector_store %arg17[%c7, %c0_79, %c0_80], %409 {strides = array<i32>} : memref<8x2x16xf32, #tpu.memory_space<vmem>>, vector<1x2x16xf32>,
    %c0_81 = arith.constant 0 : index
    %c0_82 = arith.constant 0 : index
    %410 = vector.load %arg9[%c0_81, %c0_82] : memref<2x16xf32, #tpu.memory_space<vmem>>, vector<2x16xf32>
    %c0_83 = arith.constant 0 : index
    %c0_84 = arith.constant 0 : index
    %411 = vector.load %arg10[%c0_83, %c0_84] : memref<2x16xf32, #tpu.memory_space<vmem>>, vector<2x16xf32>
    %412 = vector.extract_strided_slice %19 {offsets = [7, 0, 0], sizes = [1, 2, 1], strides = [1, 1, 1]} : vector<8x2x1xf32> to vector<1x2x1xf32>
    %413 = vector.shape_cast %412 : vector<1x2x1xf32> to vector<2x1xf32>
    %414 = vector.extract_strided_slice %18 {offsets = [0, 7, 64], sizes = [2, 1, 64], strides = [1, 1, 1]} : vector<2x8x128xf32> to vector<2x1x64xf32>
    %415 = vector.shape_cast %414 : vector<2x1x64xf32> to vector<2x64xf32>
    %cst_85 = arith.constant dense<0.000000e+00> : vector<2x64xf32>
    %416 = tpu.matmul %410, %21, %cst_85 {dimension_numbers = #tpu.dot_dimension_numbers<[1], [0], [0], [1], [0, 0, 1, 1], [], []>} : vector<2x16xf32>, vector<16x64xf32>, vector<2x64xf32> -> vector<2x64xf32>
    %417 = arith.addf %415, %416 : vector<2x64xf32>
    %418 = vector.extract_strided_slice %417 {offsets = [0, 0], sizes = [2, 16], strides = [1, 1]} : vector<2x64xf32> to vector<2x16xf32>
    %419 = arith.negf %418 : vector<2x16xf32>
    %420 = math.exp %419 : vector<2x16xf32>
    %cst_86 = arith.constant 1.000000e+00 : f32
    %421 = vector.broadcast %cst_86 : f32 to vector<2x16xf32>
    %422 = arith.addf %421, %420 : vector<2x16xf32>
    %423 = arith.divf %421, %422 : vector<2x16xf32>
    %424 = vector.extract_strided_slice %417 {offsets = [0, 16], sizes = [2, 16], strides = [1, 1]} : vector<2x64xf32> to vector<2x16xf32>
    %425 = arith.negf %424 : vector<2x16xf32>
    %426 = math.exp %425 : vector<2x16xf32>
    %cst_87 = arith.constant 1.000000e+00 : f32
    %427 = vector.broadcast %cst_87 : f32 to vector<2x16xf32>
    %428 = arith.addf %427, %426 : vector<2x16xf32>
    %429 = arith.divf %427, %428 : vector<2x16xf32>
    %430 = vector.extract_strided_slice %417 {offsets = [0, 32], sizes = [2, 16], strides = [1, 1]} : vector<2x64xf32> to vector<2x16xf32>
    %431 = math.tanh %430 : vector<2x16xf32>
    %432 = vector.extract_strided_slice %417 {offsets = [0, 48], sizes = [2, 16], strides = [1, 1]} : vector<2x64xf32> to vector<2x16xf32>
    %433 = arith.negf %432 : vector<2x16xf32>
    %434 = math.exp %433 : vector<2x16xf32>
    %cst_88 = arith.constant 1.000000e+00 : f32
    %435 = vector.broadcast %cst_88 : f32 to vector<2x16xf32>
    %436 = arith.addf %435, %434 : vector<2x16xf32>
    %437 = arith.divf %435, %436 : vector<2x16xf32>
    %438 = arith.mulf %429, %411 : vector<2x16xf32>
    %439 = arith.mulf %423, %431 : vector<2x16xf32>
    %440 = arith.addf %438, %439 : vector<2x16xf32>
    %441 = math.tanh %440 : vector<2x16xf32>
    %442 = arith.mulf %437, %441 : vector<2x16xf32>
    %443 = vector.broadcast %413 : vector<2x1xf32> to vector<2x16xf32>
    %444 = arith.mulf %443, %442 : vector<2x16xf32>
    %cst_89 = arith.constant 1.000000e+00 : f32
    %445 = vector.broadcast %cst_89 : f32 to vector<2x1xf32>
    %446 = arith.subf %445, %413 : vector<2x1xf32>
    %447 = vector.broadcast %446 : vector<2x1xf32> to vector<2x16xf32>
    %448 = arith.mulf %447, %410 : vector<2x16xf32>
    %449 = arith.addf %444, %448 : vector<2x16xf32>
    %450 = vector.broadcast %413 : vector<2x1xf32> to vector<2x16xf32>
    %451 = arith.mulf %450, %440 : vector<2x16xf32>
    %cst_90 = arith.constant 1.000000e+00 : f32
    %452 = vector.broadcast %cst_90 : f32 to vector<2x1xf32>
    %453 = arith.subf %452, %413 : vector<2x1xf32>
    %454 = vector.broadcast %453 : vector<2x1xf32> to vector<2x16xf32>
    %455 = arith.mulf %454, %411 : vector<2x16xf32>
    %456 = arith.addf %451, %455 : vector<2x16xf32>
    %457 = vector.broadcast %413 : vector<2x1xf32> to vector<2x16xf32>
    %458 = arith.mulf %457, %442 : vector<2x16xf32>
    %c7_91 = arith.constant 7 : index
    %c0_92 = arith.constant 0 : index
    %c0_93 = arith.constant 0 : index
    %459 = vector.load %arg18[%c7_91, %c0_92, %c0_93] : memref<8x2x16xf32, #tpu.memory_space<vmem>>, vector<1x2x16xf32>
    %460 = vector.shape_cast %459 : vector<1x2x16xf32> to vector<2x16xf32>
    %461 = vector.shape_cast %458 : vector<2x16xf32> to vector<1x2x16xf32>
    tpu.vector_store %arg18[%c7_91, %c0_92, %c0_93], %461 {strides = array<i32>} : memref<8x2x16xf32, #tpu.memory_space<vmem>>, vector<1x2x16xf32>,
    %462 = vector.extract_strided_slice %19 {offsets = [6, 0, 0], sizes = [1, 2, 1], strides = [1, 1, 1]} : vector<8x2x1xf32> to vector<1x2x1xf32>
    %463 = vector.shape_cast %462 : vector<1x2x1xf32> to vector<2x1xf32>
    %464 = vector.extract_strided_slice %18 {offsets = [0, 6, 64], sizes = [2, 1, 64], strides = [1, 1, 1]} : vector<2x8x128xf32> to vector<2x1x64xf32>
    %465 = vector.shape_cast %464 : vector<2x1x64xf32> to vector<2x64xf32>
    %cst_94 = arith.constant dense<0.000000e+00> : vector<2x64xf32>
    %466 = tpu.matmul %449, %21, %cst_94 {dimension_numbers = #tpu.dot_dimension_numbers<[1], [0], [0], [1], [0, 0, 1, 1], [], []>} : vector<2x16xf32>, vector<16x64xf32>, vector<2x64xf32> -> vector<2x64xf32>
    %467 = arith.addf %465, %466 : vector<2x64xf32>
    %468 = vector.extract_strided_slice %467 {offsets = [0, 0], sizes = [2, 16], strides = [1, 1]} : vector<2x64xf32> to vector<2x16xf32>
    %469 = arith.negf %468 : vector<2x16xf32>
    %470 = math.exp %469 : vector<2x16xf32>
    %cst_95 = arith.constant 1.000000e+00 : f32
    %471 = vector.broadcast %cst_95 : f32 to vector<2x16xf32>
    %472 = arith.addf %471, %470 : vector<2x16xf32>
    %473 = arith.divf %471, %472 : vector<2x16xf32>
    %474 = vector.extract_strided_slice %467 {offsets = [0, 16], sizes = [2, 16], strides = [1, 1]} : vector<2x64xf32> to vector<2x16xf32>
    %475 = arith.negf %474 : vector<2x16xf32>
    %476 = math.exp %475 : vector<2x16xf32>
    %cst_96 = arith.constant 1.000000e+00 : f32
    %477 = vector.broadcast %cst_96 : f32 to vector<2x16xf32>
    %478 = arith.addf %477, %476 : vector<2x16xf32>
    %479 = arith.divf %477, %478 : vector<2x16xf32>
    %480 = vector.extract_strided_slice %467 {offsets = [0, 32], sizes = [2, 16], strides = [1, 1]} : vector<2x64xf32> to vector<2x16xf32>
    %481 = math.tanh %480 : vector<2x16xf32>
    %482 = vector.extract_strided_slice %467 {offsets = [0, 48], sizes = [2, 16], strides = [1, 1]} : vector<2x64xf32> to vector<2x16xf32>
    %483 = arith.negf %482 : vector<2x16xf32>
    %484 = math.exp %483 : vector<2x16xf32>
    %cst_97 = arith.constant 1.000000e+00 : f32
    %485 = vector.broadcast %cst_97 : f32 to vector<2x16xf32>
    %486 = arith.addf %485, %484 : vector<2x16xf32>
    %487 = arith.divf %485, %486 : vector<2x16xf32>
    %488 = arith.mulf %479, %456 : vector<2x16xf32>
    %489 = arith.mulf %473, %481 : vector<2x16xf32>
    %490 = arith.addf %488, %489 : vector<2x16xf32>
    %491 = math.tanh %490 : vector<2x16xf32>
    %492 = arith.mulf %487, %491 : vector<2x16xf32>
    %493 = vector.broadcast %463 : vector<2x1xf32> to vector<2x16xf32>
    %494 = arith.mulf %493, %492 : vector<2x16xf32>
    %cst_98 = arith.constant 1.000000e+00 : f32
    %495 = vector.broadcast %cst_98 : f32 to vector<2x1xf32>
    %496 = arith.subf %495, %463 : vector<2x1xf32>
    %497 = vector.broadcast %496 : vector<2x1xf32> to vector<2x16xf32>
    %498 = arith.mulf %497, %449 : vector<2x16xf32>
    %499 = arith.addf %494, %498 : vector<2x16xf32>
    %500 = vector.broadcast %463 : vector<2x1xf32> to vector<2x16xf32>
    %501 = arith.mulf %500, %490 : vector<2x16xf32>
    %cst_99 = arith.constant 1.000000e+00 : f32
    %502 = vector.broadcast %cst_99 : f32 to vector<2x1xf32>
    %503 = arith.subf %502, %463 : vector<2x1xf32>
    %504 = vector.broadcast %503 : vector<2x1xf32> to vector<2x16xf32>
    %505 = arith.mulf %504, %456 : vector<2x16xf32>
    %506 = arith.addf %501, %505 : vector<2x16xf32>
    %507 = vector.broadcast %463 : vector<2x1xf32> to vector<2x16xf32>
    %508 = arith.mulf %507, %492 : vector<2x16xf32>
    %c6_100 = arith.constant 6 : index
    %c0_101 = arith.constant 0 : index
    %c0_102 = arith.constant 0 : index
    %509 = vector.load %arg18[%c6_100, %c0_101, %c0_102] : memref<8x2x16xf32, #tpu.memory_space<vmem>>, vector<1x2x16xf32>
    %510 = vector.shape_cast %509 : vector<1x2x16xf32> to vector<2x16xf32>
    %511 = vector.shape_cast %508 : vector<2x16xf32> to vector<1x2x16xf32>
    tpu.vector_store %arg18[%c6_100, %c0_101, %c0_102], %511 {strides = array<i32>} : memref<8x2x16xf32, #tpu.memory_space<vmem>>, vector<1x2x16xf32>,
    %512 = vector.extract_strided_slice %19 {offsets = [5, 0, 0], sizes = [1, 2, 1], strides = [1, 1, 1]} : vector<8x2x1xf32> to vector<1x2x1xf32>
    %513 = vector.shape_cast %512 : vector<1x2x1xf32> to vector<2x1xf32>
    %514 = vector.extract_strided_slice %18 {offsets = [0, 5, 64], sizes = [2, 1, 64], strides = [1, 1, 1]} : vector<2x8x128xf32> to vector<2x1x64xf32>
    %515 = vector.shape_cast %514 : vector<2x1x64xf32> to vector<2x64xf32>
    %cst_103 = arith.constant dense<0.000000e+00> : vector<2x64xf32>
    %516 = tpu.matmul %499, %21, %cst_103 {dimension_numbers = #tpu.dot_dimension_numbers<[1], [0], [0], [1], [0, 0, 1, 1], [], []>} : vector<2x16xf32>, vector<16x64xf32>, vector<2x64xf32> -> vector<2x64xf32>
    %517 = arith.addf %515, %516 : vector<2x64xf32>
    %518 = vector.extract_strided_slice %517 {offsets = [0, 0], sizes = [2, 16], strides = [1, 1]} : vector<2x64xf32> to vector<2x16xf32>
    %519 = arith.negf %518 : vector<2x16xf32>
    %520 = math.exp %519 : vector<2x16xf32>
    %cst_104 = arith.constant 1.000000e+00 : f32
    %521 = vector.broadcast %cst_104 : f32 to vector<2x16xf32>
    %522 = arith.addf %521, %520 : vector<2x16xf32>
    %523 = arith.divf %521, %522 : vector<2x16xf32>
    %524 = vector.extract_strided_slice %517 {offsets = [0, 16], sizes = [2, 16], strides = [1, 1]} : vector<2x64xf32> to vector<2x16xf32>
    %525 = arith.negf %524 : vector<2x16xf32>
    %526 = math.exp %525 : vector<2x16xf32>
    %cst_105 = arith.constant 1.000000e+00 : f32
    %527 = vector.broadcast %cst_105 : f32 to vector<2x16xf32>
    %528 = arith.addf %527, %526 : vector<2x16xf32>
    %529 = arith.divf %527, %528 : vector<2x16xf32>
    %530 = vector.extract_strided_slice %517 {offsets = [0, 32], sizes = [2, 16], strides = [1, 1]} : vector<2x64xf32> to vector<2x16xf32>
    %531 = math.tanh %530 : vector<2x16xf32>
    %532 = vector.extract_strided_slice %517 {offsets = [0, 48], sizes = [2, 16], strides = [1, 1]} : vector<2x64xf32> to vector<2x16xf32>
    %533 = arith.negf %532 : vector<2x16xf32>
    %534 = math.exp %533 : vector<2x16xf32>
    %cst_106 = arith.constant 1.000000e+00 : f32
    %535 = vector.broadcast %cst_106 : f32 to vector<2x16xf32>
    %536 = arith.addf %535, %534 : vector<2x16xf32>
    %537 = arith.divf %535, %536 : vector<2x16xf32>
    %538 = arith.mulf %529, %506 : vector<2x16xf32>
    %539 = arith.mulf %523, %531 : vector<2x16xf32>
    %540 = arith.addf %538, %539 : vector<2x16xf32>
    %541 = math.tanh %540 : vector<2x16xf32>
    %542 = arith.mulf %537, %541 : vector<2x16xf32>
    %543 = vector.broadcast %513 : vector<2x1xf32> to vector<2x16xf32>
    %544 = arith.mulf %543, %542 : vector<2x16xf32>
    %cst_107 = arith.constant 1.000000e+00 : f32
    %545 = vector.broadcast %cst_107 : f32 to vector<2x1xf32>
    %546 = arith.subf %545, %513 : vector<2x1xf32>
    %547 = vector.broadcast %546 : vector<2x1xf32> to vector<2x16xf32>
    %548 = arith.mulf %547, %499 : vector<2x16xf32>
    %549 = arith.addf %544, %548 : vector<2x16xf32>
    %550 = vector.broadcast %513 : vector<2x1xf32> to vector<2x16xf32>
    %551 = arith.mulf %550, %540 : vector<2x16xf32>
    %cst_108 = arith.constant 1.000000e+00 : f32
    %552 = vector.broadcast %cst_108 : f32 to vector<2x1xf32>
    %553 = arith.subf %552, %513 : vector<2x1xf32>
    %554 = vector.broadcast %553 : vector<2x1xf32> to vector<2x16xf32>
    %555 = arith.mulf %554, %506 : vector<2x16xf32>
    %556 = arith.addf %551, %555 : vector<2x16xf32>
    %557 = vector.broadcast %513 : vector<2x1xf32> to vector<2x16xf32>
    %558 = arith.mulf %557, %542 : vector<2x16xf32>
    %c5_109 = arith.constant 5 : index
    %c0_110 = arith.constant 0 : index
    %c0_111 = arith.constant 0 : index
    %559 = vector.load %arg18[%c5_109, %c0_110, %c0_111] : memref<8x2x16xf32, #tpu.memory_space<vmem>>, vector<1x2x16xf32>
    %560 = vector.shape_cast %559 : vector<1x2x16xf32> to vector<2x16xf32>
    %561 = vector.shape_cast %558 : vector<2x16xf32> to vector<1x2x16xf32>
    tpu.vector_store %arg18[%c5_109, %c0_110, %c0_111], %561 {strides = array<i32>} : memref<8x2x16xf32, #tpu.memory_space<vmem>>, vector<1x2x16xf32>,
    %562 = vector.extract_strided_slice %19 {offsets = [4, 0, 0], sizes = [1, 2, 1], strides = [1, 1, 1]} : vector<8x2x1xf32> to vector<1x2x1xf32>
    %563 = vector.shape_cast %562 : vector<1x2x1xf32> to vector<2x1xf32>
    %564 = vector.extract_strided_slice %18 {offsets = [0, 4, 64], sizes = [2, 1, 64], strides = [1, 1, 1]} : vector<2x8x128xf32> to vector<2x1x64xf32>
    %565 = vector.shape_cast %564 : vector<2x1x64xf32> to vector<2x64xf32>
    %cst_112 = arith.constant dense<0.000000e+00> : vector<2x64xf32>
    %566 = tpu.matmul %549, %21, %cst_112 {dimension_numbers = #tpu.dot_dimension_numbers<[1], [0], [0], [1], [0, 0, 1, 1], [], []>} : vector<2x16xf32>, vector<16x64xf32>, vector<2x64xf32> -> vector<2x64xf32>
    %567 = arith.addf %565, %566 : vector<2x64xf32>
    %568 = vector.extract_strided_slice %567 {offsets = [0, 0], sizes = [2, 16], strides = [1, 1]} : vector<2x64xf32> to vector<2x16xf32>
    %569 = arith.negf %568 : vector<2x16xf32>
    %570 = math.exp %569 : vector<2x16xf32>
    %cst_113 = arith.constant 1.000000e+00 : f32
    %571 = vector.broadcast %cst_113 : f32 to vector<2x16xf32>
    %572 = arith.addf %571, %570 : vector<2x16xf32>
    %573 = arith.divf %571, %572 : vector<2x16xf32>
    %574 = vector.extract_strided_slice %567 {offsets = [0, 16], sizes = [2, 16], strides = [1, 1]} : vector<2x64xf32> to vector<2x16xf32>
    %575 = arith.negf %574 : vector<2x16xf32>
    %576 = math.exp %575 : vector<2x16xf32>
    %cst_114 = arith.constant 1.000000e+00 : f32
    %577 = vector.broadcast %cst_114 : f32 to vector<2x16xf32>
    %578 = arith.addf %577, %576 : vector<2x16xf32>
    %579 = arith.divf %577, %578 : vector<2x16xf32>
    %580 = vector.extract_strided_slice %567 {offsets = [0, 32], sizes = [2, 16], strides = [1, 1]} : vector<2x64xf32> to vector<2x16xf32>
    %581 = math.tanh %580 : vector<2x16xf32>
    %582 = vector.extract_strided_slice %567 {offsets = [0, 48], sizes = [2, 16], strides = [1, 1]} : vector<2x64xf32> to vector<2x16xf32>
    %583 = arith.negf %582 : vector<2x16xf32>
    %584 = math.exp %583 : vector<2x16xf32>
    %cst_115 = arith.constant 1.000000e+00 : f32
    %585 = vector.broadcast %cst_115 : f32 to vector<2x16xf32>
    %586 = arith.addf %585, %584 : vector<2x16xf32>
    %587 = arith.divf %585, %586 : vector<2x16xf32>
    %588 = arith.mulf %579, %556 : vector<2x16xf32>
    %589 = arith.mulf %573, %581 : vector<2x16xf32>
    %590 = arith.addf %588, %589 : vector<2x16xf32>
    %591 = math.tanh %590 : vector<2x16xf32>
    %592 = arith.mulf %587, %591 : vector<2x16xf32>
    %593 = vector.broadcast %563 : vector<2x1xf32> to vector<2x16xf32>
    %594 = arith.mulf %593, %592 : vector<2x16xf32>
    %cst_116 = arith.constant 1.000000e+00 : f32
    %595 = vector.broadcast %cst_116 : f32 to vector<2x1xf32>
    %596 = arith.subf %595, %563 : vector<2x1xf32>
    %597 = vector.broadcast %596 : vector<2x1xf32> to vector<2x16xf32>
    %598 = arith.mulf %597, %549 : vector<2x16xf32>
    %599 = arith.addf %594, %598 : vector<2x16xf32>
    %600 = vector.broadcast %563 : vector<2x1xf32> to vector<2x16xf32>
    %601 = arith.mulf %600, %590 : vector<2x16xf32>
    %cst_117 = arith.constant 1.000000e+00 : f32
    %602 = vector.broadcast %cst_117 : f32 to vector<2x1xf32>
    %603 = arith.subf %602, %563 : vector<2x1xf32>
    %604 = vector.broadcast %603 : vector<2x1xf32> to vector<2x16xf32>
    %605 = arith.mulf %604, %556 : vector<2x16xf32>
    %606 = arith.addf %601, %605 : vector<2x16xf32>
    %607 = vector.broadcast %563 : vector<2x1xf32> to vector<2x16xf32>
    %608 = arith.mulf %607, %592 : vector<2x16xf32>
    %c4_118 = arith.constant 4 : index
    %c0_119 = arith.constant 0 : index
    %c0_120 = arith.constant 0 : index
    %609 = vector.load %arg18[%c4_118, %c0_119, %c0_120] : memref<8x2x16xf32, #tpu.memory_space<vmem>>, vector<1x2x16xf32>
    %610 = vector.shape_cast %609 : vector<1x2x16xf32> to vector<2x16xf32>
    %611 = vector.shape_cast %608 : vector<2x16xf32> to vector<1x2x16xf32>
    tpu.vector_store %arg18[%c4_118, %c0_119, %c0_120], %611 {strides = array<i32>} : memref<8x2x16xf32, #tpu.memory_space<vmem>>, vector<1x2x16xf32>,
    %612 = vector.extract_strided_slice %19 {offsets = [3, 0, 0], sizes = [1, 2, 1], strides = [1, 1, 1]} : vector<8x2x1xf32> to vector<1x2x1xf32>
    %613 = vector.shape_cast %612 : vector<1x2x1xf32> to vector<2x1xf32>
    %614 = vector.extract_strided_slice %18 {offsets = [0, 3, 64], sizes = [2, 1, 64], strides = [1, 1, 1]} : vector<2x8x128xf32> to vector<2x1x64xf32>
    %615 = vector.shape_cast %614 : vector<2x1x64xf32> to vector<2x64xf32>
    %cst_121 = arith.constant dense<0.000000e+00> : vector<2x64xf32>
    %616 = tpu.matmul %599, %21, %cst_121 {dimension_numbers = #tpu.dot_dimension_numbers<[1], [0], [0], [1], [0, 0, 1, 1], [], []>} : vector<2x16xf32>, vector<16x64xf32>, vector<2x64xf32> -> vector<2x64xf32>
    %617 = arith.addf %615, %616 : vector<2x64xf32>
    %618 = vector.extract_strided_slice %617 {offsets = [0, 0], sizes = [2, 16], strides = [1, 1]} : vector<2x64xf32> to vector<2x16xf32>
    %619 = arith.negf %618 : vector<2x16xf32>
    %620 = math.exp %619 : vector<2x16xf32>
    %cst_122 = arith.constant 1.000000e+00 : f32
    %621 = vector.broadcast %cst_122 : f32 to vector<2x16xf32>
    %622 = arith.addf %621, %620 : vector<2x16xf32>
    %623 = arith.divf %621, %622 : vector<2x16xf32>
    %624 = vector.extract_strided_slice %617 {offsets = [0, 16], sizes = [2, 16], strides = [1, 1]} : vector<2x64xf32> to vector<2x16xf32>
    %625 = arith.negf %624 : vector<2x16xf32>
    %626 = math.exp %625 : vector<2x16xf32>
    %cst_123 = arith.constant 1.000000e+00 : f32
    %627 = vector.broadcast %cst_123 : f32 to vector<2x16xf32>
    %628 = arith.addf %627, %626 : vector<2x16xf32>
    %629 = arith.divf %627, %628 : vector<2x16xf32>
    %630 = vector.extract_strided_slice %617 {offsets = [0, 32], sizes = [2, 16], strides = [1, 1]} : vector<2x64xf32> to vector<2x16xf32>
    %631 = math.tanh %630 : vector<2x16xf32>
    %632 = vector.extract_strided_slice %617 {offsets = [0, 48], sizes = [2, 16], strides = [1, 1]} : vector<2x64xf32> to vector<2x16xf32>
    %633 = arith.negf %632 : vector<2x16xf32>
    %634 = math.exp %633 : vector<2x16xf32>
    %cst_124 = arith.constant 1.000000e+00 : f32
    %635 = vector.broadcast %cst_124 : f32 to vector<2x16xf32>
    %636 = arith.addf %635, %634 : vector<2x16xf32>
    %637 = arith.divf %635, %636 : vector<2x16xf32>
    %638 = arith.mulf %629, %606 : vector<2x16xf32>
    %639 = arith.mulf %623, %631 : vector<2x16xf32>
    %640 = arith.addf %638, %639 : vector<2x16xf32>
    %641 = math.tanh %640 : vector<2x16xf32>
    %642 = arith.mulf %637, %641 : vector<2x16xf32>
    %643 = vector.broadcast %613 : vector<2x1xf32> to vector<2x16xf32>
    %644 = arith.mulf %643, %642 : vector<2x16xf32>
    %cst_125 = arith.constant 1.000000e+00 : f32
    %645 = vector.broadcast %cst_125 : f32 to vector<2x1xf32>
    %646 = arith.subf %645, %613 : vector<2x1xf32>
    %647 = vector.broadcast %646 : vector<2x1xf32> to vector<2x16xf32>
    %648 = arith.mulf %647, %599 : vector<2x16xf32>
    %649 = arith.addf %644, %648 : vector<2x16xf32>
    %650 = vector.broadcast %613 : vector<2x1xf32> to vector<2x16xf32>
    %651 = arith.mulf %650, %640 : vector<2x16xf32>
    %cst_126 = arith.constant 1.000000e+00 : f32
    %652 = vector.broadcast %cst_126 : f32 to vector<2x1xf32>
    %653 = arith.subf %652, %613 : vector<2x1xf32>
    %654 = vector.broadcast %653 : vector<2x1xf32> to vector<2x16xf32>
    %655 = arith.mulf %654, %606 : vector<2x16xf32>
    %656 = arith.addf %651, %655 : vector<2x16xf32>
    %657 = vector.broadcast %613 : vector<2x1xf32> to vector<2x16xf32>
    %658 = arith.mulf %657, %642 : vector<2x16xf32>
    %c3_127 = arith.constant 3 : index
    %c0_128 = arith.constant 0 : index
    %c0_129 = arith.constant 0 : index
    %659 = vector.load %arg18[%c3_127, %c0_128, %c0_129] : memref<8x2x16xf32, #tpu.memory_space<vmem>>, vector<1x2x16xf32>
    %660 = vector.shape_cast %659 : vector<1x2x16xf32> to vector<2x16xf32>
    %661 = vector.shape_cast %658 : vector<2x16xf32> to vector<1x2x16xf32>
    tpu.vector_store %arg18[%c3_127, %c0_128, %c0_129], %661 {strides = array<i32>} : memref<8x2x16xf32, #tpu.memory_space<vmem>>, vector<1x2x16xf32>,
    %662 = vector.extract_strided_slice %19 {offsets = [2, 0, 0], sizes = [1, 2, 1], strides = [1, 1, 1]} : vector<8x2x1xf32> to vector<1x2x1xf32>
    %663 = vector.shape_cast %662 : vector<1x2x1xf32> to vector<2x1xf32>
    %664 = vector.extract_strided_slice %18 {offsets = [0, 2, 64], sizes = [2, 1, 64], strides = [1, 1, 1]} : vector<2x8x128xf32> to vector<2x1x64xf32>
    %665 = vector.shape_cast %664 : vector<2x1x64xf32> to vector<2x64xf32>
    %cst_130 = arith.constant dense<0.000000e+00> : vector<2x64xf32>
    %666 = tpu.matmul %649, %21, %cst_130 {dimension_numbers = #tpu.dot_dimension_numbers<[1], [0], [0], [1], [0, 0, 1, 1], [], []>} : vector<2x16xf32>, vector<16x64xf32>, vector<2x64xf32> -> vector<2x64xf32>
    %667 = arith.addf %665, %666 : vector<2x64xf32>
    %668 = vector.extract_strided_slice %667 {offsets = [0, 0], sizes = [2, 16], strides = [1, 1]} : vector<2x64xf32> to vector<2x16xf32>
    %669 = arith.negf %668 : vector<2x16xf32>
    %670 = math.exp %669 : vector<2x16xf32>
    %cst_131 = arith.constant 1.000000e+00 : f32
    %671 = vector.broadcast %cst_131 : f32 to vector<2x16xf32>
    %672 = arith.addf %671, %670 : vector<2x16xf32>
    %673 = arith.divf %671, %672 : vector<2x16xf32>
    %674 = vector.extract_strided_slice %667 {offsets = [0, 16], sizes = [2, 16], strides = [1, 1]} : vector<2x64xf32> to vector<2x16xf32>
    %675 = arith.negf %674 : vector<2x16xf32>
    %676 = math.exp %675 : vector<2x16xf32>
    %cst_132 = arith.constant 1.000000e+00 : f32
    %677 = vector.broadcast %cst_132 : f32 to vector<2x16xf32>
    %678 = arith.addf %677, %676 : vector<2x16xf32>
    %679 = arith.divf %677, %678 : vector<2x16xf32>
    %680 = vector.extract_strided_slice %667 {offsets = [0, 32], sizes = [2, 16], strides = [1, 1]} : vector<2x64xf32> to vector<2x16xf32>
    %681 = math.tanh %680 : vector<2x16xf32>
    %682 = vector.extract_strided_slice %667 {offsets = [0, 48], sizes = [2, 16], strides = [1, 1]} : vector<2x64xf32> to vector<2x16xf32>
    %683 = arith.negf %682 : vector<2x16xf32>
    %684 = math.exp %683 : vector<2x16xf32>
    %cst_133 = arith.constant 1.000000e+00 : f32
    %685 = vector.broadcast %cst_133 : f32 to vector<2x16xf32>
    %686 = arith.addf %685, %684 : vector<2x16xf32>
    %687 = arith.divf %685, %686 : vector<2x16xf32>
    %688 = arith.mulf %679, %656 : vector<2x16xf32>
    %689 = arith.mulf %673, %681 : vector<2x16xf32>
    %690 = arith.addf %688, %689 : vector<2x16xf32>
    %691 = math.tanh %690 : vector<2x16xf32>
    %692 = arith.mulf %687, %691 : vector<2x16xf32>
    %693 = vector.broadcast %663 : vector<2x1xf32> to vector<2x16xf32>
    %694 = arith.mulf %693, %692 : vector<2x16xf32>
    %cst_134 = arith.constant 1.000000e+00 : f32
    %695 = vector.broadcast %cst_134 : f32 to vector<2x1xf32>
    %696 = arith.subf %695, %663 : vector<2x1xf32>
    %697 = vector.broadcast %696 : vector<2x1xf32> to vector<2x16xf32>
    %698 = arith.mulf %697, %649 : vector<2x16xf32>
    %699 = arith.addf %694, %698 : vector<2x16xf32>
    %700 = vector.broadcast %663 : vector<2x1xf32> to vector<2x16xf32>
    %701 = arith.mulf %700, %690 : vector<2x16xf32>
    %cst_135 = arith.constant 1.000000e+00 : f32
    %702 = vector.broadcast %cst_135 : f32 to vector<2x1xf32>
    %703 = arith.subf %702, %663 : vector<2x1xf32>
    %704 = vector.broadcast %703 : vector<2x1xf32> to vector<2x16xf32>
    %705 = arith.mulf %704, %656 : vector<2x16xf32>
    %706 = arith.addf %701, %705 : vector<2x16xf32>
    %707 = vector.broadcast %663 : vector<2x1xf32> to vector<2x16xf32>
    %708 = arith.mulf %707, %692 : vector<2x16xf32>
    %c2_136 = arith.constant 2 : index
    %c0_137 = arith.constant 0 : index
    %c0_138 = arith.constant 0 : index
    %709 = vector.load %arg18[%c2_136, %c0_137, %c0_138] : memref<8x2x16xf32, #tpu.memory_space<vmem>>, vector<1x2x16xf32>
    %710 = vector.shape_cast %709 : vector<1x2x16xf32> to vector<2x16xf32>
    %711 = vector.shape_cast %708 : vector<2x16xf32> to vector<1x2x16xf32>
    tpu.vector_store %arg18[%c2_136, %c0_137, %c0_138], %711 {strides = array<i32>} : memref<8x2x16xf32, #tpu.memory_space<vmem>>, vector<1x2x16xf32>,
    %712 = vector.extract_strided_slice %19 {offsets = [1, 0, 0], sizes = [1, 2, 1], strides = [1, 1, 1]} : vector<8x2x1xf32> to vector<1x2x1xf32>
    %713 = vector.shape_cast %712 : vector<1x2x1xf32> to vector<2x1xf32>
    %714 = vector.extract_strided_slice %18 {offsets = [0, 1, 64], sizes = [2, 1, 64], strides = [1, 1, 1]} : vector<2x8x128xf32> to vector<2x1x64xf32>
    %715 = vector.shape_cast %714 : vector<2x1x64xf32> to vector<2x64xf32>
    %cst_139 = arith.constant dense<0.000000e+00> : vector<2x64xf32>
    %716 = tpu.matmul %699, %21, %cst_139 {dimension_numbers = #tpu.dot_dimension_numbers<[1], [0], [0], [1], [0, 0, 1, 1], [], []>} : vector<2x16xf32>, vector<16x64xf32>, vector<2x64xf32> -> vector<2x64xf32>
    %717 = arith.addf %715, %716 : vector<2x64xf32>
    %718 = vector.extract_strided_slice %717 {offsets = [0, 0], sizes = [2, 16], strides = [1, 1]} : vector<2x64xf32> to vector<2x16xf32>
    %719 = arith.negf %718 : vector<2x16xf32>
    %720 = math.exp %719 : vector<2x16xf32>
    %cst_140 = arith.constant 1.000000e+00 : f32
    %721 = vector.broadcast %cst_140 : f32 to vector<2x16xf32>
    %722 = arith.addf %721, %720 : vector<2x16xf32>
    %723 = arith.divf %721, %722 : vector<2x16xf32>
    %724 = vector.extract_strided_slice %717 {offsets = [0, 16], sizes = [2, 16], strides = [1, 1]} : vector<2x64xf32> to vector<2x16xf32>
    %725 = arith.negf %724 : vector<2x16xf32>
    %726 = math.exp %725 : vector<2x16xf32>
    %cst_141 = arith.constant 1.000000e+00 : f32
    %727 = vector.broadcast %cst_141 : f32 to vector<2x16xf32>
    %728 = arith.addf %727, %726 : vector<2x16xf32>
    %729 = arith.divf %727, %728 : vector<2x16xf32>
    %730 = vector.extract_strided_slice %717 {offsets = [0, 32], sizes = [2, 16], strides = [1, 1]} : vector<2x64xf32> to vector<2x16xf32>
    %731 = math.tanh %730 : vector<2x16xf32>
    %732 = vector.extract_strided_slice %717 {offsets = [0, 48], sizes = [2, 16], strides = [1, 1]} : vector<2x64xf32> to vector<2x16xf32>
    %733 = arith.negf %732 : vector<2x16xf32>
    %734 = math.exp %733 : vector<2x16xf32>
    %cst_142 = arith.constant 1.000000e+00 : f32
    %735 = vector.broadcast %cst_142 : f32 to vector<2x16xf32>
    %736 = arith.addf %735, %734 : vector<2x16xf32>
    %737 = arith.divf %735, %736 : vector<2x16xf32>
    %738 = arith.mulf %729, %706 : vector<2x16xf32>
    %739 = arith.mulf %723, %731 : vector<2x16xf32>
    %740 = arith.addf %738, %739 : vector<2x16xf32>
    %741 = math.tanh %740 : vector<2x16xf32>
    %742 = arith.mulf %737, %741 : vector<2x16xf32>
    %743 = vector.broadcast %713 : vector<2x1xf32> to vector<2x16xf32>
    %744 = arith.mulf %743, %742 : vector<2x16xf32>
    %cst_143 = arith.constant 1.000000e+00 : f32
    %745 = vector.broadcast %cst_143 : f32 to vector<2x1xf32>
    %746 = arith.subf %745, %713 : vector<2x1xf32>
    %747 = vector.broadcast %746 : vector<2x1xf32> to vector<2x16xf32>
    %748 = arith.mulf %747, %699 : vector<2x16xf32>
    %749 = arith.addf %744, %748 : vector<2x16xf32>
    %750 = vector.broadcast %713 : vector<2x1xf32> to vector<2x16xf32>
    %751 = arith.mulf %750, %740 : vector<2x16xf32>
    %cst_144 = arith.constant 1.000000e+00 : f32
    %752 = vector.broadcast %cst_144 : f32 to vector<2x1xf32>
    %753 = arith.subf %752, %713 : vector<2x1xf32>
    %754 = vector.broadcast %753 : vector<2x1xf32> to vector<2x16xf32>
    %755 = arith.mulf %754, %706 : vector<2x16xf32>
    %756 = arith.addf %751, %755 : vector<2x16xf32>
    %757 = vector.broadcast %713 : vector<2x1xf32> to vector<2x16xf32>
    %758 = arith.mulf %757, %742 : vector<2x16xf32>
    %c1_145 = arith.constant 1 : index
    %c0_146 = arith.constant 0 : index
    %c0_147 = arith.constant 0 : index
    %759 = vector.load %arg18[%c1_145, %c0_146, %c0_147] : memref<8x2x16xf32, #tpu.memory_space<vmem>>, vector<1x2x16xf32>
    %760 = vector.shape_cast %759 : vector<1x2x16xf32> to vector<2x16xf32>
    %761 = vector.shape_cast %758 : vector<2x16xf32> to vector<1x2x16xf32>
    tpu.vector_store %arg18[%c1_145, %c0_146, %c0_147], %761 {strides = array<i32>} : memref<8x2x16xf32, #tpu.memory_space<vmem>>, vector<1x2x16xf32>,
    %762 = vector.extract_strided_slice %19 {offsets = [0, 0, 0], sizes = [1, 2, 1], strides = [1, 1, 1]} : vector<8x2x1xf32> to vector<1x2x1xf32>
    %763 = vector.shape_cast %762 : vector<1x2x1xf32> to vector<2x1xf32>
    %764 = vector.extract_strided_slice %18 {offsets = [0, 0, 64], sizes = [2, 1, 64], strides = [1, 1, 1]} : vector<2x8x128xf32> to vector<2x1x64xf32>
    %765 = vector.shape_cast %764 : vector<2x1x64xf32> to vector<2x64xf32>
    %cst_148 = arith.constant dense<0.000000e+00> : vector<2x64xf32>
    %766 = tpu.matmul %749, %21, %cst_148 {dimension_numbers = #tpu.dot_dimension_numbers<[1], [0], [0], [1], [0, 0, 1, 1], [], []>} : vector<2x16xf32>, vector<16x64xf32>, vector<2x64xf32> -> vector<2x64xf32>
    %767 = arith.addf %765, %766 : vector<2x64xf32>
    %768 = vector.extract_strided_slice %767 {offsets = [0, 0], sizes = [2, 16], strides = [1, 1]} : vector<2x64xf32> to vector<2x16xf32>
    %769 = arith.negf %768 : vector<2x16xf32>
    %770 = math.exp %769 : vector<2x16xf32>
    %cst_149 = arith.constant 1.000000e+00 : f32
    %771 = vector.broadcast %cst_149 : f32 to vector<2x16xf32>
    %772 = arith.addf %771, %770 : vector<2x16xf32>
    %773 = arith.divf %771, %772 : vector<2x16xf32>
    %774 = vector.extract_strided_slice %767 {offsets = [0, 16], sizes = [2, 16], strides = [1, 1]} : vector<2x64xf32> to vector<2x16xf32>
    %775 = arith.negf %774 : vector<2x16xf32>
    %776 = math.exp %775 : vector<2x16xf32>
    %cst_150 = arith.constant 1.000000e+00 : f32
    %777 = vector.broadcast %cst_150 : f32 to vector<2x16xf32>
    %778 = arith.addf %777, %776 : vector<2x16xf32>
    %779 = arith.divf %777, %778 : vector<2x16xf32>
    %780 = vector.extract_strided_slice %767 {offsets = [0, 32], sizes = [2, 16], strides = [1, 1]} : vector<2x64xf32> to vector<2x16xf32>
    %781 = math.tanh %780 : vector<2x16xf32>
    %782 = vector.extract_strided_slice %767 {offsets = [0, 48], sizes = [2, 16], strides = [1, 1]} : vector<2x64xf32> to vector<2x16xf32>
    %783 = arith.negf %782 : vector<2x16xf32>
    %784 = math.exp %783 : vector<2x16xf32>
    %cst_151 = arith.constant 1.000000e+00 : f32
    %785 = vector.broadcast %cst_151 : f32 to vector<2x16xf32>
    %786 = arith.addf %785, %784 : vector<2x16xf32>
    %787 = arith.divf %785, %786 : vector<2x16xf32>
    %788 = arith.mulf %779, %756 : vector<2x16xf32>
    %789 = arith.mulf %773, %781 : vector<2x16xf32>
    %790 = arith.addf %788, %789 : vector<2x16xf32>
    %791 = math.tanh %790 : vector<2x16xf32>
    %792 = arith.mulf %787, %791 : vector<2x16xf32>
    %793 = vector.broadcast %763 : vector<2x1xf32> to vector<2x16xf32>
    %794 = arith.mulf %793, %792 : vector<2x16xf32>
    %c0_152 = arith.constant 0 : index
    %c0_153 = arith.constant 0 : index
    %c0_154 = arith.constant 0 : index
    %795 = vector.load %arg18[%c0_152, %c0_153, %c0_154] : memref<8x2x16xf32, #tpu.memory_space<vmem>>, vector<1x2x16xf32>
    %796 = vector.shape_cast %795 : vector<1x2x16xf32> to vector<2x16xf32>
    %797 = vector.shape_cast %794 : vector<2x16xf32> to vector<1x2x16xf32>
    tpu.vector_store %arg18[%c0_152, %c0_153, %c0_154], %797 {strides = array<i32>} : memref<8x2x16xf32, #tpu.memory_space<vmem>>, vector<1x2x16xf32>,
    %c0_155 = arith.constant 0 : index
    %c0_156 = arith.constant 0 : index
    %c0_157 = arith.constant 0 : index
    %798 = vector.load %arg17[%c0_155, %c0_156, %c0_157] : memref<8x2x16xf32, #tpu.memory_space<vmem>>, vector<8x2x16xf32>
    %c0_158 = arith.constant 0 : index
    %c0_159 = arith.constant 0 : index
    %c0_160 = arith.constant 0 : index
    %799 = vector.load %arg18[%c0_158, %c0_159, %c0_160] : memref<8x2x16xf32, #tpu.memory_space<vmem>>, vector<8x2x16xf32>
    %800 = tpu.concatenate %798, %799 in 2 : vector<8x2x16xf32>, vector<8x2x16xf32> -> vector<8x2x32xf32>
    %801 = vector.shape_cast %800 : vector<8x2x32xf32> to vector<16x32xf32>
    %c0_161 = arith.constant 0 : index
    %c0_162 = arith.constant 0 : index
    %802 = vector.load %arg11[%c0_161, %c0_162] : memref<32x21xf32, #tpu.memory_space<vmem>>, vector<32x21xf32>
    %cst_163 = arith.constant dense<0.000000e+00> : vector<16x21xf32>
    %803 = tpu.matmul %801, %802, %cst_163 {dimension_numbers = #tpu.dot_dimension_numbers<[1], [0], [0], [1], [0, 0, 1, 1], [], []>} : vector<16x32xf32>, vector<32x21xf32>, vector<16x21xf32> -> vector<16x21xf32>
    %c0_164 = arith.constant 0 : index
    %c0_165 = arith.constant 0 : index
    %804 = vector.load %arg12[%c0_164, %c0_165] : memref<1x21xf32, #tpu.memory_space<vmem>>, vector<1x21xf32>
    %805 = vector.broadcast %804 : vector<1x21xf32> to vector<16x21xf32>
    %806 = arith.addf %803, %805 : vector<16x21xf32>
    %807 = vector.shape_cast %806 : vector<16x21xf32> to vector<8x2x21xf32>
    %c0_166 = arith.constant 0 : index
    %c0_167 = arith.constant 0 : index
    %808 = vector.load %arg13[%c0_166, %c0_167] : memref<1x21xf32, #tpu.memory_space<vmem>>, vector<1x21xf32>
    %c0_168 = arith.constant 0 : index
    %c0_169 = arith.constant 0 : index
    %809 = vector.load %arg14[%c0_168, %c0_169] : memref<1x21xf32, #tpu.memory_space<vmem>>, vector<1x21xf32>
    %c0_170 = arith.constant 0 : index
    %c0_171 = arith.constant 0 : index
    %810 = vector.load %arg15[%c0_170, %c0_171] : memref<21x21xf32, #tpu.memory_space<vmem>>, vector<21x21xf32>
    %811 = vector.shape_cast %810 : vector<21x21xf32> to vector<1x21x21xf32>
    %cst_172 = arith.constant dense<0xFF800000> : vector<1xf32>
    %812 = vector.multi_reduction <maximumf>, %811, %cst_172 [1, 2] : vector<1x21x21xf32> to vector<1xf32>
    %813 = vector.shape_cast %812 : vector<1xf32> to vector<1x1x1xf32>
    %814 = vector.extract %813[0, 0, 0] : f32 from vector<1x1x1xf32>
    %815 = vector.broadcast %814 : f32 to vector<1x1xf32>
    %816 = vector.broadcast %815 : vector<1x1xf32> to vector<21x21xf32>
    %817 = arith.subf %810, %816 : vector<21x21xf32>
    %818 = math.exp %817 : vector<21x21xf32>
    %819 = tpu.iota {dimensions = array<i32: 2>} : vector<8x2x21xi32>
    %c0_173 = arith.constant 0 : index
    %c0_174 = arith.constant 0 : index
    %c0_175 = arith.constant 0 : index
    %820 = vector.load %arg2[%c0_173, %c0_174, %c0_175] : memref<8x2x1xi32, #tpu.memory_space<vmem>>, vector<8x2x1xi32>
    %821 = vector.broadcast %820 : vector<8x2x1xi32> to vector<8x2x21xi32>
    %822 = arith.cmpi eq, %819, %821 : vector<8x2x21xi32>
    %823 = arith.extui %822 : vector<8x2x21xi1> to vector<8x2x21xi32>
    %824 = arith.sitofp %823 : vector<8x2x21xi32> to vector<8x2x21xf32>
    %825 = vector.extract_strided_slice %807 {offsets = [0, 0, 0], sizes = [1, 2, 21], strides = [1, 1, 1]} : vector<8x2x21xf32> to vector<1x2x21xf32>
    %826 = vector.shape_cast %825 : vector<1x2x21xf32> to vector<2x21xf32>
    %827 = vector.extract_strided_slice %824 {offsets = [0, 0, 0], sizes = [1, 2, 21], strides = [1, 1, 1]} : vector<8x2x21xf32> to vector<1x2x21xf32>
    %828 = vector.shape_cast %827 : vector<1x2x21xf32> to vector<2x21xf32>
    %829 = vector.broadcast %808 : vector<1x21xf32> to vector<2x21xf32>
    %830 = arith.addf %829, %826 : vector<2x21xf32>
    %831 = arith.mulf %828, %830 : vector<2x21xf32>
    %cst_176 = arith.constant dense<0.000000e+00> : vector<2xf32>
    %832 = vector.multi_reduction <add>, %831, %cst_176 [1] : vector<2x21xf32> to vector<2xf32>
    %833 = vector.shape_cast %832 : vector<2xf32> to vector<2x1xf32>
    %834 = vector.broadcast %808 : vector<1x21xf32> to vector<2x21xf32>
    %835 = arith.addf %834, %826 : vector<2x21xf32>
    %836 = vector.extract_strided_slice %19 {offsets = [1, 0, 0], sizes = [1, 2, 1], strides = [1, 1, 1]} : vector<8x2x1xf32> to vector<1x2x1xf32>
    %837 = vector.shape_cast %836 : vector<1x2x1xf32> to vector<2x1xf32>
    %838 = vector.extract_strided_slice %807 {offsets = [1, 0, 0], sizes = [1, 2, 21], strides = [1, 1, 1]} : vector<8x2x21xf32> to vector<1x2x21xf32>
    %839 = vector.shape_cast %838 : vector<1x2x21xf32> to vector<2x21xf32>
    %840 = vector.extract_strided_slice %824 {offsets = [1, 0, 0], sizes = [1, 2, 21], strides = [1, 1, 1]} : vector<8x2x21xf32> to vector<1x2x21xf32>
    %841 = vector.shape_cast %840 : vector<1x2x21xf32> to vector<2x21xf32>
    %cst_177 = arith.constant dense<0.000000e+00> : vector<2x21xf32>
    %842 = tpu.matmul %828, %810, %cst_177 {dimension_numbers = #tpu.dot_dimension_numbers<[1], [0], [0], [1], [0, 0, 1, 1], [], []>} : vector<2x21xf32>, vector<21x21xf32>, vector<2x21xf32> -> vector<2x21xf32>
    %843 = arith.mulf %842, %841 : vector<2x21xf32>
    %cst_178 = arith.constant dense<0.000000e+00> : vector<2xf32>
    %844 = vector.multi_reduction <add>, %843, %cst_178 [1] : vector<2x21xf32> to vector<2xf32>
    %845 = vector.shape_cast %844 : vector<2xf32> to vector<2x1xf32>
    %846 = arith.mulf %841, %839 : vector<2x21xf32>
    %cst_179 = arith.constant dense<0.000000e+00> : vector<2xf32>
    %847 = vector.multi_reduction <add>, %846, %cst_179 [1] : vector<2x21xf32> to vector<2xf32>
    %848 = vector.shape_cast %847 : vector<2xf32> to vector<2x1xf32>
    %849 = arith.addf %845, %848 : vector<2x1xf32>
    %850 = arith.mulf %837, %849 : vector<2x1xf32>
    %851 = arith.addf %833, %850 : vector<2x1xf32>
    %cst_180 = arith.constant dense<0xFF800000> : vector<2xf32>
    %852 = vector.multi_reduction <maximumf>, %835, %cst_180 [1] : vector<2x21xf32> to vector<2xf32>
    %853 = vector.shape_cast %852 : vector<2xf32> to vector<2x1xf32>
    %854 = vector.broadcast %853 : vector<2x1xf32> to vector<2x21xf32>
    %855 = arith.subf %835, %854 : vector<2x21xf32>
    %856 = math.exp %855 : vector<2x21xf32>
    %cst_181 = arith.constant dense<0.000000e+00> : vector<2x21xf32>
    %857 = tpu.matmul %856, %818, %cst_181 {dimension_numbers = #tpu.dot_dimension_numbers<[1], [0], [0], [1], [0, 0, 1, 1], [], []>} : vector<2x21xf32>, vector<21x21xf32>, vector<2x21xf32> -> vector<2x21xf32>
    %858 = vector.broadcast %815 : vector<1x1xf32> to vector<2x1xf32>
    %859 = arith.addf %853, %858 : vector<2x1xf32>
    %860 = math.log %857 : vector<2x21xf32>
    %861 = vector.broadcast %859 : vector<2x1xf32> to vector<2x21xf32>
    %862 = arith.addf %861, %860 : vector<2x21xf32>
    %863 = arith.addf %862, %839 : vector<2x21xf32>
    %cst_182 = arith.constant 0.000000e+00 : f32
    %864 = vector.broadcast %cst_182 : f32 to vector<2x1xf32>
    %865 = arith.cmpf ogt, %837, %864 : vector<2x1xf32>
    %866 = vector.shape_cast %865 : vector<2x1xi1> to vector<2x1xi1>
    %867 = vector.broadcast %866 : vector<2x1xi1> to vector<2x21xi1>
    %868 = arith.select %867, %863, %835 : vector<2x21xi1>, vector<2x21xf32>
    %cst_183 = arith.constant 0.000000e+00 : f32
    %869 = vector.broadcast %cst_183 : f32 to vector<2x1xf32>
    %870 = arith.cmpf ogt, %837, %869 : vector<2x1xf32>
    %871 = vector.shape_cast %870 : vector<2x1xi1> to vector<2x1xi1>
    %872 = vector.broadcast %871 : vector<2x1xi1> to vector<2x21xi1>
    %873 = arith.select %872, %841, %828 : vector<2x21xi1>, vector<2x21xf32>
    %874 = vector.extract_strided_slice %19 {offsets = [2, 0, 0], sizes = [1, 2, 1], strides = [1, 1, 1]} : vector<8x2x1xf32> to vector<1x2x1xf32>
    %875 = vector.shape_cast %874 : vector<1x2x1xf32> to vector<2x1xf32>
    %876 = vector.extract_strided_slice %807 {offsets = [2, 0, 0], sizes = [1, 2, 21], strides = [1, 1, 1]} : vector<8x2x21xf32> to vector<1x2x21xf32>
    %877 = vector.shape_cast %876 : vector<1x2x21xf32> to vector<2x21xf32>
    %878 = vector.extract_strided_slice %824 {offsets = [2, 0, 0], sizes = [1, 2, 21], strides = [1, 1, 1]} : vector<8x2x21xf32> to vector<1x2x21xf32>
    %879 = vector.shape_cast %878 : vector<1x2x21xf32> to vector<2x21xf32>
    %cst_184 = arith.constant dense<0.000000e+00> : vector<2x21xf32>
    %880 = tpu.matmul %841, %810, %cst_184 {dimension_numbers = #tpu.dot_dimension_numbers<[1], [0], [0], [1], [0, 0, 1, 1], [], []>} : vector<2x21xf32>, vector<21x21xf32>, vector<2x21xf32> -> vector<2x21xf32>
    %881 = arith.mulf %880, %879 : vector<2x21xf32>
    %cst_185 = arith.constant dense<0.000000e+00> : vector<2xf32>
    %882 = vector.multi_reduction <add>, %881, %cst_185 [1] : vector<2x21xf32> to vector<2xf32>
    %883 = vector.shape_cast %882 : vector<2xf32> to vector<2x1xf32>
    %884 = arith.mulf %879, %877 : vector<2x21xf32>
    %cst_186 = arith.constant dense<0.000000e+00> : vector<2xf32>
    %885 = vector.multi_reduction <add>, %884, %cst_186 [1] : vector<2x21xf32> to vector<2xf32>
    %886 = vector.shape_cast %885 : vector<2xf32> to vector<2x1xf32>
    %887 = arith.addf %883, %886 : vector<2x1xf32>
    %888 = arith.mulf %875, %887 : vector<2x1xf32>
    %889 = arith.addf %851, %888 : vector<2x1xf32>
    %cst_187 = arith.constant dense<0xFF800000> : vector<2xf32>
    %890 = vector.multi_reduction <maximumf>, %868, %cst_187 [1] : vector<2x21xf32> to vector<2xf32>
    %891 = vector.shape_cast %890 : vector<2xf32> to vector<2x1xf32>
    %892 = vector.broadcast %891 : vector<2x1xf32> to vector<2x21xf32>
    %893 = arith.subf %868, %892 : vector<2x21xf32>
    %894 = math.exp %893 : vector<2x21xf32>
    %cst_188 = arith.constant dense<0.000000e+00> : vector<2x21xf32>
    %895 = tpu.matmul %894, %818, %cst_188 {dimension_numbers = #tpu.dot_dimension_numbers<[1], [0], [0], [1], [0, 0, 1, 1], [], []>} : vector<2x21xf32>, vector<21x21xf32>, vector<2x21xf32> -> vector<2x21xf32>
    %896 = vector.broadcast %815 : vector<1x1xf32> to vector<2x1xf32>
    %897 = arith.addf %891, %896 : vector<2x1xf32>
    %898 = math.log %895 : vector<2x21xf32>
    %899 = vector.broadcast %897 : vector<2x1xf32> to vector<2x21xf32>
    %900 = arith.addf %899, %898 : vector<2x21xf32>
    %901 = arith.addf %900, %877 : vector<2x21xf32>
    %cst_189 = arith.constant 0.000000e+00 : f32
    %902 = vector.broadcast %cst_189 : f32 to vector<2x1xf32>
    %903 = arith.cmpf ogt, %875, %902 : vector<2x1xf32>
    %904 = vector.shape_cast %903 : vector<2x1xi1> to vector<2x1xi1>
    %905 = vector.broadcast %904 : vector<2x1xi1> to vector<2x21xi1>
    %906 = arith.select %905, %901, %868 : vector<2x21xi1>, vector<2x21xf32>
    %cst_190 = arith.constant 0.000000e+00 : f32
    %907 = vector.broadcast %cst_190 : f32 to vector<2x1xf32>
    %908 = arith.cmpf ogt, %875, %907 : vector<2x1xf32>
    %909 = vector.shape_cast %908 : vector<2x1xi1> to vector<2x1xi1>
    %910 = vector.broadcast %909 : vector<2x1xi1> to vector<2x21xi1>
    %911 = arith.select %910, %879, %873 : vector<2x21xi1>, vector<2x21xf32>
    %912 = vector.extract_strided_slice %19 {offsets = [3, 0, 0], sizes = [1, 2, 1], strides = [1, 1, 1]} : vector<8x2x1xf32> to vector<1x2x1xf32>
    %913 = vector.shape_cast %912 : vector<1x2x1xf32> to vector<2x1xf32>
    %914 = vector.extract_strided_slice %807 {offsets = [3, 0, 0], sizes = [1, 2, 21], strides = [1, 1, 1]} : vector<8x2x21xf32> to vector<1x2x21xf32>
    %915 = vector.shape_cast %914 : vector<1x2x21xf32> to vector<2x21xf32>
    %916 = vector.extract_strided_slice %824 {offsets = [3, 0, 0], sizes = [1, 2, 21], strides = [1, 1, 1]} : vector<8x2x21xf32> to vector<1x2x21xf32>
    %917 = vector.shape_cast %916 : vector<1x2x21xf32> to vector<2x21xf32>
    %cst_191 = arith.constant dense<0.000000e+00> : vector<2x21xf32>
    %918 = tpu.matmul %879, %810, %cst_191 {dimension_numbers = #tpu.dot_dimension_numbers<[1], [0], [0], [1], [0, 0, 1, 1], [], []>} : vector<2x21xf32>, vector<21x21xf32>, vector<2x21xf32> -> vector<2x21xf32>
    %919 = arith.mulf %918, %917 : vector<2x21xf32>
    %cst_192 = arith.constant dense<0.000000e+00> : vector<2xf32>
    %920 = vector.multi_reduction <add>, %919, %cst_192 [1] : vector<2x21xf32> to vector<2xf32>
    %921 = vector.shape_cast %920 : vector<2xf32> to vector<2x1xf32>
    %922 = arith.mulf %917, %915 : vector<2x21xf32>
    %cst_193 = arith.constant dense<0.000000e+00> : vector<2xf32>
    %923 = vector.multi_reduction <add>, %922, %cst_193 [1] : vector<2x21xf32> to vector<2xf32>
    %924 = vector.shape_cast %923 : vector<2xf32> to vector<2x1xf32>
    %925 = arith.addf %921, %924 : vector<2x1xf32>
    %926 = arith.mulf %913, %925 : vector<2x1xf32>
    %927 = arith.addf %889, %926 : vector<2x1xf32>
    %cst_194 = arith.constant dense<0xFF800000> : vector<2xf32>
    %928 = vector.multi_reduction <maximumf>, %906, %cst_194 [1] : vector<2x21xf32> to vector<2xf32>
    %929 = vector.shape_cast %928 : vector<2xf32> to vector<2x1xf32>
    %930 = vector.broadcast %929 : vector<2x1xf32> to vector<2x21xf32>
    %931 = arith.subf %906, %930 : vector<2x21xf32>
    %932 = math.exp %931 : vector<2x21xf32>
    %cst_195 = arith.constant dense<0.000000e+00> : vector<2x21xf32>
    %933 = tpu.matmul %932, %818, %cst_195 {dimension_numbers = #tpu.dot_dimension_numbers<[1], [0], [0], [1], [0, 0, 1, 1], [], []>} : vector<2x21xf32>, vector<21x21xf32>, vector<2x21xf32> -> vector<2x21xf32>
    %934 = vector.broadcast %815 : vector<1x1xf32> to vector<2x1xf32>
    %935 = arith.addf %929, %934 : vector<2x1xf32>
    %936 = math.log %933 : vector<2x21xf32>
    %937 = vector.broadcast %935 : vector<2x1xf32> to vector<2x21xf32>
    %938 = arith.addf %937, %936 : vector<2x21xf32>
    %939 = arith.addf %938, %915 : vector<2x21xf32>
    %cst_196 = arith.constant 0.000000e+00 : f32
    %940 = vector.broadcast %cst_196 : f32 to vector<2x1xf32>
    %941 = arith.cmpf ogt, %913, %940 : vector<2x1xf32>
    %942 = vector.shape_cast %941 : vector<2x1xi1> to vector<2x1xi1>
    %943 = vector.broadcast %942 : vector<2x1xi1> to vector<2x21xi1>
    %944 = arith.select %943, %939, %906 : vector<2x21xi1>, vector<2x21xf32>
    %cst_197 = arith.constant 0.000000e+00 : f32
    %945 = vector.broadcast %cst_197 : f32 to vector<2x1xf32>
    %946 = arith.cmpf ogt, %913, %945 : vector<2x1xf32>
    %947 = vector.shape_cast %946 : vector<2x1xi1> to vector<2x1xi1>
    %948 = vector.broadcast %947 : vector<2x1xi1> to vector<2x21xi1>
    %949 = arith.select %948, %917, %911 : vector<2x21xi1>, vector<2x21xf32>
    %950 = vector.extract_strided_slice %19 {offsets = [4, 0, 0], sizes = [1, 2, 1], strides = [1, 1, 1]} : vector<8x2x1xf32> to vector<1x2x1xf32>
    %951 = vector.shape_cast %950 : vector<1x2x1xf32> to vector<2x1xf32>
    %952 = vector.extract_strided_slice %807 {offsets = [4, 0, 0], sizes = [1, 2, 21], strides = [1, 1, 1]} : vector<8x2x21xf32> to vector<1x2x21xf32>
    %953 = vector.shape_cast %952 : vector<1x2x21xf32> to vector<2x21xf32>
    %954 = vector.extract_strided_slice %824 {offsets = [4, 0, 0], sizes = [1, 2, 21], strides = [1, 1, 1]} : vector<8x2x21xf32> to vector<1x2x21xf32>
    %955 = vector.shape_cast %954 : vector<1x2x21xf32> to vector<2x21xf32>
    %cst_198 = arith.constant dense<0.000000e+00> : vector<2x21xf32>
    %956 = tpu.matmul %917, %810, %cst_198 {dimension_numbers = #tpu.dot_dimension_numbers<[1], [0], [0], [1], [0, 0, 1, 1], [], []>} : vector<2x21xf32>, vector<21x21xf32>, vector<2x21xf32> -> vector<2x21xf32>
    %957 = arith.mulf %956, %955 : vector<2x21xf32>
    %cst_199 = arith.constant dense<0.000000e+00> : vector<2xf32>
    %958 = vector.multi_reduction <add>, %957, %cst_199 [1] : vector<2x21xf32> to vector<2xf32>
    %959 = vector.shape_cast %958 : vector<2xf32> to vector<2x1xf32>
    %960 = arith.mulf %955, %953 : vector<2x21xf32>
    %cst_200 = arith.constant dense<0.000000e+00> : vector<2xf32>
    %961 = vector.multi_reduction <add>, %960, %cst_200 [1] : vector<2x21xf32> to vector<2xf32>
    %962 = vector.shape_cast %961 : vector<2xf32> to vector<2x1xf32>
    %963 = arith.addf %959, %962 : vector<2x1xf32>
    %964 = arith.mulf %951, %963 : vector<2x1xf32>
    %965 = arith.addf %927, %964 : vector<2x1xf32>
    %cst_201 = arith.constant dense<0xFF800000> : vector<2xf32>
    %966 = vector.multi_reduction <maximumf>, %944, %cst_201 [1] : vector<2x21xf32> to vector<2xf32>
    %967 = vector.shape_cast %966 : vector<2xf32> to vector<2x1xf32>
    %968 = vector.broadcast %967 : vector<2x1xf32> to vector<2x21xf32>
    %969 = arith.subf %944, %968 : vector<2x21xf32>
    %970 = math.exp %969 : vector<2x21xf32>
    %cst_202 = arith.constant dense<0.000000e+00> : vector<2x21xf32>
    %971 = tpu.matmul %970, %818, %cst_202 {dimension_numbers = #tpu.dot_dimension_numbers<[1], [0], [0], [1], [0, 0, 1, 1], [], []>} : vector<2x21xf32>, vector<21x21xf32>, vector<2x21xf32> -> vector<2x21xf32>
    %972 = vector.broadcast %815 : vector<1x1xf32> to vector<2x1xf32>
    %973 = arith.addf %967, %972 : vector<2x1xf32>
    %974 = math.log %971 : vector<2x21xf32>
    %975 = vector.broadcast %973 : vector<2x1xf32> to vector<2x21xf32>
    %976 = arith.addf %975, %974 : vector<2x21xf32>
    %977 = arith.addf %976, %953 : vector<2x21xf32>
    %cst_203 = arith.constant 0.000000e+00 : f32
    %978 = vector.broadcast %cst_203 : f32 to vector<2x1xf32>
    %979 = arith.cmpf ogt, %951, %978 : vector<2x1xf32>
    %980 = vector.shape_cast %979 : vector<2x1xi1> to vector<2x1xi1>
    %981 = vector.broadcast %980 : vector<2x1xi1> to vector<2x21xi1>
    %982 = arith.select %981, %977, %944 : vector<2x21xi1>, vector<2x21xf32>
    %cst_204 = arith.constant 0.000000e+00 : f32
    %983 = vector.broadcast %cst_204 : f32 to vector<2x1xf32>
    %984 = arith.cmpf ogt, %951, %983 : vector<2x1xf32>
    %985 = vector.shape_cast %984 : vector<2x1xi1> to vector<2x1xi1>
    %986 = vector.broadcast %985 : vector<2x1xi1> to vector<2x21xi1>
    %987 = arith.select %986, %955, %949 : vector<2x21xi1>, vector<2x21xf32>
    %988 = vector.extract_strided_slice %19 {offsets = [5, 0, 0], sizes = [1, 2, 1], strides = [1, 1, 1]} : vector<8x2x1xf32> to vector<1x2x1xf32>
    %989 = vector.shape_cast %988 : vector<1x2x1xf32> to vector<2x1xf32>
    %990 = vector.extract_strided_slice %807 {offsets = [5, 0, 0], sizes = [1, 2, 21], strides = [1, 1, 1]} : vector<8x2x21xf32> to vector<1x2x21xf32>
    %991 = vector.shape_cast %990 : vector<1x2x21xf32> to vector<2x21xf32>
    %992 = vector.extract_strided_slice %824 {offsets = [5, 0, 0], sizes = [1, 2, 21], strides = [1, 1, 1]} : vector<8x2x21xf32> to vector<1x2x21xf32>
    %993 = vector.shape_cast %992 : vector<1x2x21xf32> to vector<2x21xf32>
    %cst_205 = arith.constant dense<0.000000e+00> : vector<2x21xf32>
    %994 = tpu.matmul %955, %810, %cst_205 {dimension_numbers = #tpu.dot_dimension_numbers<[1], [0], [0], [1], [0, 0, 1, 1], [], []>} : vector<2x21xf32>, vector<21x21xf32>, vector<2x21xf32> -> vector<2x21xf32>
    %995 = arith.mulf %994, %993 : vector<2x21xf32>
    %cst_206 = arith.constant dense<0.000000e+00> : vector<2xf32>
    %996 = vector.multi_reduction <add>, %995, %cst_206 [1] : vector<2x21xf32> to vector<2xf32>
    %997 = vector.shape_cast %996 : vector<2xf32> to vector<2x1xf32>
    %998 = arith.mulf %993, %991 : vector<2x21xf32>
    %cst_207 = arith.constant dense<0.000000e+00> : vector<2xf32>
    %999 = vector.multi_reduction <add>, %998, %cst_207 [1] : vector<2x21xf32> to vector<2xf32>
    %1000 = vector.shape_cast %999 : vector<2xf32> to vector<2x1xf32>
    %1001 = arith.addf %997, %1000 : vector<2x1xf32>
    %1002 = arith.mulf %989, %1001 : vector<2x1xf32>
    %1003 = arith.addf %965, %1002 : vector<2x1xf32>
    %cst_208 = arith.constant dense<0xFF800000> : vector<2xf32>
    %1004 = vector.multi_reduction <maximumf>, %982, %cst_208 [1] : vector<2x21xf32> to vector<2xf32>
    %1005 = vector.shape_cast %1004 : vector<2xf32> to vector<2x1xf32>
    %1006 = vector.broadcast %1005 : vector<2x1xf32> to vector<2x21xf32>
    %1007 = arith.subf %982, %1006 : vector<2x21xf32>
    %1008 = math.exp %1007 : vector<2x21xf32>
    %cst_209 = arith.constant dense<0.000000e+00> : vector<2x21xf32>
    %1009 = tpu.matmul %1008, %818, %cst_209 {dimension_numbers = #tpu.dot_dimension_numbers<[1], [0], [0], [1], [0, 0, 1, 1], [], []>} : vector<2x21xf32>, vector<21x21xf32>, vector<2x21xf32> -> vector<2x21xf32>
    %1010 = vector.broadcast %815 : vector<1x1xf32> to vector<2x1xf32>
    %1011 = arith.addf %1005, %1010 : vector<2x1xf32>
    %1012 = math.log %1009 : vector<2x21xf32>
    %1013 = vector.broadcast %1011 : vector<2x1xf32> to vector<2x21xf32>
    %1014 = arith.addf %1013, %1012 : vector<2x21xf32>
    %1015 = arith.addf %1014, %991 : vector<2x21xf32>
    %cst_210 = arith.constant 0.000000e+00 : f32
    %1016 = vector.broadcast %cst_210 : f32 to vector<2x1xf32>
    %1017 = arith.cmpf ogt, %989, %1016 : vector<2x1xf32>
    %1018 = vector.shape_cast %1017 : vector<2x1xi1> to vector<2x1xi1>
    %1019 = vector.broadcast %1018 : vector<2x1xi1> to vector<2x21xi1>
    %1020 = arith.select %1019, %1015, %982 : vector<2x21xi1>, vector<2x21xf32>
    %cst_211 = arith.constant 0.000000e+00 : f32
    %1021 = vector.broadcast %cst_211 : f32 to vector<2x1xf32>
    %1022 = arith.cmpf ogt, %989, %1021 : vector<2x1xf32>
    %1023 = vector.shape_cast %1022 : vector<2x1xi1> to vector<2x1xi1>
    %1024 = vector.broadcast %1023 : vector<2x1xi1> to vector<2x21xi1>
    %1025 = arith.select %1024, %993, %987 : vector<2x21xi1>, vector<2x21xf32>
    %1026 = vector.extract_strided_slice %19 {offsets = [6, 0, 0], sizes = [1, 2, 1], strides = [1, 1, 1]} : vector<8x2x1xf32> to vector<1x2x1xf32>
    %1027 = vector.shape_cast %1026 : vector<1x2x1xf32> to vector<2x1xf32>
    %1028 = vector.extract_strided_slice %807 {offsets = [6, 0, 0], sizes = [1, 2, 21], strides = [1, 1, 1]} : vector<8x2x21xf32> to vector<1x2x21xf32>
    %1029 = vector.shape_cast %1028 : vector<1x2x21xf32> to vector<2x21xf32>
    %1030 = vector.extract_strided_slice %824 {offsets = [6, 0, 0], sizes = [1, 2, 21], strides = [1, 1, 1]} : vector<8x2x21xf32> to vector<1x2x21xf32>
    %1031 = vector.shape_cast %1030 : vector<1x2x21xf32> to vector<2x21xf32>
    %cst_212 = arith.constant dense<0.000000e+00> : vector<2x21xf32>
    %1032 = tpu.matmul %993, %810, %cst_212 {dimension_numbers = #tpu.dot_dimension_numbers<[1], [0], [0], [1], [0, 0, 1, 1], [], []>} : vector<2x21xf32>, vector<21x21xf32>, vector<2x21xf32> -> vector<2x21xf32>
    %1033 = arith.mulf %1032, %1031 : vector<2x21xf32>
    %cst_213 = arith.constant dense<0.000000e+00> : vector<2xf32>
    %1034 = vector.multi_reduction <add>, %1033, %cst_213 [1] : vector<2x21xf32> to vector<2xf32>
    %1035 = vector.shape_cast %1034 : vector<2xf32> to vector<2x1xf32>
    %1036 = arith.mulf %1031, %1029 : vector<2x21xf32>
    %cst_214 = arith.constant dense<0.000000e+00> : vector<2xf32>
    %1037 = vector.multi_reduction <add>, %1036, %cst_214 [1] : vector<2x21xf32> to vector<2xf32>
    %1038 = vector.shape_cast %1037 : vector<2xf32> to vector<2x1xf32>
    %1039 = arith.addf %1035, %1038 : vector<2x1xf32>
    %1040 = arith.mulf %1027, %1039 : vector<2x1xf32>
    %1041 = arith.addf %1003, %1040 : vector<2x1xf32>
    %cst_215 = arith.constant dense<0xFF800000> : vector<2xf32>
    %1042 = vector.multi_reduction <maximumf>, %1020, %cst_215 [1] : vector<2x21xf32> to vector<2xf32>
    %1043 = vector.shape_cast %1042 : vector<2xf32> to vector<2x1xf32>
    %1044 = vector.broadcast %1043 : vector<2x1xf32> to vector<2x21xf32>
    %1045 = arith.subf %1020, %1044 : vector<2x21xf32>
    %1046 = math.exp %1045 : vector<2x21xf32>
    %cst_216 = arith.constant dense<0.000000e+00> : vector<2x21xf32>
    %1047 = tpu.matmul %1046, %818, %cst_216 {dimension_numbers = #tpu.dot_dimension_numbers<[1], [0], [0], [1], [0, 0, 1, 1], [], []>} : vector<2x21xf32>, vector<21x21xf32>, vector<2x21xf32> -> vector<2x21xf32>
    %1048 = vector.broadcast %815 : vector<1x1xf32> to vector<2x1xf32>
    %1049 = arith.addf %1043, %1048 : vector<2x1xf32>
    %1050 = math.log %1047 : vector<2x21xf32>
    %1051 = vector.broadcast %1049 : vector<2x1xf32> to vector<2x21xf32>
    %1052 = arith.addf %1051, %1050 : vector<2x21xf32>
    %1053 = arith.addf %1052, %1029 : vector<2x21xf32>
    %cst_217 = arith.constant 0.000000e+00 : f32
    %1054 = vector.broadcast %cst_217 : f32 to vector<2x1xf32>
    %1055 = arith.cmpf ogt, %1027, %1054 : vector<2x1xf32>
    %1056 = vector.shape_cast %1055 : vector<2x1xi1> to vector<2x1xi1>
    %1057 = vector.broadcast %1056 : vector<2x1xi1> to vector<2x21xi1>
    %1058 = arith.select %1057, %1053, %1020 : vector<2x21xi1>, vector<2x21xf32>
    %cst_218 = arith.constant 0.000000e+00 : f32
    %1059 = vector.broadcast %cst_218 : f32 to vector<2x1xf32>
    %1060 = arith.cmpf ogt, %1027, %1059 : vector<2x1xf32>
    %1061 = vector.shape_cast %1060 : vector<2x1xi1> to vector<2x1xi1>
    %1062 = vector.broadcast %1061 : vector<2x1xi1> to vector<2x21xi1>
    %1063 = arith.select %1062, %1031, %1025 : vector<2x21xi1>, vector<2x21xf32>
    %1064 = vector.extract_strided_slice %19 {offsets = [7, 0, 0], sizes = [1, 2, 1], strides = [1, 1, 1]} : vector<8x2x1xf32> to vector<1x2x1xf32>
    %1065 = vector.shape_cast %1064 : vector<1x2x1xf32> to vector<2x1xf32>
    %1066 = vector.extract_strided_slice %807 {offsets = [7, 0, 0], sizes = [1, 2, 21], strides = [1, 1, 1]} : vector<8x2x21xf32> to vector<1x2x21xf32>
    %1067 = vector.shape_cast %1066 : vector<1x2x21xf32> to vector<2x21xf32>
    %1068 = vector.extract_strided_slice %824 {offsets = [7, 0, 0], sizes = [1, 2, 21], strides = [1, 1, 1]} : vector<8x2x21xf32> to vector<1x2x21xf32>
    %1069 = vector.shape_cast %1068 : vector<1x2x21xf32> to vector<2x21xf32>
    %cst_219 = arith.constant dense<0.000000e+00> : vector<2x21xf32>
    %1070 = tpu.matmul %1031, %810, %cst_219 {dimension_numbers = #tpu.dot_dimension_numbers<[1], [0], [0], [1], [0, 0, 1, 1], [], []>} : vector<2x21xf32>, vector<21x21xf32>, vector<2x21xf32> -> vector<2x21xf32>
    %1071 = arith.mulf %1070, %1069 : vector<2x21xf32>
    %cst_220 = arith.constant dense<0.000000e+00> : vector<2xf32>
    %1072 = vector.multi_reduction <add>, %1071, %cst_220 [1] : vector<2x21xf32> to vector<2xf32>
    %1073 = vector.shape_cast %1072 : vector<2xf32> to vector<2x1xf32>
    %1074 = arith.mulf %1069, %1067 : vector<2x21xf32>
    %cst_221 = arith.constant dense<0.000000e+00> : vector<2xf32>
    %1075 = vector.multi_reduction <add>, %1074, %cst_221 [1] : vector<2x21xf32> to vector<2xf32>
    %1076 = vector.shape_cast %1075 : vector<2xf32> to vector<2x1xf32>
    %1077 = arith.addf %1073, %1076 : vector<2x1xf32>
    %1078 = arith.mulf %1065, %1077 : vector<2x1xf32>
    %1079 = arith.addf %1041, %1078 : vector<2x1xf32>
    %cst_222 = arith.constant dense<0xFF800000> : vector<2xf32>
    %1080 = vector.multi_reduction <maximumf>, %1058, %cst_222 [1] : vector<2x21xf32> to vector<2xf32>
    %1081 = vector.shape_cast %1080 : vector<2xf32> to vector<2x1xf32>
    %1082 = vector.broadcast %1081 : vector<2x1xf32> to vector<2x21xf32>
    %1083 = arith.subf %1058, %1082 : vector<2x21xf32>
    %1084 = math.exp %1083 : vector<2x21xf32>
    %cst_223 = arith.constant dense<0.000000e+00> : vector<2x21xf32>
    %1085 = tpu.matmul %1084, %818, %cst_223 {dimension_numbers = #tpu.dot_dimension_numbers<[1], [0], [0], [1], [0, 0, 1, 1], [], []>} : vector<2x21xf32>, vector<21x21xf32>, vector<2x21xf32> -> vector<2x21xf32>
    %1086 = vector.broadcast %815 : vector<1x1xf32> to vector<2x1xf32>
    %1087 = arith.addf %1081, %1086 : vector<2x1xf32>
    %1088 = math.log %1085 : vector<2x21xf32>
    %1089 = vector.broadcast %1087 : vector<2x1xf32> to vector<2x21xf32>
    %1090 = arith.addf %1089, %1088 : vector<2x21xf32>
    %1091 = arith.addf %1090, %1067 : vector<2x21xf32>
    %cst_224 = arith.constant 0.000000e+00 : f32
    %1092 = vector.broadcast %cst_224 : f32 to vector<2x1xf32>
    %1093 = arith.cmpf ogt, %1065, %1092 : vector<2x1xf32>
    %1094 = vector.shape_cast %1093 : vector<2x1xi1> to vector<2x1xi1>
    %1095 = vector.broadcast %1094 : vector<2x1xi1> to vector<2x21xi1>
    %1096 = arith.select %1095, %1091, %1058 : vector<2x21xi1>, vector<2x21xf32>
    %cst_225 = arith.constant 0.000000e+00 : f32
    %1097 = vector.broadcast %cst_225 : f32 to vector<2x1xf32>
    %1098 = arith.cmpf ogt, %1065, %1097 : vector<2x1xf32>
    %1099 = vector.shape_cast %1098 : vector<2x1xi1> to vector<2x1xi1>
    %1100 = vector.broadcast %1099 : vector<2x1xi1> to vector<2x21xi1>
    %1101 = arith.select %1100, %1069, %1063 : vector<2x21xi1>, vector<2x21xf32>
    %1102 = vector.broadcast %809 : vector<1x21xf32> to vector<2x21xf32>
    %1103 = arith.mulf %1101, %1102 : vector<2x21xf32>
    %cst_226 = arith.constant dense<0.000000e+00> : vector<2xf32>
    %1104 = vector.multi_reduction <add>, %1103, %cst_226 [1] : vector<2x21xf32> to vector<2xf32>
    %1105 = vector.shape_cast %1104 : vector<2xf32> to vector<2x1xf32>
    %1106 = arith.addf %1079, %1105 : vector<2x1xf32>
    %1107 = vector.broadcast %809 : vector<1x21xf32> to vector<2x21xf32>
    %1108 = arith.addf %1096, %1107 : vector<2x21xf32>
    %cst_227 = arith.constant dense<0xFF800000> : vector<2xf32>
    %1109 = vector.multi_reduction <maximumf>, %1108, %cst_227 [1] : vector<2x21xf32> to vector<2xf32>
    %1110 = vector.shape_cast %1109 : vector<2xf32> to vector<2x1xf32>
    %1111 = vector.broadcast %1110 : vector<2x1xf32> to vector<2x21xf32>
    %1112 = arith.subf %1108, %1111 : vector<2x21xf32>
    %1113 = math.exp %1112 : vector<2x21xf32>
    %cst_228 = arith.constant dense<0.000000e+00> : vector<2xf32>
    %1114 = vector.multi_reduction <add>, %1113, %cst_228 [1] : vector<2x21xf32> to vector<2xf32>
    %1115 = vector.shape_cast %1114 : vector<2xf32> to vector<2x1xf32>
    %1116 = math.log %1115 : vector<2x1xf32>
    %1117 = arith.addf %1110, %1116 : vector<2x1xf32>
    %1118 = arith.subf %1106, %1117 : vector<2x1xf32>
    %cst_229 = arith.constant dense<0.000000e+00> : vector<1xf32>
    %1119 = vector.multi_reduction <add>, %1118, %cst_229 [0] : vector<2x1xf32> to vector<1xf32>
    %1120 = vector.shape_cast %1119 : vector<1xf32> to vector<1x1xf32>
    %cst_230 = arith.constant 0.000000e+00 : f32
    %1121 = vector.broadcast %cst_230 : f32 to vector<1x1xf32>
    %1122 = arith.subf %1121, %1120 : vector<1x1xf32>
    %cst_231 = arith.constant 2.000000e+00 : f32
    %1123 = vector.broadcast %cst_231 : f32 to vector<1x1xf32>
    %1124 = arith.divf %1122, %1123 : vector<1x1xf32>
    %c0_232 = arith.constant 0 : index
    %c0_233 = arith.constant 0 : index
    %1125 = vector.load %arg16[%c0_232, %c0_233] : memref<1x1xf32, #tpu.memory_space<vmem>>, vector<1x1xf32>
    tpu.vector_store %arg16[%c0_232, %c0_233], %1124 {strides = array<i32>} : memref<1x1xf32, #tpu.memory_space<vmem>>, vector<1x1xf32>,
    return
  }
}

</mosaic_0001>

<bundles_post_ra>
// kernel: tpu_custom_call.1
= control target key start
LH: loop header
LB: loop body
LE: loop exit
PB: predicated region body
PF: predicated region fallthrough
CT: control target
= control target key end

     0   :  { %s7083_s0 = inlined_call_operand.vmem [shape: f32[4,2,8,32], index: 0, kind: input, shape index: {}]   ;;  %s7084_s1 = inlined_call_operand.vmem [shape: f32[8,2,1], index: 1, kind: input, shape index: {}]   ;;  %s7085_s2 = inlined_call_operand.vmem [shape: s32[8,2,1], index: 2, kind: input, shape index: {}]   ;;  %s7086_s3 = inlined_call_operand.vmem [shape: f32[32,128], index: 3, kind: input, shape index: {}]   ;;  %s7087_s4 = inlined_call_operand.hbm [shape: f32[16,64], index: 4, kind: input, shape index: {}]   ;;  %s7088_s5 = inlined_call_operand.hbm [shape: f32[16,64], index: 5, kind: input, shape index: {}]   ;;  %s7089_s6 = inlined_call_operand.hbm [shape: f32[1,128], index: 6, kind: input, shape index: {}]   ;;  %s7090_s7 = inlined_call_operand.hbm [shape: f32[2,16], index: 7, kind: input, shape index: {}]   ;;  %s7091_s8 = inlined_call_operand.hbm [shape: f32[2,16], index: 8, kind: input, shape index: {}]   ;;  %s7092_s9 = inlined_call_operand.hbm [shape: f32[2,16], index: 9, kind: input, shape index: {}]   ;;  %s7093_s10 = inlined_call_operand.hbm [shape: f32[2,16], index: 10, kind: input, shape index: {}]   ;;  %s7094_s11 = inlined_call_operand.vmem [shape: f32[32,21], index: 11, kind: input, shape index: {}]   ;;  %s7095_s12 = inlined_call_operand.hbm [shape: f32[1,21], index: 12, kind: input, shape index: {}]   ;;  %s7096_s13 = inlined_call_operand.hbm [shape: f32[1,21], index: 13, kind: input, shape index: {}]   ;;  %s7097_s14 = inlined_call_operand.hbm [shape: f32[1,21], index: 14, kind: input, shape index: {}]   ;;  %s7098_s15 = inlined_call_operand.vmem [shape: f32[21,21], index: 15, kind: input, shape index: {}]   ;;  %s7099_s16 = inlined_call_operand.hbm [shape: f32[1,1], index: 16, kind: output, shape index: {}]  }
   0x1   :  { %7101 = sst [smem:[#allocation29_spill]] %s7083_s0 }
   0x2   :  { %21 = vsyncpa [#allocation5], 0 }
   0x3   :  { %22 = vsyncpa [#allocation8], 0 }
   0x4   :  { %23 = vsyncpa [#allocation11], 0 }
   0x5   :  { %24 = vsyncpa [#allocation14], 0 }
   0x6   :  { %25 = vsyncpa [#allocation17], 0 }
   0x7   :  { %26 = vsyncpa [#allocation20], 0 }
   0x8   :  { %27 = vsyncpa [#allocation6], 0  ;;  %s5743_s21 = smov [#allocation7]   ;;  %s5744_s23 = smov [#allocation10]  }
   0x9   :  { %s53_s22 = sshll.u32 %s5743_s21, 4  ;;  %s76_s24 = sshll.u32 %s5744_s23, 4  ;;  %s54_s22 = int_to_ptr.vmem [resolvable:$true] %s53_s22  ;;  %s77_s24 = int_to_ptr.vmem [resolvable:$true] %s76_s24 }
   0xa   :  { %s5487_s27 = scalar_lea.hbm %s7088_s5, 256 }
   0xb   :  { %p5488_p0 = scmp.ne.s32.totalorder %s7088_s5, %s5487_s27  ;;  %p5491_p1 = scmp.lt.u32.totalorder %s5487_s27, %s7088_s5 }
   0xd   :  { %p5493_p2 = pnand %p5491_p1, %p5488_p0 }
   0xf   :  { %5496 = shalt.err (!%p5493_p2)
}
  0x10   :  { %s5497_s17 = scalar_lea.vmem %s54_s22, 256  ;;  %p5502_p4 = scmp.lt.s32.totalorder %s54_s22, %s54_s22 }
  0x11   :  { %p5498_p3 = scmp.ne.s32.totalorder %s54_s22, %s5497_s17  ;;  %p5503_p5 = scmp.lt.s32.totalorder %s5497_s17, %s5497_s17 }
  0x13   :  { %p5504_p6 = por %p5503_p5, %p5502_p4 }
  0x15   :  { %p5505_p7 = pnand %p5504_p6, %p5498_p3 }
  0x17   :  { %5508 = shalt.err (!%p5505_p7)
}
  0x18   :  { %s5745_s18 = smov 128   ;;  %s5746_s19 = smov 8  }
  0x19   :  { %59 = dma.hbm_to_vmem [thread:$0]  %s7088_s5, 256, %s54_s22, [#allocation8], %s5745_s18, %s5745_s18, %s5746_s19  }
  0x1a   :  { %s5509_s26 = scalar_lea.hbm %s7090_s7, 32 }
  0x1b   :  { %p5510_p8 = scmp.ne.s32.totalorder %s7090_s7, %s5509_s26  ;;  %p5513_p9 = scmp.lt.u32.totalorder %s5509_s26, %s7090_s7 }
  0x1d   :  { %p5515_p10 = pnand %p5513_p9, %p5510_p8 }
  0x1f   :  { %5518 = shalt.err (!%p5515_p10)
}
  0x20   :  { %s5519_s0 = scalar_lea.vmem %s77_s24, 32  ;;  %p5524_p12 = scmp.lt.s32.totalorder %s77_s24, %s77_s24 }
  0x21   :  { %p5520_p11 = scmp.ne.s32.totalorder %s77_s24, %s5519_s0  ;;  %p5525_p13 = scmp.lt.s32.totalorder %s5519_s0, %s5519_s0 }
  0x23   :  { %p5526_p0 = por %p5525_p13, %p5524_p12 }
  0x25   :  { %p5527_p1 = pnand %p5526_p0, %p5520_p11 }
  0x27   :  { %5530 = shalt.err (!%p5527_p1)
}
  0x28   :  { %79 = dma.hbm_to_vmem [thread:$0]  %s7090_s7, 32, %s77_s24, [#allocation11]  }
  0x29   :  { %s5747_s17 = smov [#allocation13]   ;;  %s5748_s21 = smov [#allocation16]  }
  0x2a   :  { %s96_s20 = sshll.u32 %s5747_s17, 4  ;;  %s118_s23 = sshll.u32 %s5748_s21, 4  ;;  %s97_s20 = int_to_ptr.vmem [resolvable:$true] %s96_s20  ;;  %s119_s23 = int_to_ptr.vmem [resolvable:$true] %s118_s23 }
  0x2b   :  { %s5531_s27 = scalar_lea.hbm %s7092_s9, 32 }
  0x2c   :  { %p5532_p2 = scmp.ne.s32.totalorder %s7092_s9, %s5531_s27  ;;  %p5535_p3 = scmp.lt.u32.totalorder %s5531_s27, %s7092_s9 }
  0x2e   :  { %p5537_p4 = pnand %p5535_p3, %p5532_p2 }
  0x30   :  { %5540 = shalt.err (!%p5537_p4)
}
  0x31   :  { %s5541_s7 = scalar_lea.vmem %s97_s20, 32  ;;  %p5546_p6 = scmp.lt.s32.totalorder %s97_s20, %s97_s20 }
  0x32   :  { %p5542_p5 = scmp.ne.s32.totalorder %s97_s20, %s5541_s7  ;;  %p5547_p7 = scmp.lt.s32.totalorder %s5541_s7, %s5541_s7 }
  0x34   :  { %p5548_p8 = por %p5547_p7, %p5546_p6 }
  0x36   :  { %p5549_p9 = pnand %p5548_p8, %p5542_p5 }
  0x38   :  { %5552 = shalt.err (!%p5549_p9)
}
  0x39   :  { %99 = dma.hbm_to_vmem [thread:$0]  %s7092_s9, 32, %s97_s20, [#allocation14]  }
  0x3a   :  { %s5553_s21 = scalar_lea.hbm %s7095_s12, 16 }
  0x3b   :  { %p5554_p10 = scmp.ne.s32.totalorder %s7095_s12, %s5553_s21  ;;  %p5557_p11 = scmp.lt.u32.totalorder %s5553_s21, %s7095_s12 }
  0x3d   :  { %p5559_p12 = pnand %p5557_p11, %p5554_p10 }
  0x3f   :  { %5562 = shalt.err (!%p5559_p12)
}
  0x40   :  { %s5563_s29 = scalar_lea.vmem %s119_s23, 16  ;;  %s5567_s30 = scalar_lea.vmem %s119_s23, 32 }
  0x41   :  { %p5564_p13 = scmp.ne.s32.totalorder %s119_s23, %s5563_s29  ;;  %p5568_p0 = scmp.lt.s32.totalorder %s119_s23, %s119_s23 }
  0x42   :  { %p5569_p1 = scmp.lt.s32.totalorder %s5567_s30, %s5563_s29 }
  0x44   :  { %p5570_p2 = por %p5569_p1, %p5568_p0 }
  0x46   :  { %p5571_p3 = pnand %p5570_p2, %p5564_p13 }
  0x48   :  { %5574 = shalt.err (!%p5571_p3)
}
  0x49   :  { %121 = dma.hbm_to_vmem [thread:$0]  %s7095_s12, 16, %s119_s23, [#allocation17]  }
  0x4a   :  { %s5749_s0 = smov [#allocation4]   ;;  %s5750_s24 = smov [#allocation9]  }
  0x4b   :  { %s41_s7 = sshll.u32 %s5749_s0, 4  ;;  %s66_s5 = sshll.u32 %s5750_s24, 4  ;;  %s42_s7 = int_to_ptr.vmem [resolvable:$true] %s41_s7  ;;  %s67_s5 = int_to_ptr.vmem [resolvable:$true] %s66_s5 }
  0x4c   :  { %s5575_s21 = scalar_lea.hbm %s7087_s4, 256 }
  0x4d   :  { %p5576_p4 = scmp.ne.s32.totalorder %s7087_s4, %s5575_s21  ;;  %p5579_p5 = scmp.lt.u32.totalorder %s5575_s21, %s7087_s4 }
  0x4f   :  { %p5581_p6 = pnand %p5579_p5, %p5576_p4 }
  0x51   :  { %5584 = shalt.err (!%p5581_p6)
}
  0x52   :  { %s5585_s12 = scalar_lea.vmem %s42_s7, 256  ;;  %p5590_p8 = scmp.lt.s32.totalorder %s42_s7, %s42_s7 }
  0x53   :  { %p5586_p7 = scmp.ne.s32.totalorder %s42_s7, %s5585_s12  ;;  %p5591_p9 = scmp.lt.s32.totalorder %s5585_s12, %s5585_s12 }
  0x55   :  { %p5592_p10 = por %p5591_p9, %p5590_p8 }
  0x57   :  { %p5593_p11 = pnand %p5592_p10, %p5586_p7 }
  0x59   :  { %5596 = shalt.err (!%p5593_p11)
}
  0x5a   :  { %47 = dma.hbm_to_vmem [thread:$0]  %s7087_s4, 256, %s42_s7, [#allocation5], %s5745_s18, %s5745_s18, %s5746_s19  }
  0x5b   :  { %s5597_s20 = scalar_lea.hbm %s7089_s6, 16 }
  0x5c   :  { %p5598_p12 = scmp.ne.s32.totalorder %s7089_s6, %s5597_s20  ;;  %p5601_p13 = scmp.lt.u32.totalorder %s5597_s20, %s7089_s6 }
  0x5e   :  { %p5603_p0 = pnand %p5601_p13, %p5598_p12 }
  0x60   :  { %5606 = shalt.err (!%p5603_p0)
}
  0x61   :  { %s5607_s21 = scalar_lea.vmem %s67_s5, 16  ;;  %s5611_s25 = scalar_lea.vmem %s67_s5, 32 }
  0x62   :  { %p5608_p1 = scmp.ne.s32.totalorder %s67_s5, %s5607_s21  ;;  %p5612_p2 = scmp.lt.s32.totalorder %s67_s5, %s67_s5 }
  0x63   :  { %p5613_p3 = scmp.lt.s32.totalorder %s5611_s25, %s5607_s21 }
  0x65   :  { %p5614_p4 = por %p5613_p3, %p5612_p2 }
  0x67   :  { %p5615_p5 = pnand %p5614_p4, %p5608_p1 }
  0x69   :  { %5618 = shalt.err (!%p5615_p5)
}
  0x6a   :  { %69 = dma.hbm_to_vmem [thread:$0]  %s7089_s6, 16, %s67_s5, [#allocation8]  }
  0x6b   :  { %s5751_s19 = smov [#allocation12]   ;;  %s5752_s26 = smov [#allocation15]  }
  0x6c   :  { %s86_s7 = sshll.u32 %s5751_s19, 4  ;;  %s106_s27 = sshll.u32 %s5752_s26, 4  ;;  %s87_s7 = int_to_ptr.vmem [resolvable:$true] %s86_s7  ;;  %s107_s27 = int_to_ptr.vmem [resolvable:$true] %s106_s27 }
  0x6d   :  { %s5619_s23 = scalar_lea.hbm %s7091_s8, 32 }
  0x6e   :  { %p5620_p6 = scmp.ne.s32.totalorder %s7091_s8, %s5619_s23  ;;  %p5623_p7 = scmp.lt.u32.totalorder %s5619_s23, %s7091_s8 }
  0x70   :  { %p5625_p8 = pnand %p5623_p7, %p5620_p6 }
  0x72   :  { %5628 = shalt.err (!%p5625_p8)
}
  0x73   :  { %s5629_s6 = scalar_lea.vmem %s87_s7, 32  ;;  %p5634_p10 = scmp.lt.s32.totalorder %s87_s7, %s87_s7 }
  0x74   :  { %p5630_p9 = scmp.ne.s32.totalorder %s87_s7, %s5629_s6  ;;  %p5635_p11 = scmp.lt.s32.totalorder %s5629_s6, %s5629_s6 }
  0x76   :  { %p5636_p12 = por %p5635_p11, %p5634_p10 }
  0x78   :  { %p5637_p13 = pnand %p5636_p12, %p5630_p9 }
  0x7a   :  { %5640 = shalt.err (!%p5637_p13)
}
  0x7b   :  { %89 = dma.hbm_to_vmem [thread:$0]  %s7091_s8, 32, %s87_s7, [#allocation11]  }
  0x7c   :  { %s5641_s17 = scalar_lea.hbm %s7093_s10, 32 }
  0x7d   :  { %p5642_p0 = scmp.ne.s32.totalorder %s7093_s10, %s5641_s17  ;;  %p5645_p1 = scmp.lt.u32.totalorder %s5641_s17, %s7093_s10 }
  0x7f   :  { %p5647_p2 = pnand %p5645_p1, %p5642_p0 }
  0x81   :  { %5650 = shalt.err (!%p5647_p2)
}
  0x82   :  { %s5651_s19 = scalar_lea.vmem %s107_s27, 32  ;;  %p5656_p4 = scmp.lt.s32.totalorder %s107_s27, %s107_s27 }
  0x83   :  { %p5652_p3 = scmp.ne.s32.totalorder %s107_s27, %s5651_s19  ;;  %p5657_p5 = scmp.lt.s32.totalorder %s5651_s19, %s5651_s19 }
  0x85   :  { %p5658_p6 = por %p5657_p5, %p5656_p4 }
  0x87   :  { %p5659_p7 = pnand %p5658_p6, %p5652_p3 }
  0x89   :  { %5662 = shalt.err (!%p5659_p7)
}
  0x8a   :  { %109 = dma.hbm_to_vmem [thread:$0]  %s7093_s10, 32, %s107_s27, [#allocation14]  }
  0x8b   :  { %s5753_s26 = smov [#allocation18]   ;;  %s5754_s12 = smov [#allocation19]  }
  0x8c   :  { %s128_s28 = sshll.u32 %s5753_s26, 4  ;;  %s138_s23 = sshll.u32 %s5754_s12, 4  ;;  %s129_s28 = int_to_ptr.vmem [resolvable:$true] %s128_s28  ;;  %s139_s23 = int_to_ptr.vmem [resolvable:$true] %s138_s23 }
  0x8d   :  { %s5663_s9 = scalar_lea.hbm %s7096_s13, 16 }
  0x8e   :  { %p5664_p8 = scmp.ne.s32.totalorder %s7096_s13, %s5663_s9  ;;  %p5667_p9 = scmp.lt.u32.totalorder %s5663_s9, %s7096_s13 }
  0x90   :  { %p5669_p10 = pnand %p5667_p9, %p5664_p8 }
  0x92   :  { %5672 = shalt.err (!%p5669_p10)
}
  0x93   :  { %s5673_s10 = scalar_lea.vmem %s129_s28, 16  ;;  %s5677_s27 = scalar_lea.vmem %s129_s28, 32 }
  0x94   :  { %p5674_p11 = scmp.ne.s32.totalorder %s129_s28, %s5673_s10  ;;  %p5678_p12 = scmp.lt.s32.totalorder %s129_s28, %s129_s28 }
  0x95   :  { %p5679_p13 = scmp.lt.s32.totalorder %s5677_s27, %s5673_s10 }
  0x97   :  { %p5680_p0 = por %p5679_p13, %p5678_p12 }
  0x99   :  { %p5681_p1 = pnand %p5680_p0, %p5674_p11 }
  0x9b   :  { %5684 = shalt.err (!%p5681_p1)
}
  0x9c   :  { %131 = dma.hbm_to_vmem [thread:$0]  %s7096_s13, 16, %s129_s28, [#allocation17]  }
  0x9d   :  { %s5685_s25 = scalar_lea.hbm %s7097_s14, 16 }
  0x9e   :  { %p5686_p2 = scmp.ne.s32.totalorder %s7097_s14, %s5685_s25  ;;  %p5689_p3 = scmp.lt.u32.totalorder %s5685_s25, %s7097_s14 }
  0xa0   :  { %p5691_p4 = pnand %p5689_p3, %p5686_p2 }
  0xa2   :  { %5694 = shalt.err (!%p5691_p4)
}
  0xa3   :  { %s5695_s7 = scalar_lea.vmem %s139_s23, 16  ;;  %s5699_s26 = scalar_lea.vmem %s139_s23, 32 }
  0xa4   :  { %p5696_p5 = scmp.ne.s32.totalorder %s139_s23, %s5695_s7  ;;  %p5700_p6 = scmp.lt.s32.totalorder %s139_s23, %s139_s23 }
  0xa5   :  { %p5701_p7 = scmp.lt.s32.totalorder %s5699_s26, %s5695_s7 }
  0xa7   :  { %p5702_p8 = por %p5701_p7, %p5700_p6 }
  0xa9   :  { %p5703_p9 = pnand %p5702_p8, %p5696_p5 }
  0xab   :  { %5706 = shalt.err (!%p5703_p9)
}
  0xac   :  { %141 = dma.hbm_to_vmem [thread:$0]  %s7097_s14, 16, %s139_s23, [#allocation20]  }
  0xad   :  { %5729 = dma.done.wait [#allocation5], 256  }
  0xae   :  { %5730 = vsyncadd [#allocation5], 4294967040 }
  0xaf   :  { %5731 = dma.done.wait [#allocation8], 272  }
  0xb0   :  { %5732 = vsyncadd [#allocation8], 4294967024 }
  0xb1   :  { %5733 = dma.done.wait [#allocation11], 64  }
  0xb2   :  { %5734 = vsyncadd [#allocation11], 4294967232 }
  0xb3   :  { %5735 = dma.done.wait [#allocation14], 64  }
  0xb4   :  { %5736 = vsyncadd [#allocation14], 4294967232 }
  0xb5   :  { %5737 = dma.done.wait [#allocation17], 32  }
  0xb6   :  { %5738 = vsyncadd [#allocation17], 4294967264 }
  0xb7   :  { %5739 = dma.done.wait [#allocation20], 16  }
  0xb8   :  { %5740 = vsyncadd [#allocation20], 4294967280  ;;  %v5755_v0 = vmov 0.0|0.0   ;;  %vm5756_vm0 = vmmov 0   ;;  %v5757_v1 = vmov 0.0   ;;  %v188_v2 = vld [vmem:[%s7086_s3] sm:$0xff] }
  0xb9   :  { %5059 = vmatprep.subr.bf16.mxu1 %v5755_v0  ;;  %4806 = vmatprep.mubr.msk.f32.mxu1 %vm5756_vm0, %v5757_v1  ;;  %v189_v3 = vld [vmem:[%s7086_s3 + $0x8] sm:$0xff]  ;;  %v190_v4 = vld [vmem:[%s7086_s3 + $0x10] sm:$0xff]  ;;  %v191_v6 = vld [vmem:[%s7086_s3 + $0x18] sm:$0xff]  ;;  %s7102_s10 = sld [smem:[#allocation29_spill]]  ;;  %vm295_vm1 = vcmask 130048   ;;  %vm199_vm2 = vcmask 261120  }
  0xba   :  { %v5051_v5 = vpack.c.bf16 %v189_v3, %v188_v2  ;;  %v289_v7 = vld [vmem:[#allocation4] sm:$0xff]  ;;  %v290_v8 = vld [vmem:[#allocation4 + $0x8] sm:$0xff]  ;;  %v5055_v9 = vpack.c.bf16 %v191_v6, %v190_v4  ;;  %s5758_s28 = smov 16   ;;  %s5759_s14 = smov 96   ;;  %v5760_v51 = vmov 0   ;;  %vm439_vm3 = vcmask 1041409  }
  0xbb   :  { %v5994_v10 = vpack.c.bf16 %v290_v8, %v289_v7  ;;  %v6012_v17 = vld [vmem:[#allocation10] sm:$0x3]  ;;  %v6020_v22 = vld [vmem:[#allocation12] sm:$0x3]  ;;  %v4583_v30 = vld [vmem:[#allocation9] ss:$0 sm:$0xff]  ;;  %5184 = vset.pattern.permute.xlu0 %v5760_v51  ;;  %5185 = vset.pattern.permute.xlu1 %v5760_v51 }
  0xbc   :  { %5052 = vmatprep.subr.bf16.mxu0 %v5051_v5  ;;  %v390_v24 = vrot.slane %v6020_v22, 1  ;;  %s5761_s12 = smov 32   ;;  %v281_v62 = vld [vmem:[%s7084_s1] sm:$0x3]  ;;  %s5762_s30 = smov 112   ;;  %vm463_vm4 = vcmask 123904  }
  0xbd   :  { %5054 = vmatpush3.bf16.msra.mxu0 %v5051_v5  ;;  %5061 = vmatpush3.bf16.msra.mxu1 %v5994_v10  ;;  %v445_v2 = vsub.f32 1.0, %v281_v62  ;;  %s5763_s9 = smov 80   ;;  %s5764_s3 = smov 64   ;;  %vm3190_vm5 = vcmask 171008   ;;  %vm3193_vm6 = vcmask 167936   ;;  %vm3282_vm8 = vcmask 164864  }
  0xbe   :  { %5056 = vmatprep.subr.bf16.mxu0 %v5055_v9  ;;  %5062 = vmatprep.subr.bf16.mxu1 %v5755_v0  ;;  %s5765_s8 = smov 48   ;;  %vm3289_vm10 = vcmask 1044480  }
  0xbf   :  { %v174_v11 = vld [vmem:[%s7102_s10] sm:$0xff]  ;;  %v176_v12 = vld [vmem:[%s7102_s10 + $0x10] sm:$0xff]  ;;  %v175_v16 = vld [vmem:[%s7102_s10 + $0x8] sm:$0xff]  ;;  %393 = vrot.lane.b32.xlu1 %v390_v24, %s5758_s28 }
  0xc0   :  { %v178_v13 = vld [vmem:[%s7102_s10 + $0x20] sm:$0xff]  ;;  %v180_v14 = vld [vmem:[%s7102_s10 + $0x30] sm:$0xff]  ;;  %v182_v15 = vadd.f32 %v176_v12, %v174_v11  ;;  %v177_v18 = vld [vmem:[%s7102_s10 + $0x18] sm:$0xff]  ;;  %4807 = vmatmul.mubr.msk.f32.vlgmr.msra.gmra.mrb[0].mxu1 %vm295_vm1, %v6012_v17 }
  0xc1   :  { %v179_v19 = vld [vmem:[%s7102_s10 + $0x28] sm:$0xff]  ;;  %v183_v21 = vadd.f32 %v177_v18, %v175_v16  ;;  %v181_v23 = vld [vmem:[%s7102_s10 + $0x38] sm:$0xff]  ;;  %5058 = vmatpush3.bf16.msra.mxu0 %v5055_v9  ;;  %5064 = vmatpush3.bf16.msra.mxu1 %v5994_v10 }
  0xc2   :  { %v184_v20 = vadd.f32 %v182_v15, %v178_v13  ;;  %4813 = vmatprep.mubr.msk.f32.mxu1 %vm5756_vm0, %v5757_v1  ;;  %5065 = vmatprep.subr.bf16.mxu0 %v5755_v0 }
  0xc3   :  { %v185_v26 = vadd.f32 %v183_v21, %v179_v19  ;;  %5068 = vmatprep.subr.bf16.mxu1 %v5755_v0  ;;  %391 = vrot.lane.b32.xlu1 %v6020_v22, %s5758_s28 }
  0xc4   :  { %v186_v25 = vadd.f32 %v184_v20, %v180_v14 }
  0xc5   :  { %v187_v27 = vadd.f32 %v185_v26, %v181_v23 }
  0xc6   :  { %4799 = vmatprep.mubr.msk.f32.mxu0 %vm199_vm2, %v186_v25 }
  0xc7   :  { %4800 = vmatmul.mubr.msk.f32.vlgmr.msra.gmra.mrb[0].mxu0 %vm199_vm2, %v187_v27 }
  0xc8   :  { %5067 = vmatpush3.bf16.msra.mxu0 %v5994_v10  ;;  %4820 = vmatprep.mubr.msk.f32.mxu0 %vm5756_vm0, %v5757_v1 }
  0xc9   :  { %5071 = vmatprep.subr.bf16.mxu0 %v5755_v0 }
 0x131   :  { %v394_v53 = vpop.permute.xlu1 %393 }
 0x135   :  { %v392_v55 = vpop.permute.xlu1 %391 }
 0x193   :  { %v365_v28 = vpop.f32.mrb[0].mxu1 }
 0x194   :  { %v4808_v29 = vpop.f32.mrb[1].mxu1  ;;  %v370_v31 = vrot.slane %v365_v28, 1 }
 0x19a   :  { %v4801_v32 = vpop.f32.mrb[0].mxu0 }
 0x19b   :  { %v6043_v33 = vadd.f32 %v4801_v32, %v4583_v30  ;;  %v272_v34 = vpop.f32.mrb[1].mxu0 }
 0x19c   :  { %v6045_v35 = vadd.f32 %v4583_v30, %v272_v34 }
 0x19d   :  { %v374_v36 = vadd.f32 %v370_v31, %v6043_v33 }
 0x19e   :  { %v373_v37 = vadd.f32 %v365_v28, %v6045_v35 }
 0x19f   :  { %5186 = vtanh.f32 %v374_v36  ;;  %v4588_v40 = vmul.f32 -1.442695, %v374_v36 }
 0x1a0   :  { %5188 = vtanh.f32 %v373_v37  ;;  %v4587_v41 = vmul.f32 -1.442695, %v373_v37 }
 0x1a1   :  { %5190 = vpow2.f32 %v4588_v40 }
 0x1a2   :  { %5192 = vpow2.f32 %v4587_v41 }
 0x1a9   :  { %v5187_v38 = vpop.eup %5186 }
 0x1aa   :  { %403 = vrot.lane.b32.xlu0 %v5187_v38, %s5759_s14  ;;  %v5189_v39 = vpop.eup %5188 }
 0x1ab   :  { %v5191_v42 = vpop.eup %5190 }
 0x1ac   :  { %v382_v43 = vadd.f32 1.0, %v5191_v42  ;;  %v5193_v44 = vpop.eup %5192 }
 0x1ad   :  { %v381_v45 = vadd.f32 1.0, %v5193_v44 }
 0x1ae   :  { %401 = vrot.lane.b32.xlu0 %v5189_v39, %s5759_s14  ;;  %5194 = vrcp.f32 %v382_v43 }
 0x1af   :  { %5196 = vrcp.f32 %v381_v45 }
 0x1b8   :  { %v5195_v46 = vpop.eup %5194 }
 0x1b9   :  { %v5197_v49 = vpop.eup %5196  ;;  %v398_v54 = vmul.f32 %v5195_v46, %v394_v53  ;;  %v282_v53 = vld [vmem:[%s7084_s1 + $0x2] sm:$0x3] }
 0x1ba   :  { %v397_v58 = vmul.f32 %v5197_v49, %v392_v55  ;;  %v613_v55 = vsub.f32 1.0, %v282_v53 }
 0x21c   :  { %v404_v47 = vpop.permute.xlu0 %403 }
 0x21d   :  { %v408_v48 = vmul.f32 %v5195_v46, %v404_v47 }
 0x21f   :  { %413 = vrot.lane.b32.xlu0 %v408_v48, %s5758_s28 }
 0x220   :  { %v402_v50 = vpop.permute.xlu0 %401 }
 0x221   :  { %v407_v52 = vmul.f32 %v5197_v49, %v402_v50 }
 0x223   :  { %411 = vrot.lane.b32.xlu1 %v407_v52, %s5758_s28 }
 0x291   :  { %v414_v56 = vpop.permute.xlu0 %413 }
 0x292   :  { %v418_v57 = vadd.f32 %v414_v56, %v398_v54 }
 0x294   :  { %5198 = vtanh.f32 %v418_v57  ;;  %v455_v3 = vrot.slane %v418_v57, 7 }
 0x295   :  { %v412_v59 = vpop.permute.xlu1 %411 }
 0x296   :  { %v417_v60 = vadd.f32 %v412_v59, %v397_v58 }
 0x298   :  { %5200 = vtanh.f32 %v417_v60  ;;  %v456_v4 = vsel %vm439_vm3, %v455_v3, %v417_v60 }
 0x29e   :  { %v5199_v61 = vpop.eup %5198 }
 0x29f   :  { %425 = vrot.lane.b32.xlu0 %v5199_v61, %s5761_s12 }
 0x2a2   :  { %v5201_v63 = vpop.eup %5200 }
 0x2a3   :  { %433 = vperm.xlu0 %5184, %v281_v62   ;;  %423 = vrot.lane.b32.xlu1 %v5201_v63, %s5761_s12 }
 0x2a7   :  { %457 = vrot.lane.b32.xlu0 %v456_v4, %s5762_s30  ;;  %448 = vperm.xlu1 %5185, %v445_v2  }
 0x311   :  { %v426_v5 = vpop.permute.xlu0 %425 }
 0x312   :  { %v430_v6 = vmul.f32 %v5195_v46, %v426_v5 }
 0x314   :  { %v438_v8 = vrot.slane %v430_v6, 7 }
 0x315   :  { %v424_v7 = vpop.permute.xlu1 %423 }
 0x316   :  { %v429_v9 = vmul.f32 %v5197_v49, %v424_v7 }
 0x318   :  { %v440_v11 = vsel %vm439_vm3, %v438_v8, %v429_v9 }
 0x319   :  { %441 = vrot.lane.b32.xlu1 %v440_v11, %s5763_s9 }
 0x322   :  { %v6064_v13 = vpop.permute.xlu0 %433 }
 0x326   :  { %v449_v12 = vpop.permute.xlu1 %448  ;;  %v458_v24 = vpop.permute.xlu0 %457 }
 0x327   :  { %v451_v15 = vmul.f32 %v449_v12, %v6012_v17  ;;  %v460_v25 = vmul.f32 %v458_v24, %v6064_v13  ;;  %v461_v26 = vmul.f32 %v449_v12, %v6020_v22 }
 0x329   :  { %v6082_v28 = vadd.f32 %v461_v26, %v460_v25 }
 0x32b   :  { %v559_v30 = vrot.slane %v6082_v28, 7 }
 0x38b   :  { %v442_v14 = vpop.permute.xlu1 %441 }
 0x38c   :  { %v444_v16 = vmul.f32 %v442_v14, %v6064_v13 }
 0x38e   :  { %v6068_v18 = vadd.f32 %v451_v15, %v444_v16  ;;  %464 = vst.msk [vmem:[#allocation2] sm:$0x3] %vm463_vm4, %v444_v16 }
 0x390   :  { %4814 = vmatmul.mubr.msk.f32.vlgmr.msra.gmra.mrb[2].mxu1 %vm295_vm1, %v6068_v18 }
 0x391   :  { %5070 = vmatpush3.bf16.msra.mxu1 %v5994_v10  ;;  %4827 = vmatprep.mubr.msk.f32.mxu1 %vm5756_vm0, %v5757_v1 }
 0x392   :  { %5074 = vmatprep.subr.bf16.mxu1 %v5755_v0 }
 0x463   :  { %v534_v19 = vpop.f32.mrb[2].mxu1 }
 0x464   :  { %v539_v20 = vrot.slane %v534_v19, 7  ;;  %v543_v17 = vadd.f32 %v534_v19, %v6043_v33  ;;  %v4815_v21 = vpop.f32.mrb[3].mxu1 }
 0x466   :  { %v542_v23 = vadd.f32 %v539_v20, %v6045_v35  ;;  %5202 = vtanh.f32 %v543_v17  ;;  %v4591_v31 = vmul.f32 -1.442695, %v543_v17 }
 0x468   :  { %5204 = vtanh.f32 %v542_v23  ;;  %v4590_v32 = vmul.f32 -1.442695, %v542_v23 }
 0x469   :  { %5206 = vpow2.f32 %v4591_v31 }
 0x46a   :  { %5208 = vpow2.f32 %v4590_v32 }
 0x470   :  { %v5203_v27 = vpop.eup %5202 }
 0x471   :  { %572 = vrot.lane.b32.xlu0 %v5203_v27, %s5759_s14 }
 0x472   :  { %v5205_v29 = vpop.eup %5204 }
 0x473   :  { %570 = vrot.lane.b32.xlu1 %v5205_v29, %s5759_s14  ;;  %v5207_v22 = vpop.eup %5206 }
 0x474   :  { %v5209_v34 = vpop.eup %5208  ;;  %v551_v36 = vadd.f32 1.0, %v5207_v22 }
 0x475   :  { %562 = vrot.lane.b32.xlu0 %v6082_v28, %s5758_s28  ;;  %v550_v37 = vadd.f32 1.0, %v5209_v34 }
 0x476   :  { %5210 = vrcp.f32 %v551_v36 }
 0x477   :  { %560 = vrot.lane.b32.xlu1 %v559_v30, %s5758_s28  ;;  %5212 = vrcp.f32 %v550_v37 }
 0x480   :  { %v5211_v38 = vpop.eup %5210 }
 0x481   :  { %v5213_v41 = vpop.eup %5212 }
 0x4e3   :  { %v573_v39 = vpop.permute.xlu0 %572 }
 0x4e4   :  { %v577_v40 = vmul.f32 %v5211_v38, %v573_v39 }
 0x4e5   :  { %v571_v42 = vpop.permute.xlu1 %570 }
 0x4e6   :  { %582 = vrot.lane.b32.xlu0 %v577_v40, %s5758_s28  ;;  %v576_v43 = vmul.f32 %v5213_v41, %v571_v42 }
 0x4e7   :  { %v563_v44 = vpop.permute.xlu0 %562 }
 0x4e8   :  { %580 = vrot.lane.b32.xlu1 %v576_v43, %s5758_s28  ;;  %v567_v45 = vmul.f32 %v5211_v38, %v563_v44 }
 0x4e9   :  { %v561_v46 = vpop.permute.xlu1 %560 }
 0x4ea   :  { %v566_v49 = vmul.f32 %v5213_v41, %v561_v46 }
 0x558   :  { %v583_v47 = vpop.permute.xlu0 %582 }
 0x559   :  { %v587_v48 = vadd.f32 %v583_v47, %v567_v45  ;;  %v283_v47 = vld [vmem:[%s7084_s1 + $0x4] sm:$0x3] }
 0x55a   :  { %v581_v50 = vpop.permute.xlu1 %580 }
 0x55b   :  { %5214 = vtanh.f32 %v587_v48  ;;  %v586_v52 = vadd.f32 %v581_v50, %v566_v49  ;;  %v784_v50 = vsub.f32 1.0, %v283_v47 }
 0x55d   :  { %5216 = vtanh.f32 %v586_v52  ;;  %v623_v57 = vrot.slane %v586_v52, 1 }
 0x55f   :  { %v624_v58 = vsel %vm439_vm3, %v587_v48, %v623_v57 }
 0x565   :  { %v5215_v54 = vpop.eup %5214 }
 0x566   :  { %594 = vrot.lane.b32.xlu0 %v5215_v54, %s5761_s12 }
 0x567   :  { %v5217_v56 = vpop.eup %5216 }
 0x568   :  { %592 = vrot.lane.b32.xlu1 %v5217_v56, %s5761_s12 }
 0x56a   :  { %616 = vperm.xlu0 %5184, %v613_v55  }
 0x56c   :  { %602 = vperm.xlu1 %5185, %v282_v53  }
 0x56e   :  { %625 = vrot.lane.b32.xlu0 %v624_v58, %s5762_s30 }
 0x5d8   :  { %v595_v59 = vpop.permute.xlu0 %594 }
 0x5d9   :  { %v599_v62 = vmul.f32 %v5211_v38, %v595_v59 }
 0x5da   :  { %v593_v60 = vpop.permute.xlu1 %592 }
 0x5db   :  { %v598_v61 = vmul.f32 %v5213_v41, %v593_v60 }
 0x5dd   :  { %v607_v63 = vrot.slane %v598_v61, 1 }
 0x5df   :  { %v608_v2 = vsel %vm439_vm3, %v599_v62, %v607_v63 }
 0x5e0   :  { %609 = vrot.lane.b32.xlu1 %v608_v2, %s5763_s9 }
 0x5e9   :  { %v6102_v4 = vpop.permute.xlu0 %616 }
 0x5ea   :  { %v619_v6 = vmul.f32 %v6102_v4, %v6068_v18  ;;  %v629_v20 = vmul.f32 %v6102_v4, %v6082_v28 }
 0x5eb   :  { %v6100_v3 = vpop.permute.xlu1 %602 }
 0x5ed   :  { %v626_v18 = vpop.permute.xlu0 %625 }
 0x5ee   :  { %v628_v19 = vmul.f32 %v626_v18, %v6100_v3 }
 0x5f0   :  { %v6121_v17 = vadd.f32 %v629_v20, %v628_v19 }
 0x5f2   :  { %v728_v24 = vrot.slane %v6121_v17, 6  ;;  %v729_v25 = vrot.slane %v6121_v17, 7 }
 0x652   :  { %v610_v5 = vpop.permute.xlu1 %609 }
 0x653   :  { %v612_v7 = vmul.f32 %v610_v5, %v6100_v3 }
 0x655   :  { %v6107_v8 = vadd.f32 %v619_v6, %v612_v7  ;;  %632 = vst.msk [vmem:[#allocation2 + $0x2] sm:$0x3] %vm463_vm4, %v612_v7 }
 0x657   :  { %4821 = vmatmul.mubr.msk.f32.vlgmr.msra.gmra.mrb[2].mxu0 %vm295_vm1, %v6107_v8 }
 0x658   :  { %5073 = vmatpush3.bf16.msra.mxu0 %v5994_v10  ;;  %4834 = vmatprep.mubr.msk.f32.mxu0 %vm5756_vm0, %v5757_v1 }
 0x659   :  { %5077 = vmatprep.subr.bf16.mxu0 %v5755_v0 }
 0x72a   :  { %v702_v9 = vpop.f32.mrb[2].mxu0 }
 0x72b   :  { %v707_v11 = vrot.slane %v702_v9, 6  ;;  %v708_v12 = vrot.slane %v702_v9, 7  ;;  %v4822_v14 = vpop.f32.mrb[3].mxu0 }
 0x72d   :  { %v711_v15 = vadd.f32 %v707_v11, %v6045_v35  ;;  %v712_v16 = vadd.f32 %v708_v12, %v6043_v33 }
 0x72f   :  { %5218 = vtanh.f32 %v711_v15  ;;  %v4593_v26 = vmul.f32 -1.442695, %v711_v15  ;;  %v4594_v27 = vmul.f32 -1.442695, %v712_v16 }
 0x730   :  { %5220 = vtanh.f32 %v712_v16 }
 0x731   :  { %5222 = vpow2.f32 %v4593_v26 }
 0x732   :  { %5224 = vpow2.f32 %v4594_v27 }
 0x739   :  { %v5219_v21 = vpop.eup %5218 }
 0x73a   :  { %v5221_v23 = vpop.eup %5220  ;;  %740 = vrot.lane.b32.xlu1 %v5219_v21, %s5759_s14 }
 0x73b   :  { %742 = vrot.lane.b32.xlu0 %v5221_v23, %s5759_s14  ;;  %v5223_v28 = vpop.eup %5222 }
 0x73c   :  { %v5225_v29 = vpop.eup %5224  ;;  %v719_v30 = vadd.f32 1.0, %v5223_v28 }
 0x73d   :  { %v720_v31 = vadd.f32 1.0, %v5225_v29 }
 0x73e   :  { %730 = vrot.lane.b32.xlu1 %v728_v24, %s5758_s28  ;;  %5226 = vrcp.f32 %v719_v30 }
 0x73f   :  { %732 = vrot.lane.b32.xlu0 %v729_v25, %s5758_s28  ;;  %5228 = vrcp.f32 %v720_v31 }
 0x748   :  { %v5227_v32 = vpop.eup %5226 }
 0x749   :  { %v5229_v34 = vpop.eup %5228 }
 0x7ac   :  { %v741_v22 = vpop.permute.xlu1 %740 }
 0x7ad   :  { %v743_v36 = vpop.permute.xlu0 %742  ;;  %v746_v37 = vmul.f32 %v5227_v32, %v741_v22 }
 0x7ae   :  { %v747_v38 = vmul.f32 %v5229_v34, %v743_v36 }
 0x7af   :  { %750 = vrot.lane.b32.xlu1 %v746_v37, %s5758_s28 }
 0x7b0   :  { %752 = vrot.lane.b32.xlu0 %v747_v38, %s5758_s28  ;;  %v731_v39 = vpop.permute.xlu1 %730 }
 0x7b1   :  { %v733_v40 = vpop.permute.xlu0 %732  ;;  %v736_v41 = vmul.f32 %v5227_v32, %v731_v39 }
 0x7b2   :  { %v737_v42 = vmul.f32 %v5229_v34, %v733_v40 }
 0x821   :  { %v751_v43 = vpop.permute.xlu1 %750 }
 0x822   :  { %v753_v44 = vpop.permute.xlu0 %752  ;;  %v756_v45 = vadd.f32 %v751_v43, %v736_v41 }
 0x823   :  { %v757_v46 = vadd.f32 %v753_v44, %v737_v42 }
 0x824   :  { %5230 = vtanh.f32 %v756_v45  ;;  %v794_v53 = vrot.slane %v756_v45, 2 }
 0x825   :  { %5232 = vtanh.f32 %v757_v46  ;;  %v795_v52 = vrot.slane %v757_v46, 1  ;;  %v284_v46 = vld [vmem:[%s7084_s1 + $0x6] sm:$0x3] }
 0x827   :  { %v796_v54 = vsel %vm439_vm3, %v795_v52, %v794_v53 }
 0x82e   :  { %v5231_v48 = vpop.eup %5230 }
 0x82f   :  { %v5233_v49 = vpop.eup %5232  ;;  %762 = vrot.lane.b32.xlu1 %v5231_v48, %s5761_s12 }
 0x830   :  { %764 = vrot.lane.b32.xlu0 %v5233_v49, %s5761_s12  ;;  %v956_v49 = vsub.f32 1.0, %v284_v46 }
 0x833   :  { %772 = vperm.xlu1 %5185, %v283_v47  }
 0x834   :  { %787 = vperm.xlu0 %5184, %v784_v50  }
 0x838   :  { %797 = vrot.lane.b32.xlu0 %v796_v54, %s5762_s30 }
 0x8a1   :  { %v763_v55 = vpop.permute.xlu1 %762 }
 0x8a2   :  { %v765_v56 = vpop.permute.xlu0 %764  ;;  %v768_v57 = vmul.f32 %v5227_v32, %v763_v55 }
 0x8a3   :  { %v769_v58 = vmul.f32 %v5229_v34, %v765_v56 }
 0x8a4   :  { %v777_v59 = vrot.slane %v768_v57, 2 }
 0x8a5   :  { %v778_v60 = vrot.slane %v769_v58, 1 }
 0x8a7   :  { %v779_v61 = vsel %vm439_vm3, %v778_v60, %v777_v59 }
 0x8a8   :  { %780 = vrot.lane.b32.xlu1 %v779_v61, %s5763_s9 }
 0x8b2   :  { %v6140_v62 = vpop.permute.xlu1 %772 }
 0x8b3   :  { %v6142_v63 = vpop.permute.xlu0 %787 }
 0x8b4   :  { %v790_v5 = vmul.f32 %v6142_v63, %v6107_v8  ;;  %v801_v19 = vmul.f32 %v6142_v63, %v6121_v17 }
 0x8b7   :  { %v798_v16 = vpop.permute.xlu0 %797 }
 0x8b8   :  { %v800_v18 = vmul.f32 %v798_v16, %v6140_v62 }
 0x8ba   :  { %v6161_v20 = vadd.f32 %v801_v19, %v800_v18 }
 0x8bc   :  { %v900_v24 = vrot.slane %v6161_v20, 5  ;;  %v901_v25 = vrot.slane %v6161_v20, 6 }
 0x91a   :  { %v781_v2 = vpop.permute.xlu1 %780 }
 0x91b   :  { %v783_v6 = vmul.f32 %v781_v2, %v6140_v62 }
 0x91d   :  { %v6147_v7 = vadd.f32 %v790_v5, %v783_v6  ;;  %804 = vst.msk [vmem:[#allocation2 + $0x4] sm:$0x3] %vm463_vm4, %v783_v6 }
 0x91f   :  { %4828 = vmatmul.mubr.msk.f32.vlgmr.msra.gmra.mrb[4].mxu1 %vm295_vm1, %v6147_v7 }
 0x920   :  { %5076 = vmatpush3.bf16.msra.mxu1 %v5994_v10  ;;  %4841 = vmatprep.mubr.msk.f32.mxu1 %vm5756_vm0, %v5757_v1 }
 0x921   :  { %5080 = vmatprep.subr.bf16.mxu1 %v5755_v0 }
 0x9f2   :  { %v874_v9 = vpop.f32.mrb[4].mxu1 }
 0x9f3   :  { %v879_v11 = vrot.slane %v874_v9, 5  ;;  %v880_v12 = vrot.slane %v874_v9, 6  ;;  %v4829_v8 = vpop.f32.mrb[5].mxu1 }
 0x9f5   :  { %v883_v14 = vadd.f32 %v879_v11, %v6045_v35  ;;  %v884_v15 = vadd.f32 %v880_v12, %v6043_v33 }
 0x9f7   :  { %5234 = vtanh.f32 %v883_v14  ;;  %v4596_v26 = vmul.f32 -1.442695, %v883_v14  ;;  %v4597_v27 = vmul.f32 -1.442695, %v884_v15 }
 0x9f8   :  { %5236 = vtanh.f32 %v884_v15 }
 0x9f9   :  { %5238 = vpow2.f32 %v4596_v26 }
 0x9fa   :  { %5240 = vpow2.f32 %v4597_v27 }
 0xa01   :  { %v5235_v21 = vpop.eup %5234 }
 0xa02   :  { %v5237_v23 = vpop.eup %5236  ;;  %912 = vrot.lane.b32.xlu1 %v5235_v21, %s5759_s14 }
 0xa03   :  { %914 = vrot.lane.b32.xlu0 %v5237_v23, %s5759_s14  ;;  %v5239_v17 = vpop.eup %5238 }
 0xa04   :  { %v5241_v28 = vpop.eup %5240  ;;  %v891_v29 = vadd.f32 1.0, %v5239_v17 }
 0xa05   :  { %v892_v30 = vadd.f32 1.0, %v5241_v28 }
 0xa06   :  { %902 = vrot.lane.b32.xlu1 %v900_v24, %s5758_s28  ;;  %5242 = vrcp.f32 %v891_v29 }
 0xa07   :  { %904 = vrot.lane.b32.xlu0 %v901_v25, %s5758_s28  ;;  %5244 = vrcp.f32 %v892_v30 }
 0xa10   :  { %v5243_v31 = vpop.eup %5242 }
 0xa11   :  { %v5245_v22 = vpop.eup %5244 }
 0xa74   :  { %v913_v32 = vpop.permute.xlu1 %912 }
 0xa75   :  { %v915_v34 = vpop.permute.xlu0 %914  ;;  %v918_v36 = vmul.f32 %v5243_v31, %v913_v32 }
 0xa76   :  { %v919_v37 = vmul.f32 %v5245_v22, %v915_v34 }
 0xa77   :  { %922 = vrot.lane.b32.xlu1 %v918_v36, %s5758_s28 }
 0xa78   :  { %924 = vrot.lane.b32.xlu0 %v919_v37, %s5758_s28  ;;  %v903_v38 = vpop.permute.xlu1 %902 }
 0xa79   :  { %v905_v39 = vpop.permute.xlu0 %904  ;;  %v908_v40 = vmul.f32 %v5243_v31, %v903_v38 }
 0xa7a   :  { %v909_v41 = vmul.f32 %v5245_v22, %v905_v39 }
 0xae9   :  { %v923_v42 = vpop.permute.xlu1 %922 }
 0xaea   :  { %v925_v43 = vpop.permute.xlu0 %924  ;;  %v928_v44 = vadd.f32 %v923_v42, %v908_v40 }
 0xaeb   :  { %v929_v45 = vadd.f32 %v925_v43, %v909_v41 }
 0xaec   :  { %5246 = vtanh.f32 %v928_v44  ;;  %v966_v52 = vrot.slane %v928_v44, 3 }
 0xaed   :  { %5248 = vtanh.f32 %v929_v45  ;;  %v967_v50 = vrot.slane %v929_v45, 2 }
 0xaef   :  { %v968_v53 = vsel %vm439_vm3, %v967_v50, %v966_v52 }
 0xaf6   :  { %v5247_v47 = vpop.eup %5246 }
 0xaf7   :  { %v5249_v48 = vpop.eup %5248  ;;  %934 = vrot.lane.b32.xlu1 %v5247_v47, %s5761_s12  ;;  %v285_v47 = vld [vmem:[%s7084_s1 + $0x8] sm:$0x3] }
 0xaf8   :  { %936 = vrot.lane.b32.xlu0 %v5249_v48, %s5761_s12  ;;  %v1128_v50 = vsub.f32 1.0, %v285_v47 }
 0xafb   :  { %944 = vperm.xlu1 %5185, %v284_v46  }
 0xafc   :  { %959 = vperm.xlu0 %5184, %v956_v49  }
 0xb00   :  { %969 = vrot.lane.b32.xlu0 %v968_v53, %s5762_s30 }
 0xb69   :  { %v935_v54 = vpop.permute.xlu1 %934 }
 0xb6a   :  { %v937_v55 = vpop.permute.xlu0 %936  ;;  %v940_v56 = vmul.f32 %v5243_v31, %v935_v54 }
 0xb6b   :  { %v941_v57 = vmul.f32 %v5245_v22, %v937_v55 }
 0xb6c   :  { %v949_v58 = vrot.slane %v940_v56, 3 }
 0xb6d   :  { %v950_v59 = vrot.slane %v941_v57, 2 }
 0xb6f   :  { %v951_v60 = vsel %vm439_vm3, %v950_v59, %v949_v58 }
 0xb70   :  { %952 = vrot.lane.b32.xlu1 %v951_v60, %s5763_s9 }
 0xb7a   :  { %v6180_v61 = vpop.permute.xlu1 %944 }
 0xb7b   :  { %v6182_v2 = vpop.permute.xlu0 %959 }
 0xb7c   :  { %v962_v6 = vmul.f32 %v6182_v2, %v6147_v7  ;;  %v973_v21 = vmul.f32 %v6182_v2, %v6161_v20 }
 0xb7f   :  { %v970_v18 = vpop.permute.xlu0 %969 }
 0xb80   :  { %v972_v19 = vmul.f32 %v970_v18, %v6180_v61 }
 0xb82   :  { %v6201_v23 = vadd.f32 %v973_v21, %v972_v19 }
 0xb84   :  { %v1072_v26 = vrot.slane %v6201_v23, 4  ;;  %v1073_v27 = vrot.slane %v6201_v23, 5 }
 0xbe2   :  { %v953_v5 = vpop.permute.xlu1 %952 }
 0xbe3   :  { %v955_v9 = vmul.f32 %v953_v5, %v6180_v61 }
 0xbe5   :  { %v6187_v11 = vadd.f32 %v962_v6, %v955_v9  ;;  %976 = vst.msk [vmem:[#allocation2 + $0x6] sm:$0x3] %vm463_vm4, %v955_v9 }
 0xbe7   :  { %4835 = vmatmul.mubr.msk.f32.vlgmr.msra.gmra.mrb[4].mxu0 %vm295_vm1, %v6187_v11 }
 0xbe8   :  { %5079 = vmatpush3.bf16.msra.mxu0 %v5994_v10  ;;  %4848 = vmatprep.mubr.msk.f32.mxu0 %vm5756_vm0, %v5757_v1 }
 0xbe9   :  { %5083 = vmatprep.subr.bf16.mxu0 %v5755_v0 }
 0xcba   :  { %v1046_v12 = vpop.f32.mrb[4].mxu0 }
 0xcbb   :  { %v1051_v8 = vrot.slane %v1046_v12, 4  ;;  %v1052_v14 = vrot.slane %v1046_v12, 5  ;;  %v4836_v7 = vpop.f32.mrb[5].mxu0 }
 0xcbd   :  { %v1055_v15 = vadd.f32 %v1051_v8, %v6045_v35  ;;  %v1056_v16 = vadd.f32 %v1052_v14, %v6043_v33 }
 0xcbf   :  { %5250 = vtanh.f32 %v1055_v15  ;;  %v4599_v17 = vmul.f32 -1.442695, %v1055_v15  ;;  %v4600_v28 = vmul.f32 -1.442695, %v1056_v16 }
 0xcc0   :  { %5252 = vtanh.f32 %v1056_v16 }
 0xcc1   :  { %5254 = vpow2.f32 %v4599_v17 }
 0xcc2   :  { %5256 = vpow2.f32 %v4600_v28 }
 0xcc9   :  { %v5251_v24 = vpop.eup %5250 }
 0xcca   :  { %v5253_v25 = vpop.eup %5252  ;;  %1084 = vrot.lane.b32.xlu1 %v5251_v24, %s5759_s14 }
 0xccb   :  { %1086 = vrot.lane.b32.xlu0 %v5253_v25, %s5759_s14  ;;  %v5255_v20 = vpop.eup %5254 }
 0xccc   :  { %v5257_v29 = vpop.eup %5256  ;;  %v1063_v30 = vadd.f32 1.0, %v5255_v20 }
 0xccd   :  { %v1064_v31 = vadd.f32 1.0, %v5257_v29 }
 0xcce   :  { %1074 = vrot.lane.b32.xlu1 %v1072_v26, %s5758_s28  ;;  %5258 = vrcp.f32 %v1063_v30 }
 0xccf   :  { %1076 = vrot.lane.b32.xlu0 %v1073_v27, %s5758_s28  ;;  %5260 = vrcp.f32 %v1064_v31 }
 0xcd8   :  { %v5259_v32 = vpop.eup %5258 }
 0xcd9   :  { %v5261_v34 = vpop.eup %5260 }
 0xd3c   :  { %v1085_v22 = vpop.permute.xlu1 %1084 }
 0xd3d   :  { %v1087_v36 = vpop.permute.xlu0 %1086  ;;  %v1090_v37 = vmul.f32 %v5259_v32, %v1085_v22 }
 0xd3e   :  { %v1091_v38 = vmul.f32 %v5261_v34, %v1087_v36 }
 0xd3f   :  { %1094 = vrot.lane.b32.xlu1 %v1090_v37, %s5758_s28 }
 0xd40   :  { %1096 = vrot.lane.b32.xlu0 %v1091_v38, %s5758_s28  ;;  %v1075_v39 = vpop.permute.xlu1 %1074 }
 0xd41   :  { %v1077_v40 = vpop.permute.xlu0 %1076  ;;  %v1080_v41 = vmul.f32 %v5259_v32, %v1075_v39 }
 0xd42   :  { %v1081_v42 = vmul.f32 %v5261_v34, %v1077_v40 }
 0xdb1   :  { %v1095_v43 = vpop.permute.xlu1 %1094 }
 0xdb2   :  { %v1097_v44 = vpop.permute.xlu0 %1096  ;;  %v1100_v45 = vadd.f32 %v1095_v43, %v1080_v41 }
 0xdb3   :  { %v1101_v46 = vadd.f32 %v1097_v44, %v1081_v42 }
 0xdb4   :  { %5262 = vtanh.f32 %v1100_v45  ;;  %v1138_v53 = vrot.slane %v1100_v45, 4 }
 0xdb5   :  { %5264 = vtanh.f32 %v1101_v46  ;;  %v1139_v52 = vrot.slane %v1101_v46, 3 }
 0xdb7   :  { %v1140_v54 = vsel %vm439_vm3, %v1139_v52, %v1138_v53  ;;  %v286_v53 = vld [vmem:[%s7084_s1 + $0xa] sm:$0x3] }
 0xdbe   :  { %v5263_v48 = vpop.eup %5262 }
 0xdbf   :  { %v5265_v49 = vpop.eup %5264  ;;  %1106 = vrot.lane.b32.xlu1 %v5263_v48, %s5761_s12 }
 0xdc0   :  { %1108 = vrot.lane.b32.xlu0 %v5265_v49, %s5761_s12 }
 0xdc3   :  { %1116 = vperm.xlu1 %5185, %v285_v47  }
 0xdc4   :  { %1131 = vperm.xlu0 %5184, %v1128_v50  }
 0xdc8   :  { %1141 = vrot.lane.b32.xlu0 %v1140_v54, %s5762_s30 }
 0xe31   :  { %v1107_v55 = vpop.permute.xlu1 %1106 }
 0xe32   :  { %v1109_v56 = vpop.permute.xlu0 %1108  ;;  %v1112_v57 = vmul.f32 %v5259_v32, %v1107_v55 }
 0xe33   :  { %v1113_v58 = vmul.f32 %v5261_v34, %v1109_v56  ;;  %v1300_v56 = vsub.f32 1.0, %v286_v53 }
 0xe34   :  { %v1121_v59 = vrot.slane %v1112_v57, 4 }
 0xe35   :  { %v1122_v60 = vrot.slane %v1113_v58, 3 }
 0xe37   :  { %v1123_v5 = vsel %vm439_vm3, %v1122_v60, %v1121_v59 }
 0xe38   :  { %1124 = vrot.lane.b32.xlu1 %v1123_v5, %s5763_s9 }
 0xe42   :  { %v6220_v6 = vpop.permute.xlu1 %1116 }
 0xe43   :  { %v6222_v9 = vpop.permute.xlu0 %1131 }
 0xe44   :  { %v1134_v8 = vmul.f32 %v6222_v9, %v6187_v11 }
 0xe47   :  { %v1142_v24 = vpop.permute.xlu0 %1141 }
 0xe48   :  { %v1144_v25 = vmul.f32 %v1142_v24, %v6220_v6 }
 0xeaa   :  { %v1125_v12 = vpop.permute.xlu1 %1124 }
 0xeab   :  { %v1127_v14 = vmul.f32 %v1125_v12, %v6220_v6 }
 0xead   :  { %v6227_v7 = vadd.f32 %v1134_v8, %v1127_v14  ;;  %1148 = vst.msk [vmem:[#allocation2 + $0x8] sm:$0x3] %vm463_vm4, %v1127_v14 }
 0xeaf   :  { %4842 = vmatmul.mubr.msk.f32.vlgmr.msra.gmra.mrb[6].mxu1 %vm295_vm1, %v6227_v7 }
 0xeb0   :  { %5082 = vmatpush3.bf16.msra.mxu1 %v5994_v10  ;;  %4855 = vmatprep.mubr.msk.f32.mxu1 %vm5756_vm0, %v5757_v1  ;;  %v1145_v10 = vmul.f32 %v6222_v9, %v6201_v23 }
 0xeb1   :  { %5086 = vmatprep.subr.bf16.mxu1 %v5755_v0 }
 0xeb2   :  { %v6241_v26 = vadd.f32 %v1145_v10, %v1144_v25  ;;  %v6276_v10 = vld [vmem:[#allocation13] sm:$0x3] }
 0xeb4   :  { %v1244_v28 = vrot.slane %v6241_v26, 3  ;;  %v1245_v20 = vrot.slane %v6241_v26, 4 }
 0xf82   :  { %v1218_v15 = vpop.f32.mrb[6].mxu1 }
 0xf83   :  { %v1223_v16 = vrot.slane %v1218_v15, 3  ;;  %v1224_v18 = vrot.slane %v1218_v15, 4  ;;  %v4843_v11 = vpop.f32.mrb[7].mxu1 }
 0xf85   :  { %v1227_v19 = vadd.f32 %v1223_v16, %v6045_v35  ;;  %v1228_v21 = vadd.f32 %v1224_v18, %v6043_v33  ;;  %v291_v16 = vld [vmem:[#allocation7] sm:$0xff]  ;;  %v292_v18 = vld [vmem:[#allocation7 + $0x8] sm:$0xff] }
 0xf86   :  { %v6266_v24 = vpack.c.bf16 %v292_v18, %v291_v16 }
 0xf87   :  { %5266 = vtanh.f32 %v1227_v19  ;;  %v4602_v29 = vmul.f32 -1.442695, %v1227_v19  ;;  %v4603_v30 = vmul.f32 -1.442695, %v1228_v21 }
 0xf88   :  { %5268 = vtanh.f32 %v1228_v21 }
 0xf89   :  { %5270 = vpow2.f32 %v4602_v29 }
 0xf8a   :  { %5272 = vpow2.f32 %v4603_v30 }
 0xf91   :  { %v5267_v27 = vpop.eup %5266 }
 0xf92   :  { %v5269_v17 = vpop.eup %5268  ;;  %1256 = vrot.lane.b32.xlu1 %v5267_v27, %s5759_s14 }
 0xf93   :  { %1258 = vrot.lane.b32.xlu0 %v5269_v17, %s5759_s14  ;;  %v5271_v23 = vpop.eup %5270 }
 0xf94   :  { %v5273_v31 = vpop.eup %5272  ;;  %v1235_v32 = vadd.f32 1.0, %v5271_v23 }
 0xf95   :  { %v1236_v22 = vadd.f32 1.0, %v5273_v31 }
 0xf96   :  { %1246 = vrot.lane.b32.xlu1 %v1244_v28, %s5758_s28  ;;  %5274 = vrcp.f32 %v1235_v32 }
 0xf97   :  { %1248 = vrot.lane.b32.xlu0 %v1245_v20, %s5758_s28  ;;  %5276 = vrcp.f32 %v1236_v22 }
 0xfa0   :  { %v5275_v34 = vpop.eup %5274 }
 0xfa1   :  { %v5277_v37 = vpop.eup %5276 }
0x1004   :  { %v1257_v36 = vpop.permute.xlu1 %1256 }
0x1005   :  { %v1259_v38 = vpop.permute.xlu0 %1258  ;;  %v1262_v39 = vmul.f32 %v5275_v34, %v1257_v36 }
0x1006   :  { %v1263_v40 = vmul.f32 %v5277_v37, %v1259_v38 }
0x1007   :  { %1266 = vrot.lane.b32.xlu1 %v1262_v39, %s5758_s28 }
0x1008   :  { %1268 = vrot.lane.b32.xlu0 %v1263_v40, %s5758_s28  ;;  %v1247_v41 = vpop.permute.xlu1 %1246 }
0x1009   :  { %v1249_v42 = vpop.permute.xlu0 %1248  ;;  %v1252_v43 = vmul.f32 %v5275_v34, %v1247_v41 }
0x100a   :  { %v1253_v44 = vmul.f32 %v5277_v37, %v1249_v42 }
0x1079   :  { %v1267_v45 = vpop.permute.xlu1 %1266 }
0x107a   :  { %v1269_v46 = vpop.permute.xlu0 %1268  ;;  %v1272_v47 = vadd.f32 %v1267_v45, %v1252_v43 }
0x107b   :  { %v1273_v48 = vadd.f32 %v1269_v46, %v1253_v44 }
0x107c   :  { %5278 = vtanh.f32 %v1272_v47  ;;  %v1310_v49 = vrot.slane %v1272_v47, 5 }
0x107d   :  { %5280 = vtanh.f32 %v1273_v48  ;;  %v1311_v50 = vrot.slane %v1273_v48, 4 }
0x107f   :  { %v1312_v52 = vsel %vm439_vm3, %v1311_v50, %v1310_v49 }
0x1086   :  { %v5279_v54 = vpop.eup %5278 }
0x1087   :  { %v5281_v55 = vpop.eup %5280  ;;  %1278 = vrot.lane.b32.xlu1 %v5279_v54, %s5761_s12 }
0x1088   :  { %1280 = vrot.lane.b32.xlu0 %v5281_v55, %s5761_s12 }
0x108b   :  { %1288 = vperm.xlu1 %5185, %v286_v53  }
0x108c   :  { %1303 = vperm.xlu0 %5184, %v1300_v56  }
0x10f9   :  { %v1279_v57 = vpop.permute.xlu1 %1278 }
0x10fa   :  { %v1281_v58 = vpop.permute.xlu0 %1280  ;;  %v1284_v59 = vmul.f32 %v5275_v34, %v1279_v57 }
0x10fb   :  { %v1285_v60 = vmul.f32 %v5277_v37, %v1281_v58 }
0x10fc   :  { %v1293_v5 = vrot.slane %v1284_v59, 5 }
0x10fd   :  { %v1294_v12 = vrot.slane %v1285_v60, 4 }
0x10ff   :  { %v1295_v8 = vsel %vm439_vm3, %v1294_v12, %v1293_v5 }
0x1100   :  { %1296 = vrot.lane.b32.xlu1 %v1295_v8, %s5763_s9 }
0x110a   :  { %v6259_v14 = vpop.permute.xlu1 %1288 }
0x110b   :  { %v6261_v15 = vpop.permute.xlu0 %1303 }
0x110c   :  { %v1306_v19 = vmul.f32 %v6261_v15, %v6227_v7  ;;  %v1317_v48 = vmul.f32 %v6261_v15, %v6241_v26  ;;  %v6307_v26 = vld [vmem:[#allocation15] sm:$0x3] }
0x110d   :  { %v1747_v5 = vrot.slane %v6307_v26, 1  ;;  %v1748_v12 = vrot.slane %v6307_v26, 2 }
0x1172   :  { %v1297_v11 = vpop.permute.xlu1 %1296 }
0x1173   :  { %v1299_v21 = vmul.f32 %v1297_v11, %v6259_v14 }
0x1175   :  { %v6268_v25 = vadd.f32 %v1306_v19, %v1299_v21  ;;  %1320 = vst.msk [vmem:[#allocation2 + $0xa] sm:$0x3] %vm463_vm4, %v1299_v21 }
0x1177   :  { %4849 = vmatmul.mubr.msk.f32.vlgmr.msra.gmra.mrb[6].mxu0 %vm295_vm1, %v6268_v25 }
0x1178   :  { %5085 = vmatpush3.bf16.msra.mxu0 %v6266_v24  ;;  %4862 = vmatprep.mubr.msk.f32.mxu0 %vm5756_vm0, %v5757_v1 }
0x1179   :  { %5089 = vmatprep.subr.bf16.mxu0 %v5755_v0 }
0x117b   :  { %4863 = vmatmul.mubr.msk.f32.vlgmr.msra.gmra.mrb[8].mxu0 %vm295_vm1, %v6276_v10 }
0x117c   :  { %5091 = vmatpush3.bf16.msra.mxu0 %v6266_v24  ;;  %4876 = vmatprep.mubr.msk.f32.mxu0 %vm5756_vm0, %v5757_v1 }
0x117d   :  { %5095 = vmatprep.subr.bf16.mxu0 %v5755_v0 }
0x124a   :  { %v1390_v7 = vpop.f32.mrb[6].mxu0 }
0x124b   :  { %v1395_v27 = vrot.slane %v1390_v7, 2  ;;  %v1396_v17 = vrot.slane %v1390_v7, 3  ;;  %v4850_v28 = vpop.f32.mrb[7].mxu0 }
0x124d   :  { %v1399_v20 = vadd.f32 %v1395_v27, %v6045_v35  ;;  %v1400_v29 = vadd.f32 %v1396_v17, %v6043_v33 }
0x124e   :  { %v1717_v30 = vpop.f32.mrb[8].mxu0 }
0x124f   :  { %5282 = vtanh.f32 %v1399_v20  ;;  %v1722_v23 = vrot.slane %v1717_v30, 1  ;;  %v4864_v31 = vpop.f32.mrb[9].mxu0  ;;  %v1723_v32 = vrot.slane %v1717_v30, 2  ;;  %v4605_v36 = vmul.f32 -1.442695, %v1399_v20 }
0x1250   :  { %5284 = vtanh.f32 %v1400_v29  ;;  %v4606_v37 = vmul.f32 -1.442695, %v1400_v29 }
0x1251   :  { %1724 = vrot.lane.b32.xlu0 %v1722_v23, %s5764_s3  ;;  %1726 = vrot.lane.b32.xlu1 %v1723_v32, %s5764_s3  ;;  %5286 = vpow2.f32 %v4605_v36 }
0x1252   :  { %5288 = vpow2.f32 %v4606_v37 }
0x1255   :  { %1313 = vrot.lane.b32.xlu0 %v1312_v52, %s5762_s30 }
0x1259   :  { %v5283_v22 = vpop.eup %5282 }
0x125a   :  { %v5285_v34 = vpop.eup %5284  ;;  %1428 = vrot.lane.b32.xlu1 %v5283_v22, %s5759_s14 }
0x125b   :  { %1430 = vrot.lane.b32.xlu0 %v5285_v34, %s5759_s14  ;;  %v5287_v41 = vpop.eup %5286 }
0x125c   :  { %v5289_v43 = vpop.eup %5288  ;;  %v1407_v44 = vadd.f32 1.0, %v5287_v41 }
0x125d   :  { %v1408_v46 = vadd.f32 1.0, %v5289_v43 }
0x12c3   :  { %v1725_v38 = vpop.permute.xlu0 %1724  ;;  %v1727_v39 = vpop.permute.xlu1 %1726 }
0x12c4   :  { %v1730_v40 = vadd.f32 %v1725_v38, %v6045_v35  ;;  %v1731_v42 = vadd.f32 %v1727_v39, %v6043_v33 }
0x12c6   :  { %5290 = vtanh.f32 %v1730_v40  ;;  %v4611_v8 = vmul.f32 -1.442695, %v1730_v40  ;;  %v4612_v16 = vmul.f32 -1.442695, %v1731_v42 }
0x12c7   :  { %5292 = vtanh.f32 %v1731_v42  ;;  %v1314_v45 = vpop.permute.xlu0 %1313 }
0x12c8   :  { %v1316_v47 = vmul.f32 %v1314_v45, %v6259_v14  ;;  %5294 = vrcp.f32 %v1407_v44 }
0x12c9   :  { %5296 = vrcp.f32 %v1408_v46 }
0x12ca   :  { %v6297_v49 = vadd.f32 %v1317_v48, %v1316_v47  ;;  %5298 = vpow2.f32 %v4611_v8 }
0x12cb   :  { %5300 = vpow2.f32 %v4612_v16 }
0x12cc   :  { %v1416_v53 = vrot.slane %v6297_v49, 2  ;;  %v1429_v54 = vpop.permute.xlu1 %1428  ;;  %v1417_v55 = vrot.slane %v6297_v49, 3 }
0x12cd   :  { %v1431_v56 = vpop.permute.xlu0 %1430 }
0x12d0   :  { %v5291_v50 = vpop.eup %5290 }
0x12d1   :  { %v5293_v52 = vpop.eup %5292  ;;  %1759 = vrot.lane.b32.xlu1 %v5291_v50, %s5759_s14 }
0x12d2   :  { %1761 = vrot.lane.b32.xlu0 %v5293_v52, %s5759_s14  ;;  %v6304_v57 = vpop.eup %5294 }
0x12d3   :  { %v6309_v58 = vpop.eup %5296  ;;  %v1434_v59 = vmul.f32 %v6304_v57, %v1429_v54 }
0x12d4   :  { %v1435_v60 = vmul.f32 %v6309_v58, %v1431_v56  ;;  %v5299_v18 = vpop.eup %5298  ;;  %v287_v56 = vld [vmem:[%s7084_s1 + $0xc] sm:$0x3] }
0x12d5   :  { %1418 = vrot.lane.b32.xlu1 %v1416_v53, %s5758_s28  ;;  %v5301_v11 = vpop.eup %5300  ;;  %v1738_v19 = vadd.f32 1.0, %v5299_v18 }
0x12d6   :  { %1420 = vrot.lane.b32.xlu0 %v1417_v55, %s5758_s28  ;;  %v1739_v21 = vadd.f32 1.0, %v5301_v11 }
0x12d7   :  { %5302 = vrcp.f32 %v1738_v19 }
0x12d8   :  { %5304 = vrcp.f32 %v1739_v21 }
0x12d9   :  { %1438 = vrot.lane.b32.xlu1 %v1434_v59, %s5758_s28 }
0x12da   :  { %1440 = vrot.lane.b32.xlu0 %v1435_v60, %s5758_s28 }
0x12dd   :  { %1749 = vrot.lane.b32.xlu1 %v1747_v5, %s5763_s9  ;;  %v1472_v5 = vsub.f32 1.0, %v287_v56 }
0x12de   :  { %1751 = vrot.lane.b32.xlu0 %v1748_v12, %s5763_s9  ;;  %v288_v12 = vld [vmem:[%s7084_s1 + $0xe] sm:$0x3] }
0x12df   :  { %v1798_v16 = vsub.f32 1.0, %v288_v12 }
0x12e1   :  { %v5303_v7 = vpop.eup %5302 }
0x12e2   :  { %v5305_v17 = vpop.eup %5304 }
0x1343   :  { %v1760_v27 = vpop.permute.xlu1 %1759 }
0x1344   :  { %v1765_v28 = vmul.f32 %v5303_v7, %v1760_v27  ;;  %v1762_v20 = vpop.permute.xlu0 %1761 }
0x1345   :  { %v1766_v29 = vmul.f32 %v5305_v17, %v1762_v20 }
0x1346   :  { %1769 = vrot.lane.b32.xlu1 %v1765_v28, %s5758_s28 }
0x1347   :  { %1771 = vrot.lane.b32.xlu0 %v1766_v29, %s5758_s28  ;;  %v1419_v30 = vpop.permute.xlu1 %1418 }
0x1348   :  { %v1421_v23 = vpop.permute.xlu0 %1420  ;;  %v1424_v31 = vmul.f32 %v6304_v57, %v1419_v30 }
0x1349   :  { %v1425_v32 = vmul.f32 %v6309_v58, %v1421_v23 }
0x134b   :  { %v1439_v22 = vpop.permute.xlu1 %1438 }
0x134c   :  { %v1444_v34 = vadd.f32 %v1439_v22, %v1424_v31  ;;  %v1441_v36 = vpop.permute.xlu0 %1440 }
0x134d   :  { %v1445_v37 = vadd.f32 %v1441_v36, %v1425_v32 }
0x134e   :  { %5306 = vtanh.f32 %v1444_v34  ;;  %v1482_v38 = vrot.slane %v1444_v34, 6 }
0x134f   :  { %5308 = vtanh.f32 %v1445_v37  ;;  %v1483_v39 = vrot.slane %v1445_v37, 5  ;;  %v1750_v43 = vpop.permute.xlu1 %1749 }
0x1350   :  { %v1752_v44 = vpop.permute.xlu0 %1751  ;;  %v1755_v45 = vmul.f32 %v5303_v7, %v1750_v43 }
0x1351   :  { %v6324_v40 = vsel %vm439_vm3, %v1483_v39, %v1482_v38  ;;  %v1756_v46 = vmul.f32 %v5305_v17, %v1752_v44 }
0x1358   :  { %v5307_v41 = vpop.eup %5306 }
0x1359   :  { %v5309_v42 = vpop.eup %5308  ;;  %1450 = vrot.lane.b32.xlu1 %v5307_v41, %s5761_s12 }
0x135a   :  { %1452 = vrot.lane.b32.xlu0 %v5309_v42, %s5761_s12 }
0x13b8   :  { %v1770_v47 = vpop.permute.xlu1 %1769 }
0x13b9   :  { %v1775_v48 = vadd.f32 %v1770_v47, %v1755_v45  ;;  %v1772_v50 = vpop.permute.xlu0 %1771 }
0x13ba   :  { %v1776_v52 = vadd.f32 %v1772_v50, %v1756_v46 }
0x13bb   :  { %5310 = vtanh.f32 %v1775_v48  ;;  %v1808_v53 = vrot.slane %v1775_v48, 7 }
0x13bc   :  { %5312 = vtanh.f32 %v1776_v52  ;;  %v1809_v54 = vrot.slane %v1776_v52, 6 }
0x13be   :  { %v1810_v55 = vsel %vm439_vm3, %v1809_v54, %v1808_v53 }
0x13c5   :  { %v5311_v59 = vpop.eup %5310 }
0x13c6   :  { %v5313_v60 = vpop.eup %5312  ;;  %1781 = vrot.lane.b32.xlu1 %v5311_v59, %s5761_s12 }
0x13c7   :  { %1783 = vrot.lane.b32.xlu0 %v5313_v60, %s5761_s12 }
0x13ca   :  { %1460 = vperm.xlu1 %5185, %v287_v56  }
0x13cb   :  { %1475 = vperm.xlu0 %5184, %v1472_v5   ;;  %v1451_v8 = vpop.permute.xlu1 %1450 }
0x13cc   :  { %v1456_v18 = vmul.f32 %v6304_v57, %v1451_v8  ;;  %v1453_v11 = vpop.permute.xlu0 %1452 }
0x13cd   :  { %v1457_v19 = vmul.f32 %v6309_v58, %v1453_v11 }
0x13ce   :  { %v1465_v21 = vrot.slane %v1456_v18, 6  ;;  %1632 = vperm.xlu1 %5185, %v288_v12  }
0x13cf   :  { %v1466_v27 = vrot.slane %v1457_v19, 5  ;;  %1801 = vperm.xlu0 %5184, %v1798_v16  }
0x13d1   :  { %v1467_v28 = vsel %vm439_vm3, %v1466_v27, %v1465_v21 }
0x13d2   :  { %1468 = vrot.lane.b32.xlu1 %v1467_v28, %s5763_s9 }
0x1438   :  { %v1782_v20 = vpop.permute.xlu1 %1781 }
0x1439   :  { %v1787_v29 = vmul.f32 %v5303_v7, %v1782_v20  ;;  %v1784_v30 = vpop.permute.xlu0 %1783 }
0x143a   :  { %v1788_v23 = vmul.f32 %v5305_v17, %v1784_v30 }
0x143b   :  { %v1791_v31 = vrot.slane %v1787_v29, 7 }
0x143c   :  { %v1792_v32 = vrot.slane %v1788_v23, 6 }
0x143e   :  { %v1793_v22 = vsel %vm439_vm3, %v1792_v32, %v1791_v31 }
0x143f   :  { %1794 = vrot.lane.b32.xlu0 %v1793_v22, %s5758_s28 }
0x1449   :  { %v6343_v57 = vpop.permute.xlu1 %1460 }
0x144a   :  { %v6347_v34 = vpop.permute.xlu0 %1475 }
0x144b   :  { %v1478_v7 = vmul.f32 %v6347_v34, %v6268_v25 }
0x144d   :  { %v6345_v58 = vpop.permute.xlu1 %1632 }
0x144e   :  { %v1802_v17 = vpop.permute.xlu0 %1801 }
0x144f   :  { %v1804_v41 = vmul.f32 %v1802_v17, %v6276_v10  ;;  %v1815_v59 = vmul.f32 %v1802_v17, %v6307_v26 }
0x1451   :  { %v1469_v36 = vpop.permute.xlu1 %1468 }
0x1452   :  { %v1471_v37 = vmul.f32 %v1469_v36, %v6343_v57 }
0x1454   :  { %v1479_v38 = vadd.f32 %v1478_v7, %v1471_v37  ;;  %1492 = vst.msk [vmem:[#allocation2 + $0xc] sm:$0x3] %vm463_vm4, %v1471_v37 }
0x1456   :  { %4856 = vmatmul.mubr.msk.f32.vlgmr.msra.gmra.mrb[8].mxu1 %vm295_vm1, %v1479_v38 }
0x1457   :  { %5088 = vmatpush3.bf16.msra.mxu1 %v6266_v24  ;;  %4869 = vmatprep.mubr.msk.f32.mxu1 %vm5756_vm0, %v5757_v1 }
0x1458   :  { %5092 = vmatprep.subr.bf16.mxu1 %v5755_v0 }
0x14b1   :  { %v1795_v39 = vpop.permute.xlu0 %1794 }
0x14b2   :  { %v1797_v42 = vmul.f32 %v1795_v39, %v6345_v58 }
0x14b4   :  { %v6360_v43 = vadd.f32 %v1804_v41, %v1797_v42  ;;  %1818 = vst.msk [vmem:[#allocation3 + $0xe] sm:$0x3] %vm463_vm4, %v1797_v42 }
0x14b6   :  { %4870 = vmatmul.mubr.msk.f32.vlgmr.msra.gmra.mrb[10].mxu1 %vm295_vm1, %v6360_v43 }
0x14b7   :  { %5094 = vmatpush3.bf16.msra.mxu1 %v6266_v24  ;;  %4883 = vmatprep.mubr.msk.f32.mxu1 %vm5756_vm0, %v5757_v1 }
0x14b8   :  { %5098 = vmatprep.subr.bf16.mxu1 %v5755_v0 }
0x1529   :  { %v6369_v25 = vpop.f32.mrb[8].mxu1 }
0x152a   :  { %v4857_v44 = vpop.f32.mrb[9].mxu1 }
0x1589   :  { %v1888_v10 = vpop.f32.mrb[10].mxu1 }
0x158a   :  { %v1893_v45 = vrot.slane %v1888_v10, 2  ;;  %v1894_v46 = vrot.slane %v1888_v10, 3  ;;  %v4871_v47 = vpop.f32.mrb[11].mxu1 }
0x158c   :  { %1897 = vrot.lane.b32.xlu0 %v1894_v46, %s5764_s3  ;;  %1895 = vrot.lane.b32.xlu1 %v1893_v45, %s5764_s3 }
0x1590   :  { %1811 = vrot.lane.b32.xlu1 %v1810_v55, %s5765_s8 }
0x15fe   :  { %v1898_v48 = vpop.permute.xlu0 %1897  ;;  %v1896_v50 = vpop.permute.xlu1 %1895 }
0x15ff   :  { %v1902_v52 = vadd.f32 %v1898_v48, %v6043_v33  ;;  %v1901_v53 = vadd.f32 %v1896_v50, %v6045_v35 }
0x1601   :  { %5314 = vtanh.f32 %v1902_v52  ;;  %v4615_v16 = vmul.f32 -1.442695, %v1902_v52  ;;  %v4614_v18 = vmul.f32 -1.442695, %v1901_v53 }
0x1602   :  { %5316 = vtanh.f32 %v1901_v53  ;;  %v1812_v54 = vpop.permute.xlu1 %1811 }
0x1603   :  { %v1814_v56 = vmul.f32 %v1812_v54, %v6345_v58  ;;  %5318 = vpow2.f32 %v4615_v16 }
0x1604   :  { %5320 = vpow2.f32 %v4614_v18 }
0x1605   :  { %v6378_v60 = vadd.f32 %v1815_v59, %v1814_v56  ;;  %v1969_v56 = vmul.f32 %v6360_v43, %v6347_v34 }
0x1607   :  { %v1919_v55 = vrot.slane %v6378_v60, 3  ;;  %v1918_v8 = vrot.slane %v6378_v60, 2 }
0x160b   :  { %v5315_v5 = vpop.eup %5314 }
0x160c   :  { %v5317_v12 = vpop.eup %5316  ;;  %1932 = vrot.lane.b32.xlu1 %v5315_v5, %s5759_s14 }
0x160d   :  { %1930 = vrot.lane.b32.xlu0 %v5317_v12, %s5759_s14  ;;  %v5319_v26 = vpop.eup %5318 }
0x160e   :  { %v5321_v11 = vpop.eup %5320  ;;  %v1910_v19 = vadd.f32 1.0, %v5319_v26 }
0x160f   :  { %v1909_v21 = vadd.f32 1.0, %v5321_v11 }
0x1610   :  { %1922 = vrot.lane.b32.xlu1 %v1919_v55, %s5763_s9  ;;  %5322 = vrcp.f32 %v1910_v19 }
0x1611   :  { %1920 = vrot.lane.b32.xlu0 %v1918_v8, %s5763_s9  ;;  %5324 = vrcp.f32 %v1909_v21 }
0x161a   :  { %v5323_v27 = vpop.eup %5322 }
0x161b   :  { %v5325_v20 = vpop.eup %5324 }
0x167e   :  { %v1933_v28 = vpop.permute.xlu1 %1932 }
0x167f   :  { %v1931_v29 = vpop.permute.xlu0 %1930  ;;  %v1937_v30 = vmul.f32 %v5323_v27, %v1933_v28 }
0x1680   :  { %v1936_v23 = vmul.f32 %v5325_v20, %v1931_v29 }
0x1681   :  { %1942 = vrot.lane.b32.xlu1 %v1937_v30, %s5758_s28 }
0x1682   :  { %1940 = vrot.lane.b32.xlu0 %v1936_v23, %s5758_s28  ;;  %v1923_v31 = vpop.permute.xlu1 %1922 }
0x1683   :  { %v1921_v32 = vpop.permute.xlu0 %1920  ;;  %v1927_v22 = vmul.f32 %v5323_v27, %v1923_v31 }
0x1684   :  { %v1926_v36 = vmul.f32 %v5325_v20, %v1921_v32 }
0x16f3   :  { %v1943_v37 = vpop.permute.xlu1 %1942 }
0x16f4   :  { %v1941_v7 = vpop.permute.xlu0 %1940  ;;  %v1947_v38 = vadd.f32 %v1943_v37, %v1927_v22 }
0x16f5   :  { %v1946_v17 = vadd.f32 %v1941_v7, %v1926_v36 }
0x16f6   :  { %5326 = vtanh.f32 %v1947_v38  ;;  %v1974_v39 = vrot.slane %v1947_v38, 5 }
0x16f7   :  { %5328 = vtanh.f32 %v1946_v17  ;;  %v1973_v41 = vrot.slane %v1946_v17, 6 }
0x16f9   :  { %v1975_v42 = vsel %vm439_vm3, %v1974_v39, %v1973_v41 }
0x1700   :  { %v5327_v44 = vpop.eup %5326 }
0x1701   :  { %v5329_v10 = vpop.eup %5328  ;;  %1954 = vrot.lane.b32.xlu1 %v5327_v44, %s5761_s12 }
0x1702   :  { %1952 = vrot.lane.b32.xlu0 %v5329_v10, %s5761_s12 }
0x1773   :  { %v1955_v45 = vpop.permute.xlu1 %1954 }
0x1774   :  { %v1953_v46 = vpop.permute.xlu0 %1952  ;;  %v1959_v47 = vmul.f32 %v5323_v27, %v1955_v45  ;;  %v1980_v27 = vmul.f32 %v6378_v60, %v6347_v34 }
0x1775   :  { %v1958_v48 = vmul.f32 %v5325_v20, %v1953_v46 }
0x1776   :  { %v1963_v50 = vrot.slane %v1959_v47, 5 }
0x1777   :  { %v1962_v52 = vrot.slane %v1958_v48, 6 }
0x1779   :  { %v1964_v53 = vsel %vm439_vm3, %v1963_v50, %v1962_v52 }
0x177a   :  { %1965 = vrot.lane.b32.xlu0 %v1964_v53, %s5758_s28 }
0x17ec   :  { %v1966_v54 = vpop.permute.xlu0 %1965 }
0x17ed   :  { %v1968_v59 = vmul.f32 %v1966_v54, %v6343_v57 }
0x17ef   :  { %v6396_v5 = vadd.f32 %v1969_v56, %v1968_v59  ;;  %1983 = vst.msk [vmem:[#allocation3 + $0xc] sm:$0x3] %vm463_vm4, %v1968_v59 }
0x17f1   :  { %4877 = vmatmul.mubr.msk.f32.vlgmr.msra.gmra.mrb[10].mxu0 %vm295_vm1, %v6396_v5 }
0x17f2   :  { %5097 = vmatpush3.bf16.msra.mxu0 %v6266_v24  ;;  %4890 = vmatprep.mubr.msk.f32.mxu0 %vm5756_vm0, %v5757_v1 }
0x17f3   :  { %5101 = vmatprep.subr.bf16.mxu0 %v5755_v0 }
0x18c4   :  { %v2053_v12 = vpop.f32.mrb[10].mxu0 }
0x18c5   :  { %v2058_v55 = vrot.slane %v2053_v12, 3  ;;  %v2059_v8 = vrot.slane %v2053_v12, 4  ;;  %v4878_v43 = vpop.f32.mrb[11].mxu0 }
0x18c7   :  { %2062 = vrot.lane.b32.xlu0 %v2059_v8, %s5764_s3  ;;  %2060 = vrot.lane.b32.xlu1 %v2058_v55, %s5764_s3 }
0x18cb   :  { %1976 = vrot.lane.b32.xlu1 %v1975_v42, %s5765_s8 }
0x1939   :  { %v2063_v16 = vpop.permute.xlu0 %2062  ;;  %v2061_v18 = vpop.permute.xlu1 %2060 }
0x193a   :  { %v2067_v26 = vadd.f32 %v2063_v16, %v6043_v33  ;;  %v2066_v11 = vadd.f32 %v2061_v18, %v6045_v35 }
0x193c   :  { %5330 = vtanh.f32 %v2067_v26  ;;  %v4618_v31 = vmul.f32 -1.442695, %v2067_v26  ;;  %v4617_v32 = vmul.f32 -1.442695, %v2066_v11 }
0x193d   :  { %5332 = vtanh.f32 %v2066_v11  ;;  %v1977_v19 = vpop.permute.xlu1 %1976 }
0x193e   :  { %v1979_v21 = vmul.f32 %v1977_v19, %v6343_v57  ;;  %5334 = vpow2.f32 %v4618_v31 }
0x193f   :  { %5336 = vpow2.f32 %v4617_v32 }
0x1940   :  { %v6413_v28 = vadd.f32 %v1980_v27, %v1979_v21  ;;  %v2134_v21 = vmul.f32 %v6396_v5, %v6261_v15 }
0x1942   :  { %v2084_v30 = vrot.slane %v6413_v28, 4  ;;  %v2083_v23 = vrot.slane %v6413_v28, 3 }
0x1946   :  { %v5331_v20 = vpop.eup %5330 }
0x1947   :  { %v5333_v29 = vpop.eup %5332  ;;  %2097 = vrot.lane.b32.xlu1 %v5331_v20, %s5759_s14 }
0x1948   :  { %2095 = vrot.lane.b32.xlu0 %v5333_v29, %s5759_s14  ;;  %v5335_v60 = vpop.eup %5334 }
0x1949   :  { %v5337_v22 = vpop.eup %5336  ;;  %v2075_v36 = vadd.f32 1.0, %v5335_v60 }
0x194a   :  { %v2074_v37 = vadd.f32 1.0, %v5337_v22 }
0x194b   :  { %2087 = vrot.lane.b32.xlu1 %v2084_v30, %s5763_s9  ;;  %5338 = vrcp.f32 %v2075_v36 }
0x194c   :  { %2085 = vrot.lane.b32.xlu0 %v2083_v23, %s5763_s9  ;;  %5340 = vrcp.f32 %v2074_v37 }
0x1955   :  { %v5339_v7 = vpop.eup %5338 }
0x1956   :  { %v5341_v17 = vpop.eup %5340 }
0x19b9   :  { %v2098_v38 = vpop.permute.xlu1 %2097 }
0x19ba   :  { %v2096_v39 = vpop.permute.xlu0 %2095  ;;  %v2102_v41 = vmul.f32 %v5339_v7, %v2098_v38 }
0x19bb   :  { %v2101_v42 = vmul.f32 %v5341_v17, %v2096_v39 }
0x19bc   :  { %2107 = vrot.lane.b32.xlu1 %v2102_v41, %s5758_s28 }
0x19bd   :  { %2105 = vrot.lane.b32.xlu0 %v2101_v42, %s5758_s28  ;;  %v2088_v44 = vpop.permute.xlu1 %2087 }
0x19be   :  { %v2086_v10 = vpop.permute.xlu0 %2085  ;;  %v2092_v45 = vmul.f32 %v5339_v7, %v2088_v44 }
0x19bf   :  { %v2091_v46 = vmul.f32 %v5341_v17, %v2086_v10 }
0x1a2e   :  { %v2108_v47 = vpop.permute.xlu1 %2107 }
0x1a2f   :  { %v2106_v48 = vpop.permute.xlu0 %2105  ;;  %v2112_v50 = vadd.f32 %v2108_v47, %v2092_v45 }
0x1a30   :  { %v2111_v52 = vadd.f32 %v2106_v48, %v2091_v46 }
0x1a31   :  { %5342 = vtanh.f32 %v2112_v50  ;;  %v2139_v53 = vrot.slane %v2112_v50, 4 }
0x1a32   :  { %5344 = vtanh.f32 %v2111_v52  ;;  %v2138_v54 = vrot.slane %v2111_v52, 5 }
0x1a34   :  { %v2140_v56 = vsel %vm439_vm3, %v2139_v53, %v2138_v54 }
0x1a3b   :  { %v5343_v59 = vpop.eup %5342 }
0x1a3c   :  { %v5345_v12 = vpop.eup %5344  ;;  %2119 = vrot.lane.b32.xlu1 %v5343_v59, %s5761_s12 }
0x1a3d   :  { %2117 = vrot.lane.b32.xlu0 %v5345_v12, %s5761_s12 }
0x1aae   :  { %v2120_v55 = vpop.permute.xlu1 %2119 }
0x1aaf   :  { %v2118_v8 = vpop.permute.xlu0 %2117  ;;  %v2124_v43 = vmul.f32 %v5339_v7, %v2120_v55  ;;  %v2145_v7 = vmul.f32 %v6413_v28, %v6261_v15 }
0x1ab0   :  { %v2123_v16 = vmul.f32 %v5341_v17, %v2118_v8 }
0x1ab1   :  { %v2128_v18 = vrot.slane %v2124_v43, 4 }
0x1ab2   :  { %v2127_v26 = vrot.slane %v2123_v16, 5 }
0x1ab4   :  { %v2129_v11 = vsel %vm439_vm3, %v2128_v18, %v2127_v26 }
0x1ab5   :  { %2130 = vrot.lane.b32.xlu0 %v2129_v11, %s5758_s28 }
0x1b27   :  { %v2131_v19 = vpop.permute.xlu0 %2130 }
0x1b28   :  { %v2133_v27 = vmul.f32 %v2131_v19, %v6259_v14 }
0x1b2a   :  { %v6431_v20 = vadd.f32 %v2134_v21, %v2133_v27  ;;  %2148 = vst.msk [vmem:[#allocation3 + $0xa] sm:$0x3] %vm463_vm4, %v2133_v27 }
0x1b2c   :  { %4884 = vmatmul.mubr.msk.f32.vlgmr.msra.gmra.mrb[12].mxu1 %vm295_vm1, %v6431_v20 }
0x1b2d   :  { %5100 = vmatpush3.bf16.msra.mxu1 %v6266_v24  ;;  %4897 = vmatprep.mubr.msk.f32.mxu1 %vm5756_vm0, %v5757_v1 }
0x1b2e   :  { %5104 = vmatprep.subr.bf16.mxu1 %v5755_v0 }
0x1bff   :  { %v2218_v29 = vpop.f32.mrb[12].mxu1 }
0x1c00   :  { %v2223_v30 = vrot.slane %v2218_v29, 4  ;;  %v2224_v23 = vrot.slane %v2218_v29, 5  ;;  %v4885_v5 = vpop.f32.mrb[13].mxu1 }
0x1c02   :  { %2227 = vrot.lane.b32.xlu0 %v2224_v23, %s5764_s3  ;;  %2225 = vrot.lane.b32.xlu1 %v2223_v30, %s5764_s3 }
0x1c06   :  { %2141 = vrot.lane.b32.xlu1 %v2140_v56, %s5765_s8 }
0x1c74   :  { %v2228_v31 = vpop.permute.xlu0 %2227  ;;  %v2226_v32 = vpop.permute.xlu1 %2225 }
0x1c75   :  { %v2232_v60 = vadd.f32 %v2228_v31, %v6043_v33  ;;  %v2231_v22 = vadd.f32 %v2226_v32, %v6045_v35 }
0x1c77   :  { %5346 = vtanh.f32 %v2232_v60  ;;  %v4620_v44 = vmul.f32 -1.442695, %v2231_v22 }
0x1c78   :  { %5348 = vtanh.f32 %v2231_v22  ;;  %v2142_v36 = vpop.permute.xlu1 %2141  ;;  %v2299_v22 = vmul.f32 %v6431_v20, %v6222_v9 }
0x1c79   :  { %v2144_v37 = vmul.f32 %v2142_v36, %v6259_v14  ;;  %v4621_v14 = vmul.f32 -1.442695, %v2232_v60 }
0x1c7b   :  { %v6448_v38 = vadd.f32 %v2145_v7, %v2144_v37  ;;  %5350 = vpow2.f32 %v4621_v14 }
0x1c7c   :  { %5352 = vpow2.f32 %v4620_v44 }
0x1c7d   :  { %v2249_v41 = vrot.slane %v6448_v38, 5  ;;  %v2248_v42 = vrot.slane %v6448_v38, 4 }
0x1c81   :  { %v5347_v17 = vpop.eup %5346 }
0x1c82   :  { %v5349_v39 = vpop.eup %5348  ;;  %2262 = vrot.lane.b32.xlu1 %v5347_v17, %s5759_s14 }
0x1c83   :  { %2260 = vrot.lane.b32.xlu0 %v5349_v39, %s5759_s14 }
0x1c85   :  { %v5351_v15 = vpop.eup %5350 }
0x1c86   :  { %2252 = vrot.lane.b32.xlu1 %v2249_v41, %s5763_s9  ;;  %v5353_v28 = vpop.eup %5352  ;;  %v2240_v10 = vadd.f32 1.0, %v5351_v15 }
0x1c87   :  { %2250 = vrot.lane.b32.xlu0 %v2248_v42, %s5763_s9  ;;  %v2239_v45 = vadd.f32 1.0, %v5353_v28 }
0x1c88   :  { %5354 = vrcp.f32 %v2240_v10  ;;  %v2310_v10 = vmul.f32 %v6448_v38, %v6222_v9 }
0x1c89   :  { %5356 = vrcp.f32 %v2239_v45 }
0x1c92   :  { %v5355_v46 = vpop.eup %5354 }
0x1c93   :  { %v5357_v48 = vpop.eup %5356 }
0x1cf4   :  { %v2263_v47 = vpop.permute.xlu1 %2262 }
0x1cf5   :  { %v2261_v50 = vpop.permute.xlu0 %2260  ;;  %v2267_v52 = vmul.f32 %v5355_v46, %v2263_v47 }
0x1cf6   :  { %v2266_v53 = vmul.f32 %v5357_v48, %v2261_v50 }
0x1cf7   :  { %2272 = vrot.lane.b32.xlu1 %v2267_v52, %s5758_s28 }
0x1cf8   :  { %2270 = vrot.lane.b32.xlu0 %v2266_v53, %s5758_s28  ;;  %v2253_v54 = vpop.permute.xlu1 %2252 }
0x1cf9   :  { %v2251_v56 = vpop.permute.xlu0 %2250  ;;  %v2257_v59 = vmul.f32 %v5355_v46, %v2253_v54 }
0x1cfa   :  { %v2256_v12 = vmul.f32 %v5357_v48, %v2251_v56 }
0x1d69   :  { %v2273_v55 = vpop.permute.xlu1 %2272 }
0x1d6a   :  { %v2271_v8 = vpop.permute.xlu0 %2270  ;;  %v2277_v43 = vadd.f32 %v2273_v55, %v2257_v59 }
0x1d6b   :  { %v2276_v16 = vadd.f32 %v2271_v8, %v2256_v12 }
0x1d6c   :  { %5358 = vtanh.f32 %v2277_v43  ;;  %v2304_v18 = vrot.slane %v2277_v43, 3 }
0x1d6d   :  { %5360 = vtanh.f32 %v2276_v16  ;;  %v2303_v26 = vrot.slane %v2276_v16, 4 }
0x1d6f   :  { %v2305_v11 = vsel %vm439_vm3, %v2304_v18, %v2303_v26 }
0x1d76   :  { %v5359_v19 = vpop.eup %5358 }
0x1d77   :  { %v5361_v21 = vpop.eup %5360  ;;  %2284 = vrot.lane.b32.xlu1 %v5359_v19, %s5761_s12 }
0x1d78   :  { %2282 = vrot.lane.b32.xlu0 %v5361_v21, %s5761_s12 }
0x1de9   :  { %v2285_v27 = vpop.permute.xlu1 %2284 }
0x1dea   :  { %v2283_v29 = vpop.permute.xlu0 %2282  ;;  %v2289_v30 = vmul.f32 %v5355_v46, %v2285_v27 }
0x1deb   :  { %v2288_v23 = vmul.f32 %v5357_v48, %v2283_v29 }
0x1dec   :  { %v2293_v5 = vrot.slane %v2289_v30, 3 }
0x1ded   :  { %v2292_v31 = vrot.slane %v2288_v23, 4 }
0x1def   :  { %v2294_v32 = vsel %vm439_vm3, %v2293_v5, %v2292_v31 }
0x1df0   :  { %2295 = vrot.lane.b32.xlu0 %v2294_v32, %s5758_s28 }
0x1e62   :  { %v2296_v60 = vpop.permute.xlu0 %2295 }
0x1e63   :  { %v2298_v36 = vmul.f32 %v2296_v60, %v6220_v6 }
0x1e65   :  { %v6466_v37 = vadd.f32 %v2299_v22, %v2298_v36  ;;  %2313 = vst.msk [vmem:[#allocation3 + $0x8] sm:$0x3] %vm463_vm4, %v2298_v36 }
0x1e67   :  { %4891 = vmatmul.mubr.msk.f32.vlgmr.msra.gmra.mrb[12].mxu0 %vm295_vm1, %v6466_v37 }
0x1e68   :  { %5103 = vmatpush3.bf16.msra.mxu0 %v6266_v24  ;;  %4904 = vmatprep.mubr.msk.f32.mxu0 %vm5756_vm0, %v5757_v1 }
0x1f3a   :  { %v2383_v7 = vpop.f32.mrb[12].mxu0 }
0x1f3b   :  { %v2388_v17 = vrot.slane %v2383_v7, 5  ;;  %v2389_v39 = vrot.slane %v2383_v7, 6  ;;  %v4892_v41 = vpop.f32.mrb[13].mxu0 }
0x1f3d   :  { %2392 = vrot.lane.b32.xlu0 %v2389_v39, %s5764_s3  ;;  %2390 = vrot.lane.b32.xlu1 %v2388_v17, %s5764_s3 }
0x1f41   :  { %2306 = vrot.lane.b32.xlu1 %v2305_v11, %s5765_s8 }
0x1faf   :  { %v2393_v20 = vpop.permute.xlu0 %2392  ;;  %v2391_v42 = vpop.permute.xlu1 %2390 }
0x1fb0   :  { %v2397_v14 = vadd.f32 %v2393_v20, %v6043_v33  ;;  %v2396_v44 = vadd.f32 %v2391_v42, %v6045_v35  ;;  %v2464_v42 = vmul.f32 %v6466_v37, %v6182_v2 }
0x1fb2   :  { %5362 = vtanh.f32 %v2397_v14  ;;  %v4623_v52 = vmul.f32 -1.442695, %v2396_v44 }
0x1fb3   :  { %5364 = vtanh.f32 %v2396_v44  ;;  %v2307_v15 = vpop.permute.xlu1 %2306 }
0x1fb4   :  { %v2309_v28 = vmul.f32 %v2307_v15, %v6220_v6  ;;  %v4624_v6 = vmul.f32 -1.442695, %v2397_v14 }
0x1fb6   :  { %v6482_v45 = vadd.f32 %v2310_v10, %v2309_v28  ;;  %5366 = vpow2.f32 %v4624_v6 }
0x1fb7   :  { %5368 = vpow2.f32 %v4623_v52 }
0x1fb8   :  { %v2414_v48 = vrot.slane %v6482_v45, 6  ;;  %v2413_v50 = vrot.slane %v6482_v45, 5  ;;  %v2475_v52 = vmul.f32 %v6482_v45, %v6182_v2 }
0x1fbc   :  { %v5363_v46 = vpop.eup %5362 }
0x1fbd   :  { %v5365_v47 = vpop.eup %5364  ;;  %2427 = vrot.lane.b32.xlu1 %v5363_v46, %s5759_s14 }
0x1fbe   :  { %2425 = vrot.lane.b32.xlu0 %v5365_v47, %s5759_s14 }
0x1fc0   :  { %v5367_v9 = vpop.eup %5366 }
0x1fc1   :  { %2417 = vrot.lane.b32.xlu1 %v2414_v48, %s5763_s9  ;;  %v5369_v38 = vpop.eup %5368  ;;  %v2405_v53 = vadd.f32 1.0, %v5367_v9 }
0x1fc2   :  { %2415 = vrot.lane.b32.xlu0 %v2413_v50, %s5763_s9  ;;  %v2404_v54 = vadd.f32 1.0, %v5369_v38 }
0x1fc3   :  { %5370 = vrcp.f32 %v2405_v53 }
0x1fc4   :  { %5372 = vrcp.f32 %v2404_v54 }
0x1fcd   :  { %v5371_v56 = vpop.eup %5370 }
0x1fce   :  { %v5373_v12 = vpop.eup %5372 }
0x202f   :  { %v2428_v59 = vpop.permute.xlu1 %2427 }
0x2030   :  { %v2426_v55 = vpop.permute.xlu0 %2425  ;;  %v2432_v8 = vmul.f32 %v5371_v56, %v2428_v59 }
0x2031   :  { %v2431_v43 = vmul.f32 %v5373_v12, %v2426_v55 }
0x2032   :  { %2437 = vrot.lane.b32.xlu1 %v2432_v8, %s5758_s28 }
0x2033   :  { %2435 = vrot.lane.b32.xlu0 %v2431_v43, %s5758_s28  ;;  %v2418_v16 = vpop.permute.xlu1 %2417 }
0x2034   :  { %v2416_v18 = vpop.permute.xlu0 %2415  ;;  %v2422_v26 = vmul.f32 %v5371_v56, %v2418_v16 }
0x2035   :  { %v2421_v11 = vmul.f32 %v5373_v12, %v2416_v18 }
0x20a4   :  { %v2438_v19 = vpop.permute.xlu1 %2437 }
0x20a5   :  { %v2436_v21 = vpop.permute.xlu0 %2435  ;;  %v2442_v27 = vadd.f32 %v2438_v19, %v2422_v26 }
0x20a6   :  { %v2441_v29 = vadd.f32 %v2436_v21, %v2421_v11 }
0x20a7   :  { %5374 = vtanh.f32 %v2442_v27  ;;  %v2469_v30 = vrot.slane %v2442_v27, 2 }
0x20a8   :  { %5376 = vtanh.f32 %v2441_v29  ;;  %v2468_v23 = vrot.slane %v2441_v29, 3 }
0x20aa   :  { %v2470_v5 = vsel %vm439_vm3, %v2469_v30, %v2468_v23 }
0x20b1   :  { %v5375_v31 = vpop.eup %5374 }
0x20b2   :  { %v5377_v32 = vpop.eup %5376  ;;  %2449 = vrot.lane.b32.xlu1 %v5375_v31, %s5761_s12 }
0x20b3   :  { %2447 = vrot.lane.b32.xlu0 %v5377_v32, %s5761_s12 }
0x2124   :  { %v2450_v60 = vpop.permute.xlu1 %2449 }
0x2125   :  { %v2448_v22 = vpop.permute.xlu0 %2447  ;;  %v2454_v36 = vmul.f32 %v5371_v56, %v2450_v60 }
0x2126   :  { %v2453_v7 = vmul.f32 %v5373_v12, %v2448_v22 }
0x2127   :  { %v2458_v17 = vrot.slane %v2454_v36, 2 }
0x2128   :  { %v2457_v39 = vrot.slane %v2453_v7, 3 }
0x212a   :  { %v2459_v41 = vsel %vm439_vm3, %v2458_v17, %v2457_v39 }
0x212b   :  { %2460 = vrot.lane.b32.xlu0 %v2459_v41, %s5758_s28 }
0x219d   :  { %v2461_v20 = vpop.permute.xlu0 %2460 }
0x219e   :  { %v2463_v14 = vmul.f32 %v2461_v20, %v6180_v61 }
0x21a0   :  { %v6500_v44 = vadd.f32 %v2464_v42, %v2463_v14  ;;  %2478 = vst.msk [vmem:[#allocation3 + $0x6] sm:$0x3] %vm463_vm4, %v2463_v14 }
0x21a2   :  { %4898 = vmatmul.mubr.msk.f32.vlgmr.msra.gmra.mrb[14].mxu1 %vm295_vm1, %v6500_v44 }
0x21a3   :  { %5106 = vmatpush3.bf16.msra.mxu1 %v6266_v24  ;;  %4911 = vmatprep.mubr.msk.f32.mxu1 %vm5756_vm0, %v5757_v1 }
0x21a4   :  { %5115 = vmatprep.subr.bf16.mxu1 %v5755_v0 }
0x2275   :  { %v2548_v15 = vpop.f32.mrb[14].mxu1 }
0x2276   :  { %v2553_v28 = vrot.slane %v2548_v15, 6  ;;  %v2554_v10 = vrot.slane %v2548_v15, 7  ;;  %v4899_v37 = vpop.f32.mrb[15].mxu1 }
0x2278   :  { %2557 = vrot.lane.b32.xlu0 %v2554_v10, %s5764_s3  ;;  %2555 = vrot.lane.b32.xlu1 %v2553_v28, %s5764_s3  ;;  %v2629_v10 = vmul.f32 %v6500_v44, %v6142_v63 }
0x227c   :  { %2471 = vrot.lane.b32.xlu1 %v2470_v5, %s5765_s8 }
0x22ea   :  { %v2558_v46 = vpop.permute.xlu0 %2557  ;;  %v2556_v47 = vpop.permute.xlu1 %2555 }
0x22eb   :  { %v2562_v48 = vadd.f32 %v2558_v46, %v6043_v33  ;;  %v2561_v24 = vadd.f32 %v2556_v47, %v6045_v35 }
0x22ed   :  { %5378 = vtanh.f32 %v2562_v48  ;;  %v4626_v59 = vmul.f32 -1.442695, %v2561_v24 }
0x22ee   :  { %5380 = vtanh.f32 %v2561_v24  ;;  %v2472_v50 = vpop.permute.xlu1 %2471 }
0x22ef   :  { %v2474_v6 = vmul.f32 %v2472_v50, %v6180_v61  ;;  %v4627_v61 = vmul.f32 -1.442695, %v2562_v48 }
0x22f1   :  { %v6517_v9 = vadd.f32 %v2475_v52, %v2474_v6  ;;  %5382 = vpow2.f32 %v4627_v61 }
0x22f2   :  { %5384 = vpow2.f32 %v4626_v59 }
0x22f3   :  { %v2579_v54 = vrot.slane %v6517_v9, 7  ;;  %v2578_v56 = vrot.slane %v6517_v9, 6 }
0x22f7   :  { %v5379_v38 = vpop.eup %5378 }
0x22f8   :  { %v5381_v53 = vpop.eup %5380  ;;  %2592 = vrot.lane.b32.xlu1 %v5379_v38, %s5759_s14 }
0x22f9   :  { %2590 = vrot.lane.b32.xlu0 %v5381_v53, %s5759_s14 }
0x22fb   :  { %v5383_v2 = vpop.eup %5382 }
0x22fc   :  { %2582 = vrot.lane.b32.xlu1 %v2579_v54, %s5763_s9  ;;  %v5385_v45 = vpop.eup %5384  ;;  %v2570_v12 = vadd.f32 1.0, %v5383_v2 }
0x22fd   :  { %2580 = vrot.lane.b32.xlu0 %v2578_v56, %s5763_s9  ;;  %v2569_v55 = vadd.f32 1.0, %v5385_v45  ;;  %v2640_v56 = vmul.f32 %v6517_v9, %v6142_v63 }
0x22fe   :  { %5386 = vrcp.f32 %v2570_v12 }
0x22ff   :  { %5388 = vrcp.f32 %v2569_v55 }
0x2308   :  { %v5387_v8 = vpop.eup %5386 }
0x2309   :  { %v5389_v16 = vpop.eup %5388 }
0x236a   :  { %v2593_v43 = vpop.permute.xlu1 %2592 }
0x236b   :  { %v2591_v18 = vpop.permute.xlu0 %2590  ;;  %v2597_v26 = vmul.f32 %v5387_v8, %v2593_v43 }
0x236c   :  { %v2596_v11 = vmul.f32 %v5389_v16, %v2591_v18 }
0x236d   :  { %2602 = vrot.lane.b32.xlu1 %v2597_v26, %s5758_s28 }
0x236e   :  { %2600 = vrot.lane.b32.xlu0 %v2596_v11, %s5758_s28  ;;  %v2583_v19 = vpop.permute.xlu1 %2582 }
0x236f   :  { %v2581_v21 = vpop.permute.xlu0 %2580  ;;  %v2587_v27 = vmul.f32 %v5387_v8, %v2583_v19 }
0x2370   :  { %v2586_v29 = vmul.f32 %v5389_v16, %v2581_v21 }
0x23df   :  { %v2603_v30 = vpop.permute.xlu1 %2602 }
0x23e0   :  { %v2601_v23 = vpop.permute.xlu0 %2600  ;;  %v2607_v5 = vadd.f32 %v2603_v30, %v2587_v27 }
0x23e1   :  { %v2606_v31 = vadd.f32 %v2601_v23, %v2586_v29 }
0x23e2   :  { %5390 = vtanh.f32 %v2607_v5  ;;  %v2634_v32 = vrot.slane %v2607_v5, 1 }
0x23e3   :  { %5392 = vtanh.f32 %v2606_v31  ;;  %v2633_v60 = vrot.slane %v2606_v31, 2 }
0x23e5   :  { %v2635_v22 = vsel %vm439_vm3, %v2634_v32, %v2633_v60 }
0x23ec   :  { %v5391_v36 = vpop.eup %5390 }
0x23ed   :  { %v5393_v7 = vpop.eup %5392  ;;  %2614 = vrot.lane.b32.xlu1 %v5391_v36, %s5761_s12 }
0x23ee   :  { %2612 = vrot.lane.b32.xlu0 %v5393_v7, %s5761_s12 }
0x245f   :  { %v2615_v17 = vpop.permute.xlu1 %2614 }
0x2460   :  { %v2613_v39 = vpop.permute.xlu0 %2612  ;;  %v2619_v41 = vmul.f32 %v5387_v8, %v2615_v17 }
0x2461   :  { %v2618_v20 = vmul.f32 %v5389_v16, %v2613_v39 }
0x2462   :  { %v2623_v42 = vrot.slane %v2619_v41, 1 }
0x2463   :  { %v2622_v14 = vrot.slane %v2618_v20, 2 }
0x2465   :  { %v2624_v15 = vsel %vm439_vm3, %v2623_v42, %v2622_v14 }
0x2466   :  { %2625 = vrot.lane.b32.xlu0 %v2624_v15, %s5758_s28 }
0x24d8   :  { %v2626_v28 = vpop.permute.xlu0 %2625 }
0x24d9   :  { %v2628_v37 = vmul.f32 %v2626_v28, %v6140_v62 }
0x24db   :  { %v6535_v46 = vadd.f32 %v2629_v10, %v2628_v37  ;;  %2643 = vst.msk [vmem:[#allocation3 + $0x4] sm:$0x3] %vm463_vm4, %v2628_v37 }
0x24dd   :  { %4905 = vmatmul.mubr.msk.f32.vlgmr.msra.gmra.mrb[14].mxu0 %vm295_vm1, %v6535_v46  ;;  %v2791_v15 = vmul.f32 %v6535_v46, %v6102_v4 }
0x25b0   :  { %v2713_v47 = vpop.f32.mrb[14].mxu0 }
0x25b1   :  { %v2718_v48 = vrot.slane %v2713_v47, 7  ;;  %2721 = vrot.lane.b32.xlu0 %v2713_v47, %s5764_s3  ;;  %v4906_v24 = vpop.f32.mrb[15].mxu0 }
0x25b3   :  { %2719 = vrot.lane.b32.xlu1 %v2718_v48, %s5764_s3 }
0x25b7   :  { %2636 = vrot.lane.b32.xlu1 %v2635_v22, %s5765_s8 }
0x2623   :  { %v2722_v50 = vpop.permute.xlu0 %2721 }
0x2624   :  { %v2726_v44 = vadd.f32 %v2722_v50, %v6043_v33 }
0x2625   :  { %v2720_v6 = vpop.permute.xlu1 %2719 }
0x2626   :  { %5394 = vtanh.f32 %v2726_v44  ;;  %v2725_v52 = vadd.f32 %v2720_v6, %v6045_v35  ;;  %v4630_v45 = vmul.f32 -1.442695, %v2726_v44  ;;  %v1568_v44 = vrot.slane %v6369_v25, 2 }
0x2628   :  { %5396 = vtanh.f32 %v2725_v52 }
0x2629   :  { %v2637_v38 = vpop.permute.xlu1 %2636  ;;  %5398 = vpow2.f32 %v4630_v45 }
0x262a   :  { %v2639_v53 = vmul.f32 %v2637_v38, %v6140_v62  ;;  %v4629_v62 = vmul.f32 -1.442695, %v2725_v52  ;;  %v1567_v52 = vrot.slane %v6369_v25, 1 }
0x262c   :  { %v6549_v61 = vadd.f32 %v2640_v56, %v2639_v53  ;;  %5400 = vpow2.f32 %v4629_v62  ;;  %v1572_v53 = vadd.f32 %v1568_v44, %v6043_v33  ;;  %v1571_v56 = vadd.f32 %v1567_v52, %v6045_v35 }
0x262e   :  { %v2742_v2 = vrot.slane %v6549_v61, 7 }
0x2630   :  { %v5395_v54 = vpop.eup %5394 }
0x2631   :  { %2755 = vrot.lane.b32.xlu1 %v5395_v54, %s5759_s14 }
0x2632   :  { %v5397_v59 = vpop.eup %5396 }
0x2633   :  { %2753 = vrot.lane.b32.xlu0 %v5397_v59, %s5759_s14  ;;  %v5399_v12 = vpop.eup %5398  ;;  %v2801_v59 = vmul.f32 %v6549_v61, %v6102_v4 }
0x2634   :  { %v2734_v9 = vadd.f32 1.0, %v5399_v12 }
0x2635   :  { %2745 = vrot.lane.b32.xlu1 %v6549_v61, %s5763_s9  ;;  %v4608_v61 = vmul.f32 -1.442695, %v1571_v56 }
0x2636   :  { %v5401_v63 = vpop.eup %5400  ;;  %5402 = vrcp.f32 %v2734_v9 }
0x2637   :  { %2743 = vrot.lane.b32.xlu0 %v2742_v2, %s5763_s9  ;;  %v2733_v55 = vadd.f32 1.0, %v5401_v63  ;;  %v4609_v63 = vmul.f32 -1.442695, %v1572_v53 }
0x2639   :  { %5404 = vrcp.f32 %v2733_v55 }
0x2640   :  { %v5403_v8 = vpop.eup %5402 }
0x2643   :  { %v5405_v18 = vpop.eup %5404 }
0x26a3   :  { %v2756_v43 = vpop.permute.xlu1 %2755 }
0x26a4   :  { %v2760_v16 = vmul.f32 %v5403_v8, %v2756_v43 }
0x26a5   :  { %v2754_v26 = vpop.permute.xlu0 %2753 }
0x26a6   :  { %2765 = vrot.lane.b32.xlu1 %v2760_v16, %s5758_s28  ;;  %v2759_v11 = vmul.f32 %v5405_v18, %v2754_v26 }
0x26a7   :  { %v2746_v19 = vpop.permute.xlu1 %2745 }
0x26a8   :  { %2763 = vrot.lane.b32.xlu0 %v2759_v11, %s5758_s28  ;;  %v2750_v21 = vmul.f32 %v5403_v8, %v2746_v19 }
0x26a9   :  { %v2744_v27 = vpop.permute.xlu0 %2743 }
0x26aa   :  { %v2749_v23 = vmul.f32 %v5405_v18, %v2744_v27 }
0x2718   :  { %v2766_v29 = vpop.permute.xlu1 %2765 }
0x2719   :  { %v2770_v30 = vadd.f32 %v2766_v29, %v2750_v21 }
0x271a   :  { %v2764_v5 = vpop.permute.xlu0 %2763 }
0x271b   :  { %5406 = vtanh.f32 %v2770_v30  ;;  %v2769_v31 = vadd.f32 %v2764_v5, %v2749_v23  ;;  %v1489_v5 = vmul.f32 %v6347_v34, %v6297_v49 }
0x271d   :  { %5408 = vtanh.f32 %v2769_v31  ;;  %v2795_v32 = vrot.slane %v2769_v31, 1 }
0x271f   :  { %v2796_v60 = vsel %vm439_vm3, %v2770_v30, %v2795_v32 }
0x2725   :  { %v5407_v22 = vpop.eup %5406 }
0x2726   :  { %2777 = vrot.lane.b32.xlu1 %v5407_v22, %s5761_s12 }
0x2727   :  { %v5409_v36 = vpop.eup %5408 }
0x2728   :  { %2775 = vrot.lane.b32.xlu0 %v5409_v36, %s5761_s12 }
0x2798   :  { %v2778_v7 = vpop.permute.xlu1 %2777 }
0x2799   :  { %v2782_v41 = vmul.f32 %v5403_v8, %v2778_v7 }
0x279a   :  { %v2776_v17 = vpop.permute.xlu0 %2775 }
0x279b   :  { %v2781_v39 = vmul.f32 %v5405_v18, %v2776_v17 }
0x279d   :  { %v2785_v20 = vrot.slane %v2781_v39, 1 }
0x279f   :  { %v2786_v42 = vsel %vm439_vm3, %v2782_v41, %v2785_v20 }
0x27a0   :  { %2787 = vrot.lane.b32.xlu0 %v2786_v42, %s5758_s28 }
0x2812   :  { %v2788_v14 = vpop.permute.xlu0 %2787 }
0x2813   :  { %v2790_v28 = vmul.f32 %v2788_v14, %v6100_v3 }
0x2815   :  { %v2792_v10 = vadd.f32 %v2791_v15, %v2790_v28  ;;  %2804 = vst.msk [vmem:[#allocation3 + $0x2] sm:$0x3] %vm463_vm4, %v2790_v28 }
0x2817   :  { %4912 = vmatmul.mubr.msk.f32.vlgmr.msra.gmra.mrb[16].mxu1 %vm295_vm1, %v2792_v10 }
0x2818   :  { %4931 = vmatprep.mubr.msk.f32.mxu1 %vm5756_vm0, %v5757_v1 }
0x28ea   :  { %v2874_v37 = vpop.f32.mrb[16].mxu1 }
0x28eb   :  { %v2879_v47 = vrot.slane %v2874_v37, 1  ;;  %2880 = vrot.lane.b32.xlu0 %v2874_v37, %s5764_s3  ;;  %v4913_v48 = vpop.f32.mrb[17].mxu1 }
0x28ed   :  { %2882 = vrot.lane.b32.xlu1 %v2879_v47, %s5764_s3 }
0x28f1   :  { %2797 = vrot.lane.b32.xlu1 %v2796_v60, %s5765_s8 }
0x295d   :  { %v2881_v46 = vpop.permute.xlu0 %2880 }
0x295e   :  { %v2886_v24 = vadd.f32 %v2881_v46, %v6045_v35 }
0x295f   :  { %v2883_v50 = vpop.permute.xlu1 %2882 }
0x2960   :  { %5410 = vtanh.f32 %v2886_v24  ;;  %v2887_v6 = vadd.f32 %v2883_v50, %v6043_v33 }
0x2962   :  { %5412 = vtanh.f32 %v2887_v6  ;;  %v4633_v4 = vmul.f32 -1.442695, %v2887_v6 }
0x2963   :  { %v2798_v38 = vpop.permute.xlu1 %2797  ;;  %5414 = vtanh.f32 %v1572_v53 }
0x2964   :  { %v2800_v54 = vmul.f32 %v2798_v38, %v6100_v3  ;;  %5416 = vtanh.f32 %v1571_v56  ;;  %v4632_v3 = vmul.f32 -1.442695, %v2886_v24 }
0x2966   :  { %v2802_v2 = vadd.f32 %v2801_v59, %v2800_v54  ;;  %5418 = vpow2.f32 %v4632_v3 }
0x2967   :  { %5420 = vpow2.f32 %v4633_v4  ;;  %v2965_v4 = vld [vmem:[#allocation3 + $0x8] sm:$0x3] }
0x2968   :  { %v2903_v12 = vrot.slane %v2802_v2, 1  ;;  %5422 = vpow2.f32 %v4608_v61 }
0x2969   :  { %5424 = vpow2.f32 %v4609_v63 }
0x296a   :  { %v5411_v45 = vpop.eup %5410 }
0x296b   :  { %2914 = vrot.lane.b32.xlu1 %v5411_v45, %s5759_s14 }
0x296c   :  { %v5413_v62 = vpop.eup %5412 }
0x296d   :  { %2916 = vrot.lane.b32.xlu0 %v5413_v62, %s5759_s14  ;;  %v5415_v33 = vpop.eup %5414 }
0x296e   :  { %v5417_v35 = vpop.eup %5416 }
0x296f   :  { %2906 = vrot.lane.b32.xlu1 %v2903_v12, %s5763_s9  ;;  %v2963_v12 = vld [vmem:[#allocation3 + $0x4] sm:$0x3] }
0x2970   :  { %v5419_v25 = vpop.eup %5418 }
0x2971   :  { %1485 = vrot.lane.b32.xlu0 %v6324_v40, %s5762_s30  ;;  %v5421_v9 = vpop.eup %5420  ;;  %v2894_v55 = vadd.f32 1.0, %v5419_v25 }
0x2972   :  { %v2895_v8 = vadd.f32 1.0, %v5421_v9  ;;  %v5423_v40 = vpop.eup %5422 }
0x2973   :  { %1602 = vrot.lane.b32.xlu1 %v5415_v33, %s5759_s14  ;;  %5426 = vrcp.f32 %v2894_v55  ;;  %v5425_v43 = vpop.eup %5424  ;;  %v1579_v18 = vadd.f32 1.0, %v5423_v40  ;;  %v2962_v55 = vld [vmem:[#allocation3 + $0x2] sm:$0x3]  ;;  %v6617_v40 = vld [vmem:[%s7098_s15 + $0x8] sm:$0xff] }
0x2974   :  { %5428 = vrcp.f32 %v2895_v8  ;;  %v1580_v11 = vadd.f32 1.0, %v5425_v43  ;;  %v6612_v8 = vld [vmem:[%s7098_s15] sm:$0xff] }
0x2975   :  { %1600 = vrot.lane.b32.xlu0 %v5417_v35, %s5759_s14  ;;  %5430 = vrcp.f32 %v1579_v18  ;;  %v6622_v43 = vpack.c.bf16 %v6617_v40, %v6612_v8  ;;  %v2966_v18 = vld [vmem:[#allocation3 + $0xa] sm:$0x3] }
0x2976   :  { %5432 = vrcp.f32 %v1580_v11  ;;  %v3009_v11 = vld [vmem:[%s7094_s11] sm:$0xff] }
0x2977   :  { %5117 = vmatpush3.bf16.msra.mxu1 %v6622_v43 }
0x2978   :  { %4929 = vmatprep.subr.mxu1 %v5757_v1 }
0x2979   :  { %2904 = vrot.lane.b32.xlu0 %v2802_v2, %s5763_s9 }
0x297d   :  { %v5427_v16 = vpop.eup %5426 }
0x297e   :  { %v5429_v21 = vpop.eup %5428 }
0x297f   :  { %v5431_v17 = vpop.eup %5430 }
0x2980   :  { %v5433_v39 = vpop.eup %5432 }
0x29dd   :  { %v2915_v26 = vpop.permute.xlu1 %2914 }
0x29de   :  { %v2920_v19 = vmul.f32 %v5427_v16, %v2915_v26  ;;  %v2968_v26 = vld [vmem:[#allocation3 + $0xe] sm:$0x3] }
0x29df   :  { %v2917_v27 = vpop.permute.xlu0 %2916 }
0x29e0   :  { %2924 = vrot.lane.b32.xlu0 %v2920_v19, %s5758_s28  ;;  %v2921_v29 = vmul.f32 %v5429_v21, %v2917_v27  ;;  %v3010_v19 = vld [vmem:[%s7094_s11 + $0x8] sm:$0xff] }
0x29e1   :  { %v2907_v30 = vpop.permute.xlu1 %2906  ;;  %v5107_v27 = vpack.c.bf16 %v3010_v19, %v3009_v11 }
0x29e2   :  { %2926 = vrot.lane.b32.xlu1 %v2921_v29, %s5758_s28  ;;  %v2911_v14 = vmul.f32 %v5429_v21, %v2907_v30  ;;  %v3011_v30 = vld [vmem:[%s7094_s11 + $0x10] sm:$0xff] }
0x29e3   :  { %v1486_v23 = vpop.permute.xlu0 %1485  ;;  %5108 = vmatprep.subr.bf16.mxu0 %v5107_v27 }
0x29e4   :  { %v1488_v31 = vmul.f32 %v1486_v23, %v6343_v57  ;;  %5110 = vmatpush3.bf16.msra.mxu0 %v5107_v27  ;;  %v3012_v23 = vld [vmem:[%s7094_s11 + $0x18] sm:$0xff] }
0x29e5   :  { %v1603_v36 = vpop.permute.xlu1 %1602 }
0x29e6   :  { %v1490_v32 = vadd.f32 %v1489_v5, %v1488_v31  ;;  %v1607_v41 = vmul.f32 %v5433_v39, %v1603_v36  ;;  %v5111_v5 = vpack.c.bf16 %v3012_v23, %v3011_v30  ;;  %v3192_v36 = vsel %vm3190_vm5, %v6617_v40, -inf }
0x29e7   :  { %v1601_v7 = vpop.permute.xlu0 %1600 }
0x29e8   :  { %v1588_v60 = vrot.slane %v1490_v32, 1  ;;  %v1589_v22 = vrot.slane %v1490_v32, 2  ;;  %v1606_v20 = vmul.f32 %v5431_v17, %v1601_v7  ;;  %5112 = vmatprep.subr.bf16.mxu0 %v5111_v5  ;;  %v6655_v7 = vld [vmem:[%s7098_s15 + $0x10] sm:$0x1f] }
0x29e9   :  { %5114 = vmatpush3.bf16.msra.mxu0 %v5111_v5  ;;  %4930 = vmatpush3.msk.msra.mxu1 %vm3289_vm10, %v6655_v7 }
0x29ea   :  { %1590 = vrot.lane.b32.xlu1 %v1588_v60, %s5758_s28  ;;  %1592 = vrot.lane.b32.xlu0 %v1589_v22, %s5758_s28  ;;  %v2967_v60 = vld [vmem:[#allocation3 + $0xc] sm:$0x3]  ;;  %v3191_v22 = vsel %vm3190_vm5, %v6612_v8, -inf }
0x29eb   :  { %v2905_v49 = vpop.permute.xlu0 %2904  ;;  %5121 = vmatprep.subr.bf16.mxu0 %v5755_v0  ;;  %5118 = vmatprep.subr.bf16.mxu1 %v5755_v0 }
0x29ec   :  { %v2910_v34 = vmul.f32 %v5427_v16, %v2905_v49 }
0x29ee   :  { %1610 = vrot.lane.b32.xlu1 %v1606_v20, %s5758_s28  ;;  %1612 = vrot.lane.b32.xlu0 %v1607_v41, %s5758_s28  ;;  %v6661_v41 = vld [vmem:[%s7084_s1 + $0x2] sm:$0x3] }
0x29ef   :  { %vm3461_vm7 = vcmp.gt.f32.partialorder %v6661_v41, 0.0 }
0x29f0   :  { %v3462_v20 = vsel %vm3461_vm7, 1, %v5760_v51 }
0x2a52   :  { %v2925_v57 = vpop.permute.xlu0 %2924 }
0x2a53   :  { %v2930_v42 = vadd.f32 %v2925_v57, %v2910_v34 }
0x2a54   :  { %v2927_v15 = vpop.permute.xlu1 %2926 }
0x2a55   :  { %5434 = vtanh.f32 %v2930_v42  ;;  %v2931_v28 = vadd.f32 %v2927_v15, %v2911_v14  ;;  %v5766_v42 = vmov 1983009808   ;;  %v3033_v15 = vlaneseq }
0x2a56   :  { %v3031_v14 = vunpack.c.l.s4 %v5766_v42 }
0x2a57   :  { %5436 = vtanh.f32 %v2931_v28 }
0x2a5c   :  { %v1593_v10 = vpop.permute.xlu0 %1592  ;;  %v1591_v37 = vpop.permute.xlu1 %1590 }
0x2a5d   :  { %v1597_v48 = vmul.f32 %v5433_v39, %v1593_v10  ;;  %v1596_v46 = vmul.f32 %v5431_v17, %v1591_v37  ;;  %v2956_v10 = vld [vmem:[#allocation2 + $0x6] sm:$0x3]  ;;  %v3032_v37 = vunpack.c.0.s8 %v3031_v14 }
0x2a5f   :  { %v5435_v47 = vpop.eup %5434 }
0x2a60   :  { %2936 = vrot.lane.b32.xlu0 %v5435_v47, %s5761_s12  ;;  %v1613_v24 = vpop.permute.xlu0 %1612  ;;  %v1611_v50 = vpop.permute.xlu1 %1610  ;;  %v3034_v47 = vshrl.u32 %v3033_v15, 7 }
0x2a61   :  { %v5437_v44 = vpop.eup %5436  ;;  %v1617_v6 = vadd.f32 %v1613_v24, %v1597_v48  ;;  %v1616_v52 = vadd.f32 %v1611_v50, %v1596_v46  ;;  %v2955_v24 = vld [vmem:[#allocation2 + $0x4] sm:$0x3] }
0x2a62   :  { %2938 = vrot.lane.b32.xlu1 %v5437_v44, %s5761_s12  ;;  %v2954_v44 = vld [vmem:[#allocation2 + $0x2] sm:$0x3] }
0x2a63   :  { %5438 = vtanh.f32 %v1617_v6  ;;  %v6668_v6 = vsub.s32 %v3032_v37, %v3034_v47 }
0x2a64   :  { %5440 = vtanh.f32 %v1616_v52 }
0x2a6d   :  { %v5439_v38 = vpop.eup %5438 }
0x2a6e   :  { %v5441_v53 = vpop.eup %5440  ;;  %1624 = vrot.lane.b32.xlu0 %v5439_v38, %s5761_s12  ;;  %v2958_v38 = vld [vmem:[#allocation2 + $0xa] sm:$0x3] }
0x2a6f   :  { %1622 = vrot.lane.b32.xlu1 %v5441_v53, %s5761_s12  ;;  %v2953_v53 = vld [vmem:[#allocation2] sm:$0x3] }
0x2ad2   :  { %v2937_v54 = vpop.permute.xlu0 %2936 }
0x2ad3   :  { %v2942_v2 = vmul.f32 %v5427_v16, %v2937_v54  ;;  %v2964_v16 = vld [vmem:[#allocation3 + $0x6] sm:$0x3] }
0x2ad4   :  { %v2939_v56 = vpop.permute.xlu1 %2938 }
0x2ad5   :  { %v2943_v59 = vmul.f32 %v5429_v21, %v2939_v56 }
0x2ad7   :  { %v2946_v45 = vrot.slane %v2943_v59, 7 }
0x2ad9   :  { %v2947_v62 = vsel %vm439_vm3, %v2946_v45, %v2942_v2  ;;  %v2957_v45 = vld [vmem:[#allocation2 + $0x8] sm:$0x3] }
0x2ada   :  { %2948 = vrot.lane.b32.xlu1 %v2947_v62, %s5758_s28 }
0x2ade   :  { %2981 = vrot.lane.b32.xlu1 %v2963_v12, %s5758_s28 }
0x2ae0   :  { %v1625_v33 = vpop.permute.xlu0 %1624 }
0x2ae1   :  { %v1629_v35 = vmul.f32 %v5433_v39, %v1625_v33  ;;  %v1623_v3 = vpop.permute.xlu1 %1622 }
0x2ae2   :  { %v1628_v25 = vmul.f32 %v5431_v17, %v1623_v3  ;;  %2985 = vrot.lane.b32.xlu1 %v2965_v4, %s5758_s28  ;;  %v3195_v17 = vmax.f32 %v3191_v22, %v3192_v36 }
0x2ae3   :  { %v1638_v61 = vrot.slane %v1629_v35, 6 }
0x2ae4   :  { %v1637_v63 = vrot.slane %v1628_v25, 7 }
0x2ae6   :  { %v1639_v9 = vsel %vm439_vm3, %v1638_v61, %v1637_v63  ;;  %v2959_v61 = vld [vmem:[#allocation2 + $0xc] sm:$0x3] }
0x2ae7   :  { %1640 = vrot.lane.b32.xlu0 %v1639_v9, %s5763_s9 }
0x2aeb   :  { %2979 = vrot.lane.b32.xlu0 %v2962_v55, %s5758_s28 }
0x2aef   :  { %2983 = vrot.lane.b32.xlu0 %v2964_v16, %s5758_s28 }
0x2af3   :  { %2987 = vrot.lane.b32.xlu0 %v2966_v18, %s5758_s28 }
0x2af7   :  { %2991 = vrot.lane.b32.xlu0 %v2968_v26, %s5758_s28 }
0x2b4c   :  { %v2949_v21 = vpop.permute.xlu1 %2948 }
0x2b4d   :  { %v2951_v29 = vmul.f32 %v2949_v21, %v6064_v13 }
0x2b4f   :  { %2952 = vst.msk [vmem:[#allocation3] sm:$0x3] %vm463_vm4, %v2951_v29 }
0x2b50   :  { %v2982_v34 = vpop.permute.xlu1 %2981 }
0x2b51   :  { %v3003_v50 = vsel %vm295_vm1, %v2955_v24, %v2982_v34  ;;  %v6702_v34 = vld [vmem:[%s7084_s1 + $0x4] sm:$0x3] }
0x2b52   :  { %vm3637_vm9 = vcmp.gt.f32.partialorder %v6702_v34, 0.0 }
0x2b54   :  { %v2986_v28 = vpop.permute.xlu1 %2985 }
0x2b55   :  { %v3005_v33 = vsel %vm295_vm1, %v2957_v45, %v2986_v28 }
0x2b56   :  { %v2961_v31 = vld [vmem:[#allocation3] sm:$0x3] }
0x2b57   :  { %2977 = vrot.lane.b32.xlu1 %v2961_v31, %s5758_s28 }
0x2b59   :  { %v1641_v13 = vpop.permute.xlu0 %1640 }
0x2b5a   :  { %v1643_v32 = vmul.f32 %v1641_v13, %v6345_v58  ;;  %v3194_v58 = vsel %vm3193_vm6, %v6655_v7, -inf  ;;  %v4634_v13 = vld [vmem:[#allocation16] ss:$0 sm:$0xff] }
0x2b5b   :  { %2989 = vrot.lane.b32.xlu1 %v2967_v60, %s5758_s28  ;;  %v3196_v39 = vmax.f32 %v3195_v17, %v3194_v58  ;;  %v4645_v17 = vld [vmem:[#allocation18] ss:$0 sm:$0xff] }
0x2b5c   :  { %1645 = vst.msk [vmem:[#allocation2 + $0xe] sm:$0x3] %vm463_vm4, %v1643_v32 }
0x2b5d   :  { %v2980_v49 = vpop.permute.xlu0 %2979 }
0x2b5e   :  { %v3002_v56 = vsel %vm295_vm1, %v2954_v44, %v2980_v49  ;;  %v3218_v49 = vld [vmem:[%s7085_s2] sm:$0x3]  ;;  %v6722_v44 = vand.u32 127, %v3033_v15 }
0x2b61   :  { %v2984_v57 = vpop.permute.xlu0 %2983 }
0x2b62   :  { %v3004_v46 = vsel %vm295_vm1, %v2956_v10, %v2984_v57  ;;  %v3638_v57 = vsel %vm3637_vm9, 1, %v5760_v51 }
0x2b63   :  { %v3029_v52 = vcombine.low %v3003_v50, %v3004_v46  ;;  %v2960_v4 = vld [vmem:[#allocation2 + $0xe] sm:$0x3] }
0x2b65   :  { %v2988_v48 = vpop.permute.xlu0 %2987  ;;  %v3043_v35 = vrot.slane %v3029_v52, %v6668_v6 }
0x2b66   :  { %v3006_v59 = vsel %vm295_vm1, %v2958_v38, %v2988_v48 }
0x2b67   :  { %v3045_v3 = vcombine.low %v3005_v33, %v3006_v59 }
0x2b69   :  { %v2992_v62 = vpop.permute.xlu0 %2991  ;;  %v3053_v26 = vrot.slane %v3045_v3, %v6668_v6 }
0x2b6a   :  { %v3008_v9 = vsel %vm295_vm1, %v2960_v4, %v2992_v62 }
0x2b7f   :  { %3197 = vmax.xlane.f32.xlu1 %v3196_v39 }
0x2b90   :  { %3464 = vperm.xlu1 %5185, %v3462_v20  }
0x2bc9   :  { %v2978_v54 = vpop.permute.xlu1 %2977 }
0x2bca   :  { %v3001_v2 = vsel %vm295_vm1, %v2953_v53, %v2978_v54 }
0x2bcb   :  { %v3028_v12 = vcombine.low %v3001_v2, %v3002_v56 }
0x2bcd   :  { %v3036_v25 = vrot.slane %v3028_v12, %v6668_v6  ;;  %v2990_v63 = vpop.permute.xlu1 %2989 }
0x2bce   :  { %v3007_v55 = vsel %vm295_vm1, %v2959_v61, %v2990_v63 }
0x2bcf   :  { %v3044_v16 = vcombine.low %v3036_v25, %v3043_v35  ;;  %v3046_v18 = vcombine.low %v3007_v55, %v3008_v9  ;;  %v6765_v9 = vld [vmem:[%s7084_s1 + $0x6] sm:$0x3] }
0x2bd0   :  { %vm3813_vm13 = vcmp.gt.f32.partialorder %v6765_v9, 0.0 }
0x2bd1   :  { %v3060_v11 = vrot.slane %v3046_v18, %v6668_v6  ;;  %4922 = vmatprep.mubr.msk.f32.mxu0 %vm199_vm2, %v3044_v16  ;;  %v3814_v55 = vsel %vm3813_vm13, 1, %v5760_v51 }
0x2bd3   :  { %v3061_v19 = vcombine.low %v3053_v26, %v3060_v11 }
0x2bd5   :  { %4923 = vmatmul.mubr.msk.f32.vlgmr.msra.gmra.mrb[16].mxu0 %vm199_vm2, %v3061_v19 }
0x2bd6   :  { %5123 = vmatpush3.bf16.msra.mxu0 %v6622_v43  ;;  %4949 = vmatprep.mubr.msk.f32.mxu0 %vm5756_vm0, %v5757_v1 }
0x2bd7   :  { %4947 = vmatprep.subr.mxu0 %v5757_v1 }
0x2bda   :  { %4948 = vmatpush3.msk.msra.mxu0 %vm3289_vm10, %v6655_v7 }
0x2bdb   :  { %5127 = vmatprep.subr.bf16.mxu0 %v5755_v0 }
0x2c0c   :  { %v3198_v21 = vpop.xlane.xlu1 %3197 }
0x2c0d   :  { %v3199_v27 = vrot.slane %v3198_v21, 4 }
0x2c0f   :  { %v3200_v29 = vmax.f32 %v3198_v21, %v3199_v27 }
0x2c10   :  { %v6752_v35 = vpop.permute.xlu1 %3464 }
0x2c11   :  { %v3201_v30 = vrot.slane %v3200_v29, 2  ;;  %vm3466_vm12 = vcmp.eq.s32.totalorder %v6752_v35, 1 }
0x2c13   :  { %v3202_v23 = vmax.f32 %v3200_v29, %v3201_v30 }
0x2c15   :  { %v3203_v5 = vrot.slane %v3202_v23, 1 }
0x2c17   :  { %v3204_v31 = vmax.f32 %v3202_v23, %v3203_v5 }
0x2c19   :  { %5157 = vpush %v3204_v31 }
0x2c4a   :  { %s5158_s17 = spop %5157 }
0x2c4b   :  { %v6712_v42 = vstv %s5158_s17 }
0x2c4c   :  { %v3207_v14 = vsub.f32 %v6612_v8, %v6712_v42  ;;  %v3208_v28 = vsub.f32 %v6617_v40, %v6712_v42  ;;  %v3209_v47 = vsub.f32 %v6655_v7, %v6712_v42 }
0x2c4e   :  { %v3210_v10 = vmul.f32 1.442695, %v3207_v14  ;;  %v3212_v37 = vmul.f32 1.442695, %v3208_v28  ;;  %v3214_v48 = vmul.f32 1.442695, %v3209_v47 }
0x2c50   :  { %5442 = vpow2.f32 %v3210_v10 }
0x2c51   :  { %5444 = vpow2.f32 %v3212_v37 }
0x2c52   :  { %5446 = vpow2.f32 %v3214_v48 }
0x2c5a   :  { %v5443_v8 = vpop.eup %5442 }
0x2c5b   :  { %v5445_v52 = vpop.eup %5444 }
0x2c5c   :  { %v6728_v53 = vpack.c.bf16 %v5445_v52, %v5443_v8  ;;  %v6736_v15 = vpop.eup %5446  ;;  %v6813_v52 = vld [vmem:[%s7084_s1 + $0x8] sm:$0x3] }
0x2c5d   :  { %vm3989_vm1 = vcmp.gt.f32.partialorder %v6813_v52, 0.0 }
0x2ca8   :  { %v4924_v32 = vpop.f32.mrb[16].mxu0 }
0x2ca9   :  { %v6686_v60 = vadd.f32 %v4924_v32, %v4634_v13  ;;  %v3132_v22 = vpop.f32.mrb[17].mxu0 }
0x2caa   :  { %v6688_v36 = vadd.f32 %v4634_v13, %v3132_v22 }
0x2cac   :  { %v3150_v58 = vrot.slane %v6688_v36, %v6668_v6  ;;  %v3143_v27 = vcombine.high %v6688_v36, %v6688_v36 }
0x2cae   :  { %v6692_v39 = vadd.f32 %v4645_v17, %v3150_v58  ;;  %v6754_v3 = vcombine.high %v3150_v58, %v3150_v58  ;;  %v6781_v5 = vrot.slane %v3143_v27, %v6668_v6 }
0x2cb0   :  { %v3374_v20 = vsel %vm3282_vm8, %v6692_v39, -inf  ;;  %v6801_v47 = vcombine.high %v6781_v5, %v6781_v5 }
0x2cb1   :  { %3375 = vmax.xlane.f32.xlu0 %v3374_v20 }
0x2cc7   :  { %3227 = vperm.xlu0 %5184, %v3218_v49  }
0x2ccb   :  { %3640 = vperm.xlu0 %5184, %v3638_v57  }
0x2d3e   :  { %v3376_v46 = vpop.xlane.xlu0 %3375 }
0x2d3f   :  { %v3377_v24 = vsub.f32 %v6692_v39, %v3376_v46  ;;  %v3456_v12 = vadd.f32 %v3376_v46, %v6712_v42 }
0x2d41   :  { %v3378_v50 = vmul.f32 1.442695, %v3377_v24 }
0x2d43   :  { %5448 = vpow2.f32 %v3378_v50 }
0x2d46   :  { %v3228_v40 = vpop.permute.xlu0 %3227 }
0x2d47   :  { %vm3250_vm11 = vcmp.eq.s32.totalorder %v6722_v44, %v3228_v40  ;;  %v3990_v40 = vsel %vm3989_vm1, 1, %v5760_v51 }
0x2d48   :  { %v6726_v38 = vsel %vm3250_vm11, 1.0, %v5757_v1 }
0x2d49   :  { %4932 = vmatmul.mubr.msk.f32.vlgmr.msra.gmra.mrb[18].mxu1 %vm3190_vm5, %v6726_v38 }
0x2d4a   :  { %5120 = vmatpush3.bf16.msra.mxu1 %v6728_v53  ;;  %4940 = vmatprep.mubr.msk.f32.mxu1 %vm5756_vm0, %v5757_v1  ;;  %v6783_v31 = vpop.permute.xlu0 %3640 }
0x2d4b   :  { %4938 = vmatprep.subr.mxu1 %v5757_v1  ;;  %vm3642_vm14 = vcmp.eq.s32.totalorder %v6783_v31, 1 }
0x2d4d   :  { %v5449_v54 = vpop.eup %5448 }
0x2d4e   :  { %4939 = vmatpush3.msk.msra.mxu1 %vm3289_vm10, %v6736_v15 }
0x2d4f   :  { %4941 = vmatmul.mubr.msk.f32.vlgmr.msra.gmra.mrb[20].mxu1 %vm3190_vm5, %v5449_v54  ;;  %5124 = vmatprep.subr.bf16.mxu1 %v5755_v0  ;;  %v6820_v54 = vld [vmem:[%s7084_s1 + $0xa] sm:$0x3] }
0x2d50   :  { %5126 = vmatpush3.bf16.msra.mxu1 %v6728_v53  ;;  %4958 = vmatprep.mubr.msk.f32.mxu1 %vm5756_vm0, %v5757_v1  ;;  %vm4165_vm2 = vcmp.gt.f32.partialorder %v6820_v54, 0.0 }
0x2d51   :  { %4956 = vmatprep.subr.mxu1 %v5757_v1 }
0x2d54   :  { %4957 = vmatpush3.msk.msra.mxu1 %vm3289_vm10, %v6736_v15 }
0x2d55   :  { %5130 = vmatprep.subr.bf16.mxu1 %v5755_v0 }
0x2e1c   :  { %v6749_v56 = vpop.f32.mrb[18].mxu1 }
0x2e1d   :  { %v4933_v59 = vpop.f32.mrb[19].mxu1 }
0x2e1e   :  { %v4166_v59 = vsel %vm4165_vm2, 1, %v5760_v51 }
0x2e22   :  { %v3452_v2 = vpop.f32.mrb[20].mxu1 }
0x2e23   :  { %5450 = vlog2.f32 %v3452_v2  ;;  %v4942_v45 = vpop.f32.mrb[21].mxu1 }
0x2e2d   :  { %v5451_v62 = vpop.eup %5450 }
0x2e2e   :  { %v3458_v33 = vmul.f32 0.6931472, %v5451_v62 }
0x2e30   :  { %v3459_v4 = vadd.f32 %v3458_v33, %v3456_v12 }
0x2e32   :  { %v3460_v25 = vadd.f32 %v3459_v4, %v6754_v3 }
0x2e34   :  { %v3467_v61 = vsel %vm3466_vm12, %v3460_v25, %v6692_v39 }
0x2e35   :  { %v3553_v63 = vsel %vm3282_vm8, %v3467_v61, -inf }
0x2e36   :  { %3554 = vmax.xlane.f32.xlu1 %v3553_v63 }
0x2e47   :  { %3816 = vperm.xlu1 %5185, %v3814_v55   ;;  %v6835_v55 = vrot.slane %v6686_v60, %v6668_v6 }
0x2ec3   :  { %v3555_v16 = vpop.xlane.xlu1 %3554 }
0x2ec4   :  { %v3556_v18 = vsub.f32 %v3467_v61, %v3555_v16  ;;  %v3632_v30 = vadd.f32 %v3555_v16, %v6712_v42 }
0x2ec6   :  { %v3557_v26 = vmul.f32 1.442695, %v3556_v18 }
0x2ec7   :  { %v6803_v48 = vpop.permute.xlu1 %3816 }
0x2ec8   :  { %5452 = vpow2.f32 %v3557_v26  ;;  %vm3818_vm15 = vcmp.eq.s32.totalorder %v6803_v48, 1 }
0x2ed2   :  { %v5453_v11 = vpop.eup %5452 }
0x2ed3   :  { %4959 = vmatmul.mubr.msk.f32.vlgmr.msra.gmra.mrb[22].mxu1 %vm3190_vm5, %v5453_v11 }
0x2ed4   :  { %5132 = vmatpush3.bf16.msra.mxu1 %v6728_v53  ;;  %4976 = vmatprep.mubr.msk.f32.mxu1 %vm5756_vm0, %v5757_v1 }
0x2ed5   :  { %4974 = vmatprep.subr.mxu1 %v5757_v1 }
0x2ed8   :  { %4975 = vmatpush3.msk.msra.mxu1 %vm3289_vm10, %v6736_v15 }
0x2ed9   :  { %5136 = vmatprep.subr.bf16.mxu1 %v5755_v0 }
0x2fa6   :  { %v3628_v19 = vpop.f32.mrb[22].mxu1 }
0x2fa7   :  { %5454 = vlog2.f32 %v3628_v19  ;;  %v4960_v21 = vpop.f32.mrb[23].mxu1 }
0x2fa8   :  { %v6847_v21 = vld [vmem:[%s7084_s1 + $0xc] sm:$0x3] }
0x2fa9   :  { %vm4341_vm4 = vcmp.gt.f32.partialorder %v6847_v21, 0.0 }
0x2faa   :  { %v4342_v27 = vsel %vm4341_vm4, 1, %v5760_v51 }
0x2fb1   :  { %v5455_v29 = vpop.eup %5454 }
0x2fb2   :  { %v3634_v23 = vmul.f32 0.6931472, %v5455_v29  ;;  %v3220_v29 = vld [vmem:[%s7085_s2 + $0x4] sm:$0x3] }
0x2fb4   :  { %v3635_v13 = vadd.f32 %v3634_v23, %v3632_v30  ;;  %v3221_v30 = vld [vmem:[%s7085_s2 + $0x6] sm:$0x3]  ;;  %v3222_v23 = vld [vmem:[%s7085_s2 + $0x8] sm:$0x3] }
0x2fb6   :  { %v3636_v32 = vadd.f32 %v3635_v13, %v6781_v5  ;;  %v3223_v13 = vld [vmem:[%s7085_s2 + $0xa] sm:$0x3] }
0x2fb8   :  { %v3643_v22 = vsel %vm3642_vm14, %v3636_v32, %v3467_v61  ;;  %v3224_v32 = vld [vmem:[%s7085_s2 + $0xc] sm:$0x3] }
0x2fb9   :  { %v3729_v17 = vsel %vm3282_vm8, %v3643_v22, -inf }
0x2fba   :  { %3730 = vmax.xlane.f32.xlu0 %v3729_v17 }
0x3047   :  { %v3731_v36 = vpop.xlane.xlu0 %3730 }
0x3048   :  { %v3732_v58 = vsub.f32 %v3643_v22, %v3731_v36  ;;  %v3808_v10 = vadd.f32 %v3731_v36, %v6712_v42 }
0x304a   :  { %v3733_v20 = vmul.f32 1.442695, %v3732_v58 }
0x304c   :  { %5456 = vpow2.f32 %v3733_v20 }
0x3056   :  { %v5457_v49 = vpop.eup %5456 }
0x3057   :  { %4977 = vmatmul.mubr.msk.f32.vlgmr.msra.gmra.mrb[24].mxu1 %vm3190_vm5, %v5457_v49 }
0x3058   :  { %5138 = vmatpush3.bf16.msra.mxu1 %v6728_v53  ;;  %4994 = vmatprep.mubr.msk.f32.mxu1 %vm5756_vm0, %v5757_v1 }
0x3059   :  { %4992 = vmatprep.subr.mxu1 %v5757_v1 }
0x305c   :  { %4993 = vmatpush3.msk.msra.mxu1 %vm3289_vm10, %v6736_v15 }
0x305d   :  { %5142 = vmatprep.subr.bf16.mxu1 %v5755_v0 }
0x312a   :  { %v3804_v57 = vpop.f32.mrb[24].mxu1 }
0x312b   :  { %5458 = vlog2.f32 %v3804_v57  ;;  %v4978_v14 = vpop.f32.mrb[25].mxu1 }
0x3135   :  { %v5459_v28 = vpop.eup %5458 }
0x3136   :  { %v3810_v37 = vmul.f32 0.6931472, %v5459_v28 }
0x3138   :  { %v3811_v46 = vadd.f32 %v3810_v37, %v3808_v10  ;;  %v6877_v10 = vcombine.high %v6835_v55, %v6835_v55 }
0x313a   :  { %v3812_v24 = vadd.f32 %v3811_v46, %v6801_v47 }
0x313c   :  { %v3819_v50 = vsel %vm3818_vm15, %v3812_v24, %v3643_v22 }
0x313d   :  { %v3905_v8 = vsel %vm3282_vm8, %v3819_v50, -inf }
0x313e   :  { %3906 = vmax.xlane.f32.xlu0 %v3905_v8 }
0x3154   :  { %3992 = vperm.xlu0 %5184, %v3990_v40  }
0x3158   :  { %4168 = vperm.xlu0 %5184, %v4166_v59  }
0x31cb   :  { %v3907_v2 = vpop.xlane.xlu0 %3906 }
0x31cc   :  { %v3908_v45 = vsub.f32 %v3819_v50, %v3907_v2  ;;  %v3984_v61 = vadd.f32 %v3907_v2, %v6712_v42 }
0x31ce   :  { %v3909_v62 = vmul.f32 1.442695, %v3908_v45 }
0x31d0   :  { %5460 = vpow2.f32 %v3909_v62 }
0x31d3   :  { %v6837_v16 = vpop.permute.xlu0 %3992 }
0x31d4   :  { %vm3994_vm3 = vcmp.eq.s32.totalorder %v6837_v16, 1 }
0x31d7   :  { %v6879_v37 = vpop.permute.xlu0 %4168 }
0x31d8   :  { %vm4170_vm6 = vcmp.eq.s32.totalorder %v6879_v37, 1 }
0x31da   :  { %v5461_v12 = vpop.eup %5460 }
0x31db   :  { %4995 = vmatmul.mubr.msk.f32.vlgmr.msra.gmra.mrb[26].mxu1 %vm3190_vm5, %v5461_v12 }
0x31dc   :  { %5144 = vmatpush3.bf16.msra.mxu1 %v6728_v53  ;;  %5012 = vmatprep.mubr.msk.f32.mxu1 %vm5756_vm0, %v5757_v1 }
0x31dd   :  { %5010 = vmatprep.subr.mxu1 %v5757_v1 }
0x31e0   :  { %5011 = vmatpush3.msk.msra.mxu1 %vm3289_vm10, %v6736_v15 }
0x31e1   :  { %5148 = vmatprep.subr.bf16.mxu1 %v5755_v0 }
0x32ae   :  { %v3980_v33 = vpop.f32.mrb[26].mxu1 }
0x32af   :  { %5462 = vlog2.f32 %v3980_v33  ;;  %v4996_v4 = vpop.f32.mrb[27].mxu1  ;;  %v3160_v33 = vcombine.high %v6686_v60, %v6686_v60 }
0x32b9   :  { %v5463_v25 = vpop.eup %5462 }
0x32ba   :  { %v3986_v63 = vmul.f32 0.6931472, %v5463_v25 }
0x32bc   :  { %v3987_v18 = vadd.f32 %v3986_v63, %v3984_v61 }
0x32be   :  { %v3988_v26 = vadd.f32 %v3987_v18, %v6835_v55 }
0x32c0   :  { %v3995_v11 = vsel %vm3994_vm3, %v3988_v26, %v3819_v50 }
0x32c1   :  { %v4081_v19 = vsel %vm3282_vm8, %v3995_v11, -inf }
0x32c2   :  { %4082 = vmax.xlane.f32.xlu1 %v4081_v19 }
0x32d3   :  { %4344 = vperm.xlu1 %5185, %v4342_v27   ;;  %v3225_v27 = vld [vmem:[%s7085_s2 + $0xe] sm:$0x3] }
0x32d7   :  { %3233 = vperm.xlu1 %5185, %v3220_v29  }
0x32db   :  { %3236 = vperm.xlu1 %5185, %v3221_v30  }
0x32df   :  { %3239 = vperm.xlu1 %5185, %v3222_v23  }
0x32e3   :  { %3242 = vperm.xlu1 %5185, %v3223_v13  }
0x32e7   :  { %3245 = vperm.xlu1 %5185, %v3224_v32  }
0x334f   :  { %v4083_v22 = vpop.xlane.xlu1 %4082 }
0x3350   :  { %v4084_v17 = vsub.f32 %v3995_v11, %v4083_v22  ;;  %v4160_v14 = vadd.f32 %v4083_v22, %v6712_v42 }
0x3352   :  { %v4085_v36 = vmul.f32 1.442695, %v4084_v17 }
0x3353   :  { %v6899_v63 = vpop.permute.xlu1 %4344 }
0x3354   :  { %5464 = vpow2.f32 %v4085_v36  ;;  %vm4346_vm7 = vcmp.eq.s32.totalorder %v6899_v63, 1 }
0x3357   :  { %v3234_v32 = vpop.permute.xlu1 %3233 }
0x3358   :  { %vm3252_vm13 = vcmp.eq.s32.totalorder %v6722_v44, %v3234_v32 }
0x335e   :  { %v5465_v58 = vpop.eup %5464 }
0x335f   :  { %5013 = vmatmul.mubr.msk.f32.vlgmr.msra.gmra.mrb[28].mxu1 %vm3190_vm5, %v5465_v58  ;;  %v6941_v58 = vsel %vm3252_vm13, 1.0, %v5757_v1 }
0x3360   :  { %5150 = vmatpush3.bf16.msra.mxu1 %v6728_v53  ;;  %5030 = vmatprep.mubr.msk.f32.mxu1 %vm5756_vm0, %v5757_v1 }
0x3361   :  { %5028 = vmatprep.subr.mxu1 %v5757_v1 }
0x3364   :  { %5029 = vmatpush3.msk.msra.mxu1 %vm3289_vm10, %v6736_v15 }
0x3365   :  { %5154 = vmatprep.subr.bf16.mxu1 %v5755_v0 }
0x3432   :  { %v4156_v20 = vpop.f32.mrb[28].mxu1 }
0x3433   :  { %5466 = vlog2.f32 %v4156_v20  ;;  %v5014_v49 = vpop.f32.mrb[29].mxu1  ;;  %v3237_v20 = vpop.permute.xlu1 %3236 }
0x3434   :  { %vm3253_vm1 = vcmp.eq.s32.totalorder %v6722_v44, %v3237_v20 }
0x3437   :  { %v3240_v49 = vpop.permute.xlu1 %3239 }
0x3438   :  { %vm3254_vm2 = vcmp.eq.s32.totalorder %v6722_v44, %v3240_v49 }
0x343d   :  { %v5467_v57 = vpop.eup %5466 }
0x343e   :  { %v4162_v28 = vmul.f32 0.6931472, %v5467_v57  ;;  %v6968_v57 = vsel %vm3254_vm2, 1.0, %v5757_v1 }
0x3440   :  { %v4163_v46 = vadd.f32 %v4162_v28, %v4160_v14  ;;  %v3243_v14 = vpop.permute.xlu1 %3242 }
0x3441   :  { %vm3255_vm4 = vcmp.eq.s32.totalorder %v6722_v44, %v3243_v14 }
0x3442   :  { %v4164_v24 = vadd.f32 %v4163_v46, %v6877_v10  ;;  %v6981_v28 = vsel %vm3255_vm4, 1.0, %v5757_v1 }
0x3444   :  { %v4171_v50 = vsel %vm4170_vm6, %v4164_v24, %v3995_v11  ;;  %v6915_v11 = vld [vmem:[%s7084_s1 + $0xe] sm:$0x3]  ;;  %v3246_v46 = vpop.permute.xlu1 %3245  ;;  %s5767_s1 = smov [#allocation21]  }
0x3445   :  { %v4257_v8 = vsel %vm3282_vm8, %v4171_v50, -inf  ;;  %vm4517_vm9 = vcmp.gt.f32.partialorder %v6915_v11, 0.0 }
0x3446   :  { %4258 = vmax.xlane.f32.xlu0 %v4257_v8  ;;  %v4518_v19 = vsel %vm4517_vm9, 1, %v5760_v51  ;;  %vm3256_vm9 = vcmp.eq.s32.totalorder %v6722_v44, %v3246_v46 }
0x3447   :  { %v6994_v24 = vsel %vm3256_vm9, 1.0, %v5757_v1 }
0x34d3   :  { %v4259_v40 = vpop.xlane.xlu0 %4258 }
0x34d4   :  { %v4260_v59 = vsub.f32 %v4171_v50, %v4259_v40  ;;  %v4336_v25 = vadd.f32 %v4259_v40, %v6712_v42  ;;  %v3281_v40 = vmul.f32 %v6726_v38, %v6692_v39 }
0x34d6   :  { %v4261_v2 = vmul.f32 1.442695, %v4260_v59 }
0x34d8   :  { %5468 = vpow2.f32 %v4261_v2 }
0x34e2   :  { %v5469_v45 = vpop.eup %5468 }
0x34e3   :  { %5031 = vmatmul.mubr.msk.f32.vlgmr.msra.gmra.mrb[30].mxu1 %vm3190_vm5, %v5469_v45 }
0x34e4   :  { %5156 = vmatpush3.bf16.msra.mxu1 %v6728_v53  ;;  %5048 = vmatprep.mubr.msk.f32.mxu1 %vm5756_vm0, %v5757_v1  ;;  %v6897_v53 = vrot.slane %v3160_v33, %v6668_v6  ;;  %v3219_v6 = vld [vmem:[%s7085_s2 + $0x2] sm:$0x3]  ;;  %s4569_s2 = sshll.u32 %s5767_s1, 4  ;;  %s4570_s2 = int_to_ptr.vmem [resolvable:$true] %s4569_s2 }
0x34e5   :  { %5046 = vmatprep.subr.mxu1 %v5757_v1  ;;  %s5707_s27 = scalar_lea.vmem %s4570_s2, 16  ;;  %s5711_s24 = scalar_lea.vmem %s4570_s2, 32 }
0x34e6   :  { %p5708_p10 = scmp.ne.s32.totalorder %s4570_s2, %s5707_s27  ;;  %p5712_p11 = scmp.lt.s32.totalorder %s4570_s2, %s4570_s2 }
0x34e7   :  { %p5713_p12 = scmp.lt.s32.totalorder %s5711_s24, %s5707_s27 }
0x34e8   :  { %5047 = vmatpush3.msk.msra.mxu1 %vm3289_vm10, %v6736_v15 }
0x34e9   :  { %p5714_p13 = por %p5713_p12, %p5712_p11 }
0x34eb   :  { %p5715_p0 = pnand %p5714_p13, %p5708_p10 }
0x35b6   :  { %v4332_v62 = vpop.f32.mrb[30].mxu1 }
0x35b7   :  { %5470 = vlog2.f32 %v4332_v62  ;;  %v5032_v12 = vpop.f32.mrb[31].mxu1 }
0x35c1   :  { %v5471_v4 = vpop.eup %5470 }
0x35c2   :  { %v4338_v61 = vmul.f32 0.6931472, %v5471_v4 }
0x35c4   :  { %v4339_v18 = vadd.f32 %v4338_v61, %v4336_v25 }
0x35c6   :  { %v4340_v26 = vadd.f32 %v4339_v18, %v6897_v53 }
0x35c8   :  { %v6905_v15 = vsel %vm4346_vm7, %v4340_v26, %v4171_v50 }
0x35c9   :  { %v4433_v60 = vsel %vm3282_vm8, %v6905_v15, -inf }
0x35ca   :  { %4434 = vmax.xlane.f32.xlu0 %v4433_v60 }
0x35e0   :  { %3230 = vperm.xlu0 %5184, %v3219_v6  }
0x35e4   :  { %4520 = vperm.xlu0 %5184, %v4518_v19  }
0x35e8   :  { %3248 = vperm.xlu0 %5184, %v3225_v27  }
0x3657   :  { %v6922_v29 = vpop.xlane.xlu0 %4434 }
0x3658   :  { %v4436_v30 = vsub.f32 %v6905_v15, %v6922_v29 }
0x365a   :  { %v4437_v23 = vmul.f32 1.442695, %v4436_v30  ;;  %v3176_v30 = vcombine.high %v6897_v53, %v6897_v53 }
0x365c   :  { %5472 = vpow2.f32 %v4437_v23 }
0x365f   :  { %v3231_v13 = vpop.permute.xlu0 %3230 }
0x3660   :  { %vm3251_vm11 = vcmp.eq.s32.totalorder %v6722_v44, %v3231_v13 }
0x3661   :  { %v6928_v22 = vsel %vm3251_vm11, 1.0, %v5757_v1 }
0x3662   :  { %4950 = vmatmul.mubr.msk.f32.vlgmr.msra.gmra.mrb[18].mxu0 %vm3190_vm5, %v6928_v22  ;;  %v3363_v51 = vmul.f32 %v6928_v22, %v6749_v56  ;;  %v6955_v56 = vsel %vm3253_vm1, 1.0, %v5757_v1  ;;  %v3468_v39 = vsel %vm3466_vm12, %v6928_v22, %v6726_v38  ;;  %v3367_v16 = vmul.f32 %v6928_v22, %v6754_v3 }
0x3663   :  { %5129 = vmatpush3.bf16.msra.mxu0 %v6622_v43  ;;  %4967 = vmatprep.mubr.msk.f32.mxu0 %vm5756_vm0, %v5757_v1  ;;  %v3722_v12 = vmul.f32 %v6955_v56, %v6801_v47  ;;  %v4521_v18 = vpop.permute.xlu0 %4520  ;;  %v4512_v47 = vadd.f32 %v6922_v29, %v6712_v42  ;;  %v3644_v6 = vsel %vm3642_vm14, %v6941_v58, %v3468_v39  ;;  %v4674_v29 = vld [vmem:[#allocation19] ss:$0 sm:$0xff] }
0x3664   :  { %4965 = vmatprep.subr.mxu0 %v5757_v1  ;;  %v3364_v17 = vsel %vm3282_vm8, %v3363_v51, 0.0  ;;  %v3820_v13 = vsel %vm3818_vm15, %v6955_v56, %v3644_v6  ;;  %v3368_v37 = vsel %vm3282_vm8, %v3367_v16, 0.0 }
0x3665   :  { %3365 = vadd.xlane.f32.xlu0 %v3364_v17  ;;  %v3723_v33 = vsel %vm3282_vm8, %v3722_v12, 0.0  ;;  %v3996_v31 = vsel %vm3994_vm3, %v6968_v57, %v3820_v13 }
0x3666   :  { %v5473_v36 = vpop.eup %5472  ;;  %v4172_v14 = vsel %vm4170_vm6, %v6981_v28, %v3996_v31 }
0x3667   :  { %4966 = vmatpush3.msk.msra.mxu0 %vm3289_vm10, %v6655_v7  ;;  %5049 = vmatmul.mubr.msk.f32.vlgmr.msra.gmra.mrb[32].mxu1 %vm3190_vm5, %v5473_v36  ;;  %v3249_v32 = vpop.permute.xlu0 %3248 }
0x3668   :  { %4968 = vmatmul.mubr.msk.f32.vlgmr.msra.gmra.mrb[20].mxu0 %vm3190_vm5, %v6941_v58  ;;  %5133 = vmatprep.subr.bf16.mxu0 %v5755_v0 }
0x3669   :  { %5135 = vmatpush3.bf16.msra.mxu0 %v6622_v43  ;;  %4985 = vmatprep.mubr.msk.f32.mxu0 %vm5756_vm0, %v5757_v1 }
0x366a   :  { %4983 = vmatprep.subr.mxu0 %v5757_v1 }
0x366d   :  { %4984 = vmatpush3.msk.msra.mxu0 %vm3289_vm10, %v6655_v7 }
0x366e   :  { %4986 = vmatmul.mubr.msk.f32.vlgmr.msra.gmra.mrb[22].mxu0 %vm3190_vm5, %v6955_v56  ;;  %5139 = vmatprep.subr.bf16.mxu0 %v5755_v0 }
0x366f   :  { %5141 = vmatpush3.bf16.msra.mxu0 %v6622_v43  ;;  %5003 = vmatprep.mubr.msk.f32.mxu0 %vm5756_vm0, %v5757_v1 }
0x3670   :  { %5001 = vmatprep.subr.mxu0 %v5757_v1 }
0x3673   :  { %5002 = vmatpush3.msk.msra.mxu0 %vm3289_vm10, %v6655_v7 }
0x3674   :  { %5004 = vmatmul.mubr.msk.f32.vlgmr.msra.gmra.mrb[24].mxu0 %vm3190_vm5, %v6968_v57  ;;  %5145 = vmatprep.subr.bf16.mxu0 %v5755_v0 }
0x3675   :  { %5147 = vmatpush3.bf16.msra.mxu0 %v6622_v43  ;;  %5021 = vmatprep.mubr.msk.f32.mxu0 %vm5756_vm0, %v5757_v1 }
0x3676   :  { %5019 = vmatprep.subr.mxu0 %v5757_v1 }
0x3679   :  { %5020 = vmatpush3.msk.msra.mxu0 %vm3289_vm10, %v6655_v7 }
0x367a   :  { %5022 = vmatmul.mubr.msk.f32.vlgmr.msra.gmra.mrb[26].mxu0 %vm3190_vm5, %v6981_v28  ;;  %5151 = vmatprep.subr.bf16.mxu0 %v5755_v0 }
0x367b   :  { %5153 = vmatpush3.bf16.msra.mxu0 %v6622_v43  ;;  %5039 = vmatprep.mubr.msk.f32.mxu0 %vm5756_vm0, %v5757_v1  ;;  %vm4522_vm0 = vcmp.eq.s32.totalorder %v4521_v18, 1 }
0x367c   :  { %5037 = vmatprep.subr.mxu0 %v5757_v1 }
0x367f   :  { %5038 = vmatpush3.msk.msra.mxu0 %vm3289_vm10, %v6655_v7  ;;  %v3283_v7 = vsel %vm3282_vm8, %v3281_v40, 0.0  ;;  %vm4561_vm10 = vcmask 0  }
0x3680   :  { %5040 = vmatmul.mubr.msk.f32.vlgmr.msra.gmra.mrb[28].mxu0 %vm3190_vm5, %v6994_v24  ;;  %vm3257_vm5 = vcmp.eq.s32.totalorder %v6722_v44, %v3249_v32  ;;  %v4348_v44 = vsel %vm4346_vm7, %v6994_v24, %v4172_v14 }
0x3735   :  { %v3538_v50 = vpop.f32.mrb[18].mxu0 }
0x3736   :  { %v3542_v0 = vmul.f32 %v6941_v58, %v3538_v50  ;;  %v4951_v43 = vpop.f32.mrb[19].mxu0  ;;  %v4644_v50 = vsel %vm3257_vm5, 1.0, %v5757_v1 }
0x3738   :  { %v3543_v8 = vsel %vm3282_vm8, %v3542_v0, 0.0  ;;  %v4524_v0 = vsel %vm4522_vm0, %v4644_v50, %v4348_v44 }
0x3739   :  { %3544 = vadd.xlane.f32.xlu0 %v3543_v8  ;;  %v3546_v8 = vmul.f32 %v6941_v58, %v6781_v5  ;;  %v4531_v22 = vmul.f32 %v4674_v29, %v4524_v0  ;;  %v3898_v5 = vmul.f32 %v6968_v57, %v6835_v55  ;;  %v4250_v55 = vmul.f32 %v6994_v24, %v6897_v53 }
0x373a   :  { %v4508_v59 = vpop.f32.mrb[32].mxu1 }
0x373b   :  { %v3714_v2 = vpop.f32.mrb[20].mxu0  ;;  %5474 = vlog2.f32 %v4508_v59  ;;  %v5050_v45 = vpop.f32.mrb[33].mxu1  ;;  %v3547_v63 = vsel %vm3282_vm8, %v3546_v8, 0.0  ;;  %v3899_v58 = vsel %vm3282_vm8, %v3898_v5, 0.0 }
0x373c   :  { %v4969_v62 = vpop.f32.mrb[21].mxu0  ;;  %v3718_v59 = vmul.f32 %v6955_v56, %v3714_v2  ;;  %v4532_v45 = vsel %vm3282_vm8, %v4531_v22, 0.0 }
0x373d   :  { %3284 = vadd.xlane.f32.xlu0 %v3283_v7  ;;  %v4074_v7 = vmul.f32 %v6981_v28, %v6877_v10 }
0x373e   :  { %v3719_v62 = vsel %vm3282_vm8, %v3718_v59, 0.0 }
0x373f   :  { %v4075_v56 = vsel %vm3282_vm8, %v4074_v7, 0.0 }
0x3741   :  { %v3890_v4 = vpop.f32.mrb[22].mxu0  ;;  %3724 = vadd.xlane.f32.xlu0 %v3723_v33 }
0x3742   :  { %v3894_v25 = vmul.f32 %v6968_v57, %v3890_v4  ;;  %v4987_v61 = vpop.f32.mrb[23].mxu0  ;;  %v4251_v57 = vsel %vm3282_vm8, %v4250_v55, 0.0 }
0x3743   :  { %v4426_v61 = vmul.f32 %v4644_v50, %v3176_v30 }
0x3744   :  { %v3895_v26 = vsel %vm3282_vm8, %v3894_v25, 0.0 }
0x3745   :  { %v5475_v60 = vpop.eup %5474  ;;  %3896 = vadd.xlane.f32.xlu0 %v3895_v26  ;;  %v4427_v10 = vsel %vm3282_vm8, %v4426_v61, 0.0 }
0x3746   :  { %v4514_v19 = vmul.f32 0.6931472, %v5475_v60 }
0x3747   :  { %v4066_v27 = vpop.f32.mrb[24].mxu0 }
0x3748   :  { %v4515_v23 = vadd.f32 %v4514_v19, %v4512_v47  ;;  %v4070_v38 = vmul.f32 %v6981_v28, %v4066_v27  ;;  %v5005_v35 = vpop.f32.mrb[25].mxu0  ;;  %v3366_v28 = vpop.xlane.xlu0 %3365 }
0x374a   :  { %v4516_v51 = vadd.f32 %v4515_v23, %v3176_v30  ;;  %v4071_v42 = vsel %vm3282_vm8, %v4070_v38, 0.0 }
0x374b   :  { %4072 = vadd.xlane.f32.xlu0 %v4071_v42 }
0x374c   :  { %v4523_v17 = vsel %vm4522_vm0, %v4516_v51, %v6905_v15 }
0x374d   :  { %v4242_v36 = vpop.f32.mrb[26].mxu0  ;;  %v4536_v20 = vadd.f32 %v4674_v29, %v4523_v17 }
0x374e   :  { %v4246_v48 = vmul.f32 %v6994_v24, %v4242_v36  ;;  %v5023_v49 = vpop.f32.mrb[27].mxu0 }
0x374f   :  { %v4537_v46 = vsel %vm3282_vm8, %v4536_v20, -inf }
0x3750   :  { %v4247_v15 = vsel %vm3282_vm8, %v4246_v48, 0.0  ;;  %4538 = vmax.xlane.f32.xlu1 %v4537_v46 }
0x3751   :  { %4248 = vadd.xlane.f32.xlu0 %v4247_v15 }
0x3753   :  { %v4418_v43 = vpop.f32.mrb[28].mxu0 }
0x3754   :  { %v4422_v40 = vmul.f32 %v4644_v50, %v4418_v43  ;;  %v5041_v3 = vpop.f32.mrb[29].mxu0  ;;  %3369 = vadd.xlane.f32.xlu1 %v3368_v37 }
0x3756   :  { %v4423_v1 = vsel %vm3282_vm8, %v4422_v40, 0.0 }
0x3757   :  { %4424 = vadd.xlane.f32.xlu0 %v4423_v1 }
0x3758   :  { %3548 = vadd.xlane.f32.xlu1 %v3547_v63 }
0x375b   :  { %4533 = vadd.xlane.f32.xlu0 %v4532_v45 }
0x375c   :  { %3720 = vadd.xlane.f32.xlu1 %v3719_v62 }
0x3760   :  { %3900 = vadd.xlane.f32.xlu1 %v3899_v58 }
0x3764   :  { %4076 = vadd.xlane.f32.xlu1 %v4075_v56 }
0x37c6   :  { %v3545_v18 = vpop.xlane.xlu0 %3544 }
0x37ca   :  { %v3285_v60 = vpop.xlane.xlu0 %3284 }
0x37ce   :  { %v3725_v6 = vpop.xlane.xlu0 %3724 }
0x37d2   :  { %v3897_v23 = vpop.xlane.xlu0 %3896 }
0x37d8   :  { %v4073_v32 = vpop.xlane.xlu0 %4072 }
0x37dd   :  { %v4539_v2 = vpop.xlane.xlu1 %4538 }
0x37de   :  { %v4540_v12 = vsub.f32 %v4536_v20, %v4539_v2  ;;  %v4249_v20 = vpop.xlane.xlu0 %4248 }
0x37e0   :  { %v4541_v33 = vmul.f32 1.442695, %v4540_v12 }
0x37e1   :  { %v3370_v39 = vpop.xlane.xlu1 %3369 }
0x37e2   :  { %5476 = vpow2.f32 %v4541_v33  ;;  %v3371_v27 = vadd.f32 %v3370_v39, %v3366_v28 }
0x37e4   :  { %v3372_v24 = vmul.f32 %v6661_v41, %v3371_v27  ;;  %v4425_v16 = vpop.xlane.xlu0 %4424 }
0x37e5   :  { %v3549_v26 = vpop.xlane.xlu1 %3548 }
0x37e6   :  { %v3550_v38 = vadd.f32 %v3549_v26, %v3545_v18  ;;  %v3373_v42 = vadd.f32 %v3372_v24, %v3285_v60 }
0x37e8   :  { %v3551_v30 = vmul.f32 %v6702_v34, %v3550_v38 }
0x37e9   :  { %v3721_v47 = vpop.xlane.xlu1 %3720 }
0x37ea   :  { %v3726_v35 = vadd.f32 %v3725_v6, %v3721_v47  ;;  %v3552_v17 = vadd.f32 %v3551_v30, %v3373_v42 }
0x37ec   :  { %v5477_v4 = vpop.eup %5476  ;;  %v3727_v31 = vmul.f32 %v6765_v9, %v3726_v35 }
0x37ed   :  { %v4543_v25 = vsel %vm3282_vm8, %v5477_v4, 0.0  ;;  %v3901_v19 = vpop.xlane.xlu1 %3900  ;;  %vm4550_vm8 = vcmask 1024  }
0x37ee   :  { %4544 = vadd.xlane.f32.xlu1 %v4543_v25  ;;  %v3902_v13 = vadd.f32 %v3901_v19, %v3897_v23  ;;  %v3728_v49 = vadd.f32 %v3727_v31, %v3552_v17 }
0x37f0   :  { %v3903_v36 = vmul.f32 %v6813_v52, %v3902_v13  ;;  %v4534_v52 = vpop.xlane.xlu0 %4533 }
0x37f1   :  { %v4077_v53 = vpop.xlane.xlu1 %4076 }
0x37f2   :  { %4252 = vadd.xlane.f32.xlu1 %v4251_v57  ;;  %v4078_v29 = vadd.f32 %v4077_v53, %v4073_v32  ;;  %v3904_v46 = vadd.f32 %v3903_v36, %v3728_v49 }
0x37f4   :  { %v4079_v14 = vmul.f32 %v6820_v54, %v4078_v29 }
0x37f6   :  { %4428 = vadd.xlane.f32.xlu1 %v4427_v10  ;;  %v4080_v15 = vadd.f32 %v4079_v14, %v3904_v46 }
0x387b   :  { %v4545_v51 = vpop.xlane.xlu1 %4544 }
0x387c   :  { %5478 = vlog2.f32 %v4545_v51 }
0x387f   :  { %v4253_v48 = vpop.xlane.xlu1 %4252 }
0x3880   :  { %v4254_v41 = vadd.f32 %v4253_v48, %v4249_v20 }
0x3882   :  { %v4255_v34 = vmul.f32 %v6847_v21, %v4254_v41 }
0x3883   :  { %v4429_v50 = vpop.xlane.xlu1 %4428 }
0x3884   :  { %v4430_v44 = vadd.f32 %v4429_v50, %v4425_v16  ;;  %v4256_v9 = vadd.f32 %v4255_v34, %v4080_v15 }
0x3886   :  { %v5479_v0 = vpop.eup %5478  ;;  %v4431_v43 = vmul.f32 %v6915_v11, %v4430_v44 }
0x3887   :  { %v4547_v37 = vmul.f32 0.6931472, %v5479_v0 }
0x3888   :  { %v4432_v8 = vadd.f32 %v4431_v43, %v4256_v9 }
0x3889   :  { %v4548_v40 = vadd.f32 %v4547_v37, %v4539_v2 }
0x388a   :  { %v4535_v3 = vadd.f32 %v4534_v52, %v4432_v8 }
0x388c   :  { %v4549_v1 = vsub.f32 %v4535_v3, %v4548_v40 }
0x388e   :  { %v4551_v54 = vsel %vm4550_vm8, %v4549_v1, 0.0 }
0x388f   :  { %v4552_v22 = vrot.slane %v4551_v54, 4 }
0x3891   :  { %v4553_v59 = vadd.f32 %v4552_v22, %v4551_v54 }
0x3893   :  { %v4554_v63 = vrot.slane %v4553_v59, 2 }
0x3895   :  { %v4555_v21 = vadd.f32 %v4554_v63, %v4553_v59 }
0x3897   :  { %v4556_v45 = vrot.slane %v4555_v21, 1 }
0x3899   :  { %v4557_v62 = vadd.f32 %v4556_v45, %v4555_v21 }
0x389b   :  { %v4558_v5 = vsub.f32 0.0, %v4557_v62 }
0x389d   :  { %v4560_v58 = vmul.f32 0.5, %v4558_v5 }
0x389f   :  { %4562 = vst.msk [vmem:[#allocation21] sm:$0x1] %vm4561_vm10, %v4560_v58 }
0x38a0   :  { %5718 = shalt.err (!%p5715_p0)
}
0x38a1   :  { %s5719_s21 = scalar_lea.hbm %s7099_s16, 16 }
0x38a2   :  { %p5720_p1 = scmp.ne.s32.totalorder %s7099_s16, %s5719_s21  ;;  %p5723_p2 = scmp.lt.u32.totalorder %s5719_s21, %s7099_s16 }
0x38a4   :  { %p5725_p3 = pnand %p5723_p2, %p5720_p1 }
0x38a6   :  { %5728 = shalt.err (!%p5725_p3)
}
0x38a7   :  { %4572 = dma.vmem_to_hbm [thread:$0]  %s4570_s2, 16, %s7099_s16, [#allocation6]  }
0x38a8   :  { %5741 = dma.done.wait [#allocation6], 16  }
0x38a9   :  { %5742 = vsyncadd [#allocation6], 4294967280 }
0x38aa   :  { %4576 = vsyncpa [#allocation5], 1 }
0x38ab   :  { %4577 = vsyncpa [#allocation8], 1 }
0x38ac   :  { %4578 = vsyncpa [#allocation11], 1 }
0x38ad   :  { %4579 = vsyncpa [#allocation14], 1 }
0x38ae   :  { %4580 = vsyncpa [#allocation17], 1 }
0x38af   :  { %4581 = vsyncpa [#allocation20], 1 }
0x38b0   :  { %4582 = vsyncpa [#allocation6], 1 }

</bundles_post_ra>
